<compile_context>
chip_gen: v6e
topology: v6e:2x2x1
jax: 0.10.0
libtpu: 0.0.40
codegen_flags: <defaults>
</compile_context>

<pallas_src>
import jax
import jax.numpy as jnp
from jax.experimental import pallas as pl
from jax.experimental.pallas import tpu as pltpu


def _round_up(x, m):
    return (x + m - 1) // m * m


# ----------------------------------------------------------------------------
# Kernel
# ----------------------------------------------------------------------------
def bottleneck_kernel(x_ref, top_ref, bot_ref,
                      w1_ref, b1_ref, w2_ref, b2_ref, w3_ref, b3_ref,
                      o_ref, pad_ref):
    NB, TH, W, Cip = x_ref.shape          # strip block (padded channels)
    Pp = w1_ref.shape[1]                  # padded mid channels
    Cop = w3_ref.shape[1]                 # padded output channels
    M = NB * TH * W

    r = pl.program_id(1)
    n_strips = pl.num_programs(1)

    # ---- conv1 (1x1) + folded bn1 + relu on the strip plus its 1-row halos.
    # Halo rows are recomputed here; at the image top/bottom the fetched row is
    # a clamped duplicate and gets overwritten with zeros below.
    xin = jnp.concatenate([top_ref[...], x_ref[...], bot_ref[...]], axis=1)
    h1 = jnp.dot(xin.reshape(NB * (TH + 2) * W, Cip).astype(jnp.bfloat16),
                 w1_ref[...], preferred_element_type=jnp.float32)
    h1 = jnp.maximum(h1 + b1_ref[...], 0.0).astype(jnp.bfloat16)

    # ---- build the (TH+2, W+2) zero-padded conv2 input in bf16 scratch.
    pad_ref[:, :, 1:W + 1, :] = h1.reshape(NB, TH + 2, W, Pp)
    zcol = jnp.zeros((NB, TH + 2, 1, Pp), jnp.bfloat16)
    pad_ref[:, :, 0:1, :] = zcol
    pad_ref[:, :, W + 1:W + 2, :] = zcol

    zrow = jnp.zeros((NB, 1, W + 2, Pp), jnp.bfloat16)

    @pl.when(r == 0)
    def _():
        pad_ref[:, 0:1, :, :] = zrow            # image top: halo row is zero pad

    @pl.when(r == n_strips - 1)
    def _():
        pad_ref[:, TH + 1:TH + 2, :, :] = zrow  # image bottom: halo row is zero pad

    # ---- conv2 (3x3, stride=1, pad=1) + folded bn2 + relu via one im2col
    # matmul; the im2col operand is assembled directly in bf16.
    cols = jnp.concatenate(
        [pad_ref[:, dy:dy + TH, dx:dx + W, :]
         for dy in range(3) for dx in range(3)],
        axis=-1)                                                  # (NB,TH,W,9*Pp) bf16
    h2 = jnp.dot(cols.reshape(M, 9 * Pp), w2_ref[...],
                 preferred_element_type=jnp.float32)
    h2 = jnp.maximum(h2 + b2_ref[...], 0.0)                       # (M, Pp) f32

    # ---- conv3 (1x1) + folded bn3, residual add (re-read x_ref), relu.
    h3 = jnp.dot(h2.astype(jnp.bfloat16), w3_ref[...],
                 preferred_element_type=jnp.float32) + b3_ref[...]
    res = x_ref[...].astype(jnp.float32).reshape(M, Cop)          # Cip == Cop
    out = jnp.maximum(h3 + res, 0.0)
    o_ref[...] = out.reshape(NB, TH, W, Cop).astype(o_ref.dtype)


# ----------------------------------------------------------------------------
# Host-side parameter construction / packing
# ----------------------------------------------------------------------------
def make_params(key, inplanes, planes):
    """Synthetic parameters matching Bottleneck.__init__ shapes (eval-mode BN)."""
    expansion = 4
    cout = planes * expansion
    ks = jax.random.split(key, 18)
    eps = 1e-5

    def fold_bn(gamma, beta, mean, var):
        scale = gamma / jnp.sqrt(var + eps)
        return scale, beta - mean * scale

    # conv1: torch (planes, inplanes, 1, 1) -> matmul form (inplanes, planes)
    w1 = 0.1 * jax.random.normal(ks[0], (inplanes, planes), jnp.float32)
    s1, b1 = fold_bn(1.0 + 0.1 * jax.random.normal(ks[1], (planes,)),
                     0.1 * jax.random.normal(ks[2], (planes,)),
                     0.1 * jax.random.normal(ks[3], (planes,)),
                     jnp.abs(jax.random.normal(ks[4], (planes,))) + 0.5)

    # conv2: torch (planes, planes, 3, 3) -> (3, 3, in, out)
    w2 = 0.1 * jax.random.normal(ks[5], (3, 3, planes, planes), jnp.float32)
    s2, b2 = fold_bn(1.0 + 0.1 * jax.random.normal(ks[6], (planes,)),
                     0.1 * jax.random.normal(ks[7], (planes,)),
                     0.1 * jax.random.normal(ks[8], (planes,)),
                     jnp.abs(jax.random.normal(ks[9], (planes,))) + 0.5)

    # conv3: torch (planes*4, planes, 1, 1) -> (planes, planes*4)
    w3 = 0.1 * jax.random.normal(ks[10], (planes, cout), jnp.float32)
    s3, b3 = fold_bn(1.0 + 0.1 * jax.random.normal(ks[11], (cout,)),
                     0.1 * jax.random.normal(ks[12], (cout,)),
                     0.1 * jax.random.normal(ks[13], (cout,)),
                     jnp.abs(jax.random.normal(ks[14], (cout,))) + 0.5)

    return (w1, s1, b1, w2, s2, b2, w3, s3, b3)


def pack_params(raw, lane=128):
    """Fold BN scale into conv weight columns, zero-pad channel dims to `lane`,
    store weights as bf16 / biases as f32 row vectors; w2 in im2col form.
    (On v5e with planes=64, benchmarking lane=64 vs 128 may be worthwhile.)"""
    (w1, s1, b1, w2, s2, b2, w3, s3, b3) = raw
    Cin, P = w1.shape
    Cout = w3.shape[1]
    Cip, Pp, Cop = _round_up(Cin, lane), _round_up(P, lane), _round_up(Cout, lane)

    w1f = w1 * s1[None, :]
    w2f = w2 * s2[None, None, None, :]
    w3f = w3 * s3[None, :]

    w1p = jnp.zeros((Cip, Pp), jnp.float32).at[:Cin, :P].set(w1f).astype(jnp.bfloat16)
    w2p = jnp.zeros((3, 3, Pp, Pp), jnp.float32).at[:, :, :P, :P].set(w2f)
    w2p = w2p.reshape(9 * Pp, Pp).astype(jnp.bfloat16)        # tap-major rows
    w3p = jnp.zeros((Pp, Cop), jnp.float32).at[:P, :Cout].set(w3f).astype(jnp.bfloat16)

    b1p = jnp.zeros((1, Pp), jnp.float32).at[0, :P].set(b1)
    b2p = jnp.zeros((1, Pp), jnp.float32).at[0, :P].set(b2)
    b3p = jnp.zeros((1, Cop), jnp.float32).at[0, :Cout].set(b3)
    return (w1p, b1p, w2p, b2p, w3p, b3p)


# ----------------------------------------------------------------------------
# Tiling / VMEM heuristics
# ----------------------------------------------------------------------------
def _vmem_estimate(nb, th, W, Cip, Pp, Cop, in_bytes, out_bytes):
    """Rough per-step VMEM bytes: pipelined blocks (x2), scratch, temporaries."""
    m = nb * th * W
    m2 = nb * (th + 2) * W
    blk_in = (nb * th * W * Cip + 2 * nb * W * Cip) * in_bytes   # strip + 2 halo rows
    blk_out = nb * th * W * Cop * out_bytes
    weights = (Cip * Pp + 9 * Pp * Pp + Pp * Cop) * 2 + (2 * Pp + Cop) * 4
    pad = nb * (th + 2) * (W + 2) * Pp * 2                        # bf16 scratch
    cols = m * 9 * Pp * 2                                         # bf16 im2col
    temps = (m2 * Cip * 2        # xin (bf16)
             + m2 * Pp * 4       # h1 (f32, pre-cast)
             + m * Pp * 4        # h2 (f32)
             + m * Cop * 4 * 2   # h3 + out (f32)
             + m * Cip * 4)      # residual (f32)
    return 2 * (blk_in + blk_out + weights) + pad + cols + temps


def _choose_tiles(N, H, W, Cip, Pp, Cop, in_bytes, out_bytes,
                  budget=36 * 1024 * 1024):
    """Pick (nb, th): fit the VMEM budget, keep >=4 grid steps when possible
    for pipelining/megacore, and push matmul M toward ~512 rows."""
    best = None
    for th in [d for d in range(1, H + 1) if H % d == 0]:
        for nb in [d for d in range(1, N + 1) if N % d == 0]:
            if _vmem_estimate(nb, th, W, Cip, Pp, Cop, in_bytes, out_bytes) > budget:
                continue
            m = nb * th * W
            steps = (N // nb) * (H // th)
            score = (min(steps, 4), min(m, 512), -m)
            if best is None or score > best[0]:
                best = (score, nb, th)
    assert best is not None, "no (nb, th) tiling fits the VMEM budget"
    return best[1], best[2]


# ----------------------------------------------------------------------------
# Wrapper
# ----------------------------------------------------------------------------
def bottleneck_pallas(x_nhwc, packed, *, cout=None, nb=None, th=None):
    w1p, b1p, w2p, b2p, w3p, b3p = packed
    N, H, W, Cin = x_nhwc.shape
    Cip, Pp = w1p.shape
    Cop = w3p.shape[1]
    assert Cip == Cop, "residual add requires inplanes == planes*4 (downsample=None)"
    if cout is None:
        cout = Cop

    xp = x_nhwc if Cin == Cip else jnp.pad(
        x_nhwc, ((0, 0), (0, 0), (0, 0), (0, Cip - Cin)))
    in_bytes = jnp.dtype(xp.dtype).itemsize
    out_bytes = in_bytes

    if nb is None or th is None:
        nb_a, th_a = _choose_tiles(N, H, W, Cip, Pp, Cop, in_bytes, out_bytes)
        nb = nb if nb is not None else nb_a
        th = th if th is not None else th_a
    assert N % nb == 0 and H % th == 0

    est = _vmem_estimate(nb, th, W, Cip, Pp, Cop, in_bytes, out_bytes)
    # Cap at 48 MB so the chosen tiling also fits v7x's 64 MiB physical VMEM.
    vmem_limit = int(min(48 * 1024 * 1024, max(16 * 1024 * 1024, est * 3 // 2)))

    n_strips = H // th
    grid = (N // nb, n_strips)

    flops = 2 * N * H * W * (Cip * Pp + 9 * Pp * Pp + Pp * Cop)
    flops += 2 * N * n_strips * 2 * W * Cip * Pp        # conv1 halo recompute
    bytes_accessed = int(
        N * H * W * Cip * in_bytes                       # main input read
        + N * n_strips * 2 * W * Cip * in_bytes          # halo row re-reads
        + N * H * W * Cop * out_bytes                    # output write
        + (w1p.size + w2p.size + w3p.size) * 2
        + (b1p.size + b2p.size + b3p.size) * 4)

    # Constant-index weight/bias blocks (not re-fetched across the grid).
    full = lambda a: pl.BlockSpec(a.shape, lambda n, r: (0,) * a.ndim)

    # Input specs: main strip + 1-row top/bottom halos (clamped at image edges;
    # the kernel zeroes the scratch halo rows at the edges, so the clamped
    # duplicate rows are never used).
    x_main = pl.BlockSpec((nb, th, W, Cip), lambda n, r: (n, r, 0, 0))
    x_top = pl.BlockSpec((nb, 1, W, Cip),
                         lambda n, r: (n, jnp.maximum(r * th - 1, 0), 0, 0))
    x_bot = pl.BlockSpec((nb, 1, W, Cip),
                         lambda n, r: (n, jnp.minimum(r * th + th, H - 1), 0, 0))

    out_p = pl.pallas_call(
        bottleneck_kernel,
        out_shape=jax.ShapeDtypeStruct((N, H, W, Cop), x_nhwc.dtype),
        grid_spec=pltpu.PrefetchScalarGridSpec(
            num_scalar_prefetch=0,
            grid=grid,
            in_specs=[
                x_main, x_top, x_bot,
                full(w1p), full(b1p), full(w2p), full(b2p), full(w3p), full(b3p),
            ],
            out_specs=pl.BlockSpec((nb, th, W, Cop), lambda n, r: (n, r, 0, 0)),
            scratch_shapes=[pltpu.VMEM((nb, th + 2, W + 2, Pp), jnp.bfloat16)],
        ),
        compiler_params=pltpu.CompilerParams(
            dimension_semantics=("parallel", "parallel"),
            vmem_limit_bytes=vmem_limit),
        cost_estimate=pl.CostEstimate(
            flops=int(flops), transcendentals=0, bytes_accessed=bytes_accessed),
    )(xp, xp, xp, w1p, b1p, w2p, b2p, w3p, b3p)

    return out_p[..., :cout] if cout < Cop else out_p


# ----------------------------------------------------------------------------
# References
# ----------------------------------------------------------------------------
def bottleneck_ref_packed(x_nhwc, packed):
    """Pure-JAX reference with the SAME math as the kernel (bf16 matmul
    operands, folded/padded weights) — tight-tolerance check."""
    w1p, b1p, w2p, b2p, w3p, b3p = packed
    N, H, W, Cin = x_nhwc.shape
    Cip, Pp = w1p.shape
    Cop = w3p.shape[1]
    xp = x_nhwc if Cin == Cip else jnp.pad(
        x_nhwc, ((0, 0), (0, 0), (0, 0), (0, Cip - Cin)))
    xf = xp.astype(jnp.float32).reshape(N * H * W, Cip)
    h1 = jnp.maximum(jnp.dot(xp.reshape(N * H * W, Cip).astype(jnp.bfloat16), w1p,
                             preferred_element_type=jnp.float32) + b1p, 0.0)
    hpd = jnp.pad(h1.reshape(N, H, W, Pp), ((0, 0), (1, 1), (1, 1), (0, 0)))
    cols = jnp.concatenate(
        [hpd[:, dy:dy + H, dx:dx + W, :] for dy in range(3) for dx in range(3)],
        axis=-1)
    h2 = jnp.maximum(jnp.dot(cols.reshape(N * H * W, 9 * Pp).astype(jnp.bfloat16),
                             w2p, preferred_element_type=jnp.float32) + b2p, 0.0)
    h3 = jnp.dot(h2.astype(jnp.bfloat16), w3p,
                 preferred_element_type=jnp.float32) + b3p
    return jnp.maximum(h3 + xf, 0.0).reshape(N, H, W, Cop)


def bottleneck_ref_f32(x_nhwc, raw):
    """Full-precision eval-mode reference (module semantics) — loose check."""
    (w1, s1, b1, w2, s2, b2, w3, s3, b3) = raw
    N, H, W, Cin = x_nhwc.shape
    P = w1.shape[1]
    h1 = jnp.maximum(jnp.einsum('nhwc,cp->nhwp', x_nhwc, w1) * s1 + b1, 0.0)
    hp = jnp.pad(h1, ((0, 0), (1, 1), (1, 1), (0, 0)))
    acc = jnp.zeros((N, H, W, P), jnp.float32)
    for dy in range(3):
        for dx in range(3):
            acc = acc + jnp.einsum('nhwp,pq->nhwq',
                                   hp[:, dy:dy + H, dx:dx + W, :], w2[dy, dx])
    h2 = jnp.maximum(acc * s2 + b2, 0.0)
    h3 = jnp.einsum('nhwp,pq->nhwq', h2, w3) * s3 + b3
    return jnp.maximum(h3 + x_nhwc, 0.0)


if __name__ == "__main__":
    # Small shapes: batch=2, inplanes=16, planes=4 (so planes*4 == inplanes,
    # matching downsample=None / stride=1), 16x16 spatial.  The auto tiler
    # picks an H-strip (nb=2, th=4 -> grid (1,4)), exercising halo recompute
    # on interior strips and the zero-padded boundary strips.
    N, inplanes, planes, H, W = 2, 16, 4, 16, 16

    key = jax.random.PRNGKey(0)
    kx, kp = jax.random.split(key)
    x_nchw = jax.random.normal(kx, (N, inplanes, H, W), jnp.float32)  # PyTorch layout
    raw = make_params(kp, inplanes, planes)
    packed = pack_params(raw)

    x_nhwc = jnp.transpose(x_nchw, (0, 2, 3, 1))          # -> kernel layout NHWC
    out_nhwc = bottleneck_pallas(x_nhwc, packed, cout=inplanes)
    out_nchw = jnp.transpose(out_nhwc, (0, 3, 1, 2))      # back to PyTorch NCHW
    jax.block_until_ready(out_nchw)
    assert out_nchw.shape == (N, inplanes, H, W)

    # Tight check vs a reference doing identical (bf16-operand) math.
    ref_b = bottleneck_ref_packed(x_nhwc, packed)[..., :inplanes]
    assert jnp.allclose(out_nhwc, ref_b, atol=2e-3, rtol=2e-3), \
        "mismatch vs bf16-matched reference"

    # Loose check vs full-f32 eval-mode reference (module semantics, bf16 error budget).
    ref_f = bottleneck_ref_f32(x_nhwc, raw)
    assert jnp.allclose(out_nhwc, ref_f, atol=5e-2, rtol=5e-2), \
        "mismatch vs f32 reference"

    print("KERNEL_OK")
</pallas_src>

<mosaic_0001>
module attributes {stable_mosaic.version = 11 : i64} {
  func.func @bottleneck_kernel(%arg0: i32, %arg1: i32, %arg2: memref<2x4x16x128xf32, #tpu.memory_space<vmem>>, %arg3: memref<2x1x16x128xf32, #tpu.memory_space<vmem>>, %arg4: memref<2x1x16x128xf32, #tpu.memory_space<vmem>>, %arg5: memref<128x128xbf16, #tpu.memory_space<vmem>>, %arg6: memref<1x128xf32, #tpu.memory_space<vmem>>, %arg7: memref<1152x128xbf16, #tpu.memory_space<vmem>>, %arg8: memref<1x128xf32, #tpu.memory_space<vmem>>, %arg9: memref<128x128xbf16, #tpu.memory_space<vmem>>, %arg10: memref<1x128xf32, #tpu.memory_space<vmem>>, %arg11: memref<2x4x16x128xf32, #tpu.memory_space<vmem>>, %arg12: memref<2x6x18x128xbf16, #tpu.memory_space<vmem>>) attributes {dimension_semantics = [#tpu.dimension_semantics<parallel>, #tpu.dimension_semantics<parallel>], iteration_bounds = array<i64: 1, 4>, scalar_prefetch = 0 : i64, scratch_operands = 1 : i64, tpu.core_type = #tpu.core_type<tc>, window_params = [{transform_indices = @transform_0, window_bounds = array<i64: 2, 4, 16, 128>}, {transform_indices = @transform_1, window_bounds = array<i64: 2, 1, 16, 128>}, {transform_indices = @transform_2, window_bounds = array<i64: 2, 1, 16, 128>}, {pipeline_mode = #tpu.pipeline_mode<synchronous>, transform_indices = @transform_3, window_bounds = array<i64: 128, 128>}, {pipeline_mode = #tpu.pipeline_mode<synchronous>, transform_indices = @transform_4, window_bounds = array<i64: 1, 128>}, {pipeline_mode = #tpu.pipeline_mode<synchronous>, transform_indices = @transform_5, window_bounds = array<i64: 1152, 128>}, {pipeline_mode = #tpu.pipeline_mode<synchronous>, transform_indices = @transform_6, window_bounds = array<i64: 1, 128>}, {pipeline_mode = #tpu.pipeline_mode<synchronous>, transform_indices = @transform_7, window_bounds = array<i64: 128, 128>}, {pipeline_mode = #tpu.pipeline_mode<synchronous>, transform_indices = @transform_8, window_bounds = array<i64: 1, 128>}, {transform_indices = @transform_9, window_bounds = array<i64: 2, 4, 16, 128>}]} {
    %c0 = arith.constant 0 : index
    %c0_0 = arith.constant 0 : index
    %c0_1 = arith.constant 0 : index
    %c0_2 = arith.constant 0 : index
    %0 = vector.load %arg3[%c0, %c0_0, %c0_1, %c0_2] : memref<2x1x16x128xf32, #tpu.memory_space<vmem>>, vector<2x1x16x128xf32>
    %c0_3 = arith.constant 0 : index
    %c0_4 = arith.constant 0 : index
    %c0_5 = arith.constant 0 : index
    %c0_6 = arith.constant 0 : index
    %1 = vector.load %arg2[%c0_3, %c0_4, %c0_5, %c0_6] : memref<2x4x16x128xf32, #tpu.memory_space<vmem>>, vector<2x4x16x128xf32>
    %c0_7 = arith.constant 0 : index
    %c0_8 = arith.constant 0 : index
    %c0_9 = arith.constant 0 : index
    %c0_10 = arith.constant 0 : index
    %2 = vector.load %arg4[%c0_7, %c0_8, %c0_9, %c0_10] : memref<2x1x16x128xf32, #tpu.memory_space<vmem>>, vector<2x1x16x128xf32>
    %3 = tpu.concatenate %0, %1, %2 in 1 : vector<2x1x16x128xf32>, vector<2x4x16x128xf32>, vector<2x1x16x128xf32> -> vector<2x6x16x128xf32>
    %4 = vector.shape_cast %3 : vector<2x6x16x128xf32> to vector<192x128xf32>
    %5 = arith.truncf %4 : vector<192x128xf32> to vector<192x128xbf16>
    %c0_11 = arith.constant 0 : index
    %c0_12 = arith.constant 0 : index
    %6 = vector.load %arg5[%c0_11, %c0_12] : memref<128x128xbf16, #tpu.memory_space<vmem>>, vector<128x128xbf16>
    %cst = arith.constant dense<0.000000e+00> : vector<192x128xf32>
    %7 = tpu.matmul %5, %6, %cst {dimension_numbers = #tpu.dot_dimension_numbers<[1], [0], [0], [1], [0, 0, 1, 1], [], []>} : vector<192x128xbf16>, vector<128x128xbf16>, vector<192x128xf32> -> vector<192x128xf32>
    %c0_13 = arith.constant 0 : index
    %c0_14 = arith.constant 0 : index
    %8 = vector.load %arg6[%c0_13, %c0_14] : memref<1x128xf32, #tpu.memory_space<vmem>>, vector<1x128xf32>
    %9 = vector.broadcast %8 : vector<1x128xf32> to vector<192x128xf32>
    %10 = arith.addf %7, %9 : vector<192x128xf32>
    %cst_15 = arith.constant 0.000000e+00 : f32
    %11 = vector.broadcast %cst_15 : f32 to vector<192x128xf32>
    %12 = arith.maximumf %10, %11 : vector<192x128xf32>
    %13 = arith.truncf %12 : vector<192x128xf32> to vector<192x128xbf16>
    %14 = vector.shape_cast %13 : vector<192x128xbf16> to vector<2x6x16x128xbf16>
    %c0_16 = arith.constant 0 : index
    %c0_17 = arith.constant 0 : index
    %c1 = arith.constant 1 : index
    %c0_18 = arith.constant 0 : index
    %15 = vector.load %arg12[%c0_16, %c0_17, %c1, %c0_18] : memref<2x6x18x128xbf16, #tpu.memory_space<vmem>>, vector<2x6x16x128xbf16>
    tpu.vector_store %arg12[%c0_16, %c0_17, %c1, %c0_18], %14 {strides = array<i32>} : memref<2x6x18x128xbf16, #tpu.memory_space<vmem>>, vector<2x6x16x128xbf16>,
    %cst_19 = arith.constant 0.000000e+00 : bf16
    %16 = vector.broadcast %cst_19 : bf16 to vector<2x6x1x128xbf16>
    %c0_20 = arith.constant 0 : index
    %c0_21 = arith.constant 0 : index
    %c0_22 = arith.constant 0 : index
    %c0_23 = arith.constant 0 : index
    %17 = vector.load %arg12[%c0_20, %c0_21, %c0_22, %c0_23] : memref<2x6x18x128xbf16, #tpu.memory_space<vmem>>, vector<2x6x1x128xbf16>
    tpu.vector_store %arg12[%c0_20, %c0_21, %c0_22, %c0_23], %16 {strides = array<i32>} : memref<2x6x18x128xbf16, #tpu.memory_space<vmem>>, vector<2x6x1x128xbf16>,
    %c0_24 = arith.constant 0 : index
    %c0_25 = arith.constant 0 : index
    %c17 = arith.constant 17 : index
    %c0_26 = arith.constant 0 : index
    %18 = vector.load %arg12[%c0_24, %c0_25, %c17, %c0_26] : memref<2x6x18x128xbf16, #tpu.memory_space<vmem>>, vector<2x6x1x128xbf16>
    tpu.vector_store %arg12[%c0_24, %c0_25, %c17, %c0_26], %16 {strides = array<i32>} : memref<2x6x18x128xbf16, #tpu.memory_space<vmem>>, vector<2x6x1x128xbf16>,
    %cst_27 = arith.constant 0.000000e+00 : bf16
    %19 = vector.broadcast %cst_27 : bf16 to vector<2x1x18x128xbf16>
    %c0_i32 = arith.constant 0 : i32
    %20 = arith.cmpi eq, %arg1, %c0_i32 : i32
    %21 = arith.extui %20 : i1 to i32
    %c0_i32_28 = arith.constant 0 : i32
    %22 = arith.cmpi ne, %21, %c0_i32_28 : i32
    scf.if %22 {
      %c0_85 = arith.constant 0 : index
      %c0_86 = arith.constant 0 : index
      %c0_87 = arith.constant 0 : index
      %c0_88 = arith.constant 0 : index
      %57 = vector.load %arg12[%c0_85, %c0_86, %c0_87, %c0_88] : memref<2x6x18x128xbf16, #tpu.memory_space<vmem>>, vector<2x1x18x128xbf16>
      tpu.vector_store %arg12[%c0_85, %c0_86, %c0_87, %c0_88], %19 {strides = array<i32>} : memref<2x6x18x128xbf16, #tpu.memory_space<vmem>>, vector<2x1x18x128xbf16>,
    } else {
    }
    %c3_i32 = arith.constant 3 : i32
    %23 = arith.cmpi eq, %arg1, %c3_i32 : i32
    %24 = arith.extui %23 : i1 to i32
    %c0_i32_29 = arith.constant 0 : i32
    %25 = arith.cmpi ne, %24, %c0_i32_29 : i32
    scf.if %25 {
      %c0_85 = arith.constant 0 : index
      %c5 = arith.constant 5 : index
      %c0_86 = arith.constant 0 : index
      %c0_87 = arith.constant 0 : index
      %57 = vector.load %arg12[%c0_85, %c5, %c0_86, %c0_87] : memref<2x6x18x128xbf16, #tpu.memory_space<vmem>>, vector<2x1x18x128xbf16>
      tpu.vector_store %arg12[%c0_85, %c5, %c0_86, %c0_87], %19 {strides = array<i32>} : memref<2x6x18x128xbf16, #tpu.memory_space<vmem>>, vector<2x1x18x128xbf16>,
    } else {
    }
    %c0_30 = arith.constant 0 : index
    %c0_31 = arith.constant 0 : index
    %c0_32 = arith.constant 0 : index
    %c0_33 = arith.constant 0 : index
    %26 = vector.load %arg12[%c0_30, %c0_31, %c0_32, %c0_33] : memref<2x6x18x128xbf16, #tpu.memory_space<vmem>>, vector<2x4x16x128xbf16>
    %c0_34 = arith.constant 0 : index
    %c0_35 = arith.constant 0 : index
    %c1_36 = arith.constant 1 : index
    %c0_37 = arith.constant 0 : index
    %27 = vector.load %arg12[%c0_34, %c0_35, %c1_36, %c0_37] : memref<2x6x18x128xbf16, #tpu.memory_space<vmem>>, vector<2x4x16x128xbf16>
    %c0_38 = arith.constant 0 : index
    %c0_39 = arith.constant 0 : index
    %c2 = arith.constant 2 : index
    %c0_40 = arith.constant 0 : index
    %28 = vector.load %arg12[%c0_38, %c0_39, %c2, %c0_40] : memref<2x6x18x128xbf16, #tpu.memory_space<vmem>>, vector<2x4x16x128xbf16>
    %c0_41 = arith.constant 0 : index
    %c1_42 = arith.constant 1 : index
    %c0_43 = arith.constant 0 : index
    %c0_44 = arith.constant 0 : index
    %29 = vector.load %arg12[%c0_41, %c1_42, %c0_43, %c0_44] : memref<2x6x18x128xbf16, #tpu.memory_space<vmem>>, vector<2x4x16x128xbf16>
    %c0_45 = arith.constant 0 : index
    %c1_46 = arith.constant 1 : index
    %c1_47 = arith.constant 1 : index
    %c0_48 = arith.constant 0 : index
    %30 = vector.load %arg12[%c0_45, %c1_46, %c1_47, %c0_48] : memref<2x6x18x128xbf16, #tpu.memory_space<vmem>>, vector<2x4x16x128xbf16>
    %c0_49 = arith.constant 0 : index
    %c1_50 = arith.constant 1 : index
    %c2_51 = arith.constant 2 : index
    %c0_52 = arith.constant 0 : index
    %31 = vector.load %arg12[%c0_49, %c1_50, %c2_51, %c0_52] : memref<2x6x18x128xbf16, #tpu.memory_space<vmem>>, vector<2x4x16x128xbf16>
    %c0_53 = arith.constant 0 : index
    %c2_54 = arith.constant 2 : index
    %c0_55 = arith.constant 0 : index
    %c0_56 = arith.constant 0 : index
    %32 = vector.load %arg12[%c0_53, %c2_54, %c0_55, %c0_56] : memref<2x6x18x128xbf16, #tpu.memory_space<vmem>>, vector<2x4x16x128xbf16>
    %c0_57 = arith.constant 0 : index
    %c2_58 = arith.constant 2 : index
    %c1_59 = arith.constant 1 : index
    %c0_60 = arith.constant 0 : index
    %33 = vector.load %arg12[%c0_57, %c2_58, %c1_59, %c0_60] : memref<2x6x18x128xbf16, #tpu.memory_space<vmem>>, vector<2x4x16x128xbf16>
    %c0_61 = arith.constant 0 : index
    %c2_62 = arith.constant 2 : index
    %c2_63 = arith.constant 2 : index
    %c0_64 = arith.constant 0 : index
    %34 = vector.load %arg12[%c0_61, %c2_62, %c2_63, %c0_64] : memref<2x6x18x128xbf16, #tpu.memory_space<vmem>>, vector<2x4x16x128xbf16>
    %35 = tpu.concatenate %26, %27, %28, %29, %30, %31, %32, %33, %34 in 3 : vector<2x4x16x128xbf16>, vector<2x4x16x128xbf16>, vector<2x4x16x128xbf16>, vector<2x4x16x128xbf16>, vector<2x4x16x128xbf16>, vector<2x4x16x128xbf16>, vector<2x4x16x128xbf16>, vector<2x4x16x128xbf16>, vector<2x4x16x128xbf16> -> vector<2x4x16x1152xbf16>
    %36 = vector.shape_cast %35 : vector<2x4x16x1152xbf16> to vector<128x1152xbf16>
    %c0_65 = arith.constant 0 : index
    %c0_66 = arith.constant 0 : index
    %37 = vector.load %arg7[%c0_65, %c0_66] : memref<1152x128xbf16, #tpu.memory_space<vmem>>, vector<1152x128xbf16>
    %cst_67 = arith.constant dense<0.000000e+00> : vector<128x128xf32>
    %38 = tpu.matmul %36, %37, %cst_67 {dimension_numbers = #tpu.dot_dimension_numbers<[1], [0], [0], [1], [0, 0, 1, 1], [], []>} : vector<128x1152xbf16>, vector<1152x128xbf16>, vector<128x128xf32> -> vector<128x128xf32>
    %c0_68 = arith.constant 0 : index
    %c0_69 = arith.constant 0 : index
    %39 = vector.load %arg8[%c0_68, %c0_69] : memref<1x128xf32, #tpu.memory_space<vmem>>, vector<1x128xf32>
    %40 = vector.broadcast %39 : vector<1x128xf32> to vector<128x128xf32>
    %41 = arith.addf %38, %40 : vector<128x128xf32>
    %cst_70 = arith.constant 0.000000e+00 : f32
    %42 = vector.broadcast %cst_70 : f32 to vector<128x128xf32>
    %43 = arith.maximumf %41, %42 : vector<128x128xf32>
    %44 = arith.truncf %43 : vector<128x128xf32> to vector<128x128xbf16>
    %c0_71 = arith.constant 0 : index
    %c0_72 = arith.constant 0 : index
    %45 = vector.load %arg9[%c0_71, %c0_72] : memref<128x128xbf16, #tpu.memory_space<vmem>>, vector<128x128xbf16>
    %cst_73 = arith.constant dense<0.000000e+00> : vector<128x128xf32>
    %46 = tpu.matmul %44, %45, %cst_73 {dimension_numbers = #tpu.dot_dimension_numbers<[1], [0], [0], [1], [0, 0, 1, 1], [], []>} : vector<128x128xbf16>, vector<128x128xbf16>, vector<128x128xf32> -> vector<128x128xf32>
    %c0_74 = arith.constant 0 : index
    %c0_75 = arith.constant 0 : index
    %47 = vector.load %arg10[%c0_74, %c0_75] : memref<1x128xf32, #tpu.memory_space<vmem>>, vector<1x128xf32>
    %48 = vector.broadcast %47 : vector<1x128xf32> to vector<128x128xf32>
    %49 = arith.addf %46, %48 : vector<128x128xf32>
    %c0_76 = arith.constant 0 : index
    %c0_77 = arith.constant 0 : index
    %c0_78 = arith.constant 0 : index
    %c0_79 = arith.constant 0 : index
    %50 = vector.load %arg2[%c0_76, %c0_77, %c0_78, %c0_79] : memref<2x4x16x128xf32, #tpu.memory_space<vmem>>, vector<2x4x16x128xf32>
    %51 = vector.shape_cast %50 : vector<2x4x16x128xf32> to vector<128x128xf32>
    %52 = arith.addf %49, %51 : vector<128x128xf32>
    %cst_80 = arith.constant 0.000000e+00 : f32
    %53 = vector.broadcast %cst_80 : f32 to vector<128x128xf32>
    %54 = arith.maximumf %52, %53 : vector<128x128xf32>
    %55 = vector.shape_cast %54 : vector<128x128xf32> to vector<2x4x16x128xf32>
    %c0_81 = arith.constant 0 : index
    %c0_82 = arith.constant 0 : index
    %c0_83 = arith.constant 0 : index
    %c0_84 = arith.constant 0 : index
    %56 = vector.load %arg11[%c0_81, %c0_82, %c0_83, %c0_84] : memref<2x4x16x128xf32, #tpu.memory_space<vmem>>, vector<2x4x16x128xf32>
    tpu.vector_store %arg11[%c0_81, %c0_82, %c0_83, %c0_84], %55 {strides = array<i32>} : memref<2x4x16x128xf32, #tpu.memory_space<vmem>>, vector<2x4x16x128xf32>,
    return
  }
  func.func @transform_0(%arg0: i32, %arg1: i32) -> (i32, i32, i32, i32) {
    %c0_i32 = arith.constant 0 : i32
    %c0_i32_0 = arith.constant 0 : i32
    %c0_i32_1 = arith.constant 0 : i32
    return %arg0, %arg1, %c0_i32, %c0_i32_0 : i32, i32, i32, i32
  }
  func.func @transform_1(%arg0: i32, %arg1: i32) -> (i32, i32, i32, i32) {
    %c4_i32 = arith.constant 4 : i32
    %0 = arith.muli %arg1, %c4_i32 : i32
    %c1_i32 = arith.constant 1 : i32
    %1 = arith.subi %0, %c1_i32 : i32
    %c0_i32 = arith.constant 0 : i32
    %2 = arith.maxsi %1, %c0_i32 : i32
    %c0_i32_0 = arith.constant 0 : i32
    %c0_i32_1 = arith.constant 0 : i32
    %c0_i32_2 = arith.constant 0 : i32
    return %arg0, %2, %c0_i32_0, %c0_i32_1 : i32, i32, i32, i32
  }
  func.func @transform_2(%arg0: i32, %arg1: i32) -> (i32, i32, i32, i32) {
    %c4_i32 = arith.constant 4 : i32
    %0 = arith.muli %arg1, %c4_i32 : i32
    %c4_i32_0 = arith.constant 4 : i32
    %1 = arith.addi %0, %c4_i32_0 : i32
    %c15_i32 = arith.constant 15 : i32
    %2 = arith.minsi %1, %c15_i32 : i32
    %c0_i32 = arith.constant 0 : i32
    %c0_i32_1 = arith.constant 0 : i32
    %c0_i32_2 = arith.constant 0 : i32
    return %arg0, %2, %c0_i32, %c0_i32_1 : i32, i32, i32, i32
  }
  func.func @transform_3(%arg0: i32, %arg1: i32) -> (i32, i32) {
    %c0_i32 = arith.constant 0 : i32
    %c0_i32_0 = arith.constant 0 : i32
    %c0_i32_1 = arith.constant 0 : i32
    return %c0_i32, %c0_i32_0 : i32, i32
  }
  func.func @transform_4(%arg0: i32, %arg1: i32) -> (i32, i32) {
    %c0_i32 = arith.constant 0 : i32
    %c0_i32_0 = arith.constant 0 : i32
    %c0_i32_1 = arith.constant 0 : i32
    return %c0_i32, %c0_i32_0 : i32, i32
  }
  func.func @transform_5(%arg0: i32, %arg1: i32) -> (i32, i32) {
    %c0_i32 = arith.constant 0 : i32
    %c0_i32_0 = arith.constant 0 : i32
    %c0_i32_1 = arith.constant 0 : i32
    return %c0_i32, %c0_i32_0 : i32, i32
  }
  func.func @transform_6(%arg0: i32, %arg1: i32) -> (i32, i32) {
    %c0_i32 = arith.constant 0 : i32
    %c0_i32_0 = arith.constant 0 : i32
    %c0_i32_1 = arith.constant 0 : i32
    return %c0_i32, %c0_i32_0 : i32, i32
  }
  func.func @transform_7(%arg0: i32, %arg1: i32) -> (i32, i32) {
    %c0_i32 = arith.constant 0 : i32
    %c0_i32_0 = arith.constant 0 : i32
    %c0_i32_1 = arith.constant 0 : i32
    return %c0_i32, %c0_i32_0 : i32, i32
  }
  func.func @transform_8(%arg0: i32, %arg1: i32) -> (i32, i32) {
    %c0_i32 = arith.constant 0 : i32
    %c0_i32_0 = arith.constant 0 : i32
    %c0_i32_1 = arith.constant 0 : i32
    return %c0_i32, %c0_i32_0 : i32, i32
  }
  func.func @transform_9(%arg0: i32, %arg1: i32) -> (i32, i32, i32, i32) {
    %c0_i32 = arith.constant 0 : i32
    %c0_i32_0 = arith.constant 0 : i32
    %c0_i32_1 = arith.constant 0 : i32
    return %arg0, %arg1, %c0_i32, %c0_i32_0 : i32, i32, i32, i32
  }
}

</mosaic_0001>

<bundles_post_ra>
// kernel: tpu_custom_call.1
= control target key start
LH: loop header
LB: loop body
LE: loop exit
PB: predicated region body
PF: predicated region fallthrough
CT: control target
= control target key end

     0   :  { %s6049_s0 = inlined_call_operand.hbm [shape: f32[2,16,16,128], index: 0, kind: input, shape index: {}]   ;;  %s6050_s1 = inlined_call_operand.hbm [shape: f32[2,16,16,128], index: 1, kind: input, shape index: {}]   ;;  %s6051_s2 = inlined_call_operand.hbm [shape: f32[2,16,16,128], index: 2, kind: input, shape index: {}]   ;;  %s6052_s3 = inlined_call_operand.hbm [shape: bf16[128,128], index: 3, kind: input, shape index: {}]   ;;  %s6053_s4 = inlined_call_operand.vmem [shape: f32[1,128], index: 4, kind: input, shape index: {}]   ;;  %s6054_s5 = inlined_call_operand.hbm [shape: bf16[1152,128], index: 5, kind: input, shape index: {}]   ;;  %s6055_s6 = inlined_call_operand.vmem [shape: f32[1,128], index: 6, kind: input, shape index: {}]   ;;  %s6056_s7 = inlined_call_operand.hbm [shape: bf16[128,128], index: 7, kind: input, shape index: {}]   ;;  %s6057_s8 = inlined_call_operand.vmem [shape: f32[1,128], index: 8, kind: input, shape index: {}]   ;;  %s6058_s9 = inlined_call_operand.hbm [shape: f32[2,16,16,128], index: 9, kind: output, shape index: {}]  }
   0x1   :  { %6082 = sst [smem:[#allocation66_spill]] %s6052_s3 }
   0x2   :  { %6083 = sst [smem:[#allocation67_spill]] %s6053_s4 }
   0x3   :  { %6084 = sst [smem:[#allocation68_spill]] %s6054_s5 }
   0x4   :  { %6085 = sst [smem:[#allocation69_spill]] %s6055_s6 }
   0x5   :  { %6086 = sst [smem:[#allocation70_spill]] %s6057_s8 }
   0x6   :  { %6087 = sst [smem:[#allocation71_spill]] %s6058_s9 }
   0x7   :  { %14 = vsyncpa [#allocation4], 0 }
   0x8   :  { %16 = vsyncpa [#allocation4 + $0x1], 0 }
   0x9   :  { %17 = vsyncpa [#allocation7], 0 }
   0xa   :  { %19 = vsyncpa [#allocation7 + $0x1], 0 }
   0xb   :  { %20 = vsyncpa [#allocation10], 0 }
   0xc   :  { %21 = vsyncpa [#allocation13], 0 }
   0xd   :  { %22 = vsyncpa [#allocation5], 0 }
   0xe   :  { %24 = vsyncpa [#allocation5 + $0x1], 0  ;;  %s5025_s30 = smov 0   ;;  %s5027_s10 = smov 0  }
   0xf   :  { %s5029_s11 = smov 0   ;;  %s5031_s12 = smov 0  }
  0x10   :  { %s5033_s13 = smov 0   ;;  %s5035_s14 = smov 0  }
  0x11   :  { %s5037_s15 = smov 0   ;;  %s5039_s16 = smov 0  }
  0x12   :  { %s5041_s17 = smov 0   ;;  %s5043_s18 = smov 0  }
  0x13   :  { %s5045_s19 = smov 0   ;;  %s5047_s20 = smov 0  }
  0x14 LB: > { %6088 = sst [smem:[#allocation32_spill]] %s4903_s10  ;;  %s5086_s21 = sadd.s32 4294967295, %s4943_s20   ;;  %s4943_s20 = sphi %s5047_s20, %s30_s20   ;;  %s4939_s19 = sphi %s5045_s19, %s6206_s19   ;;  %s4935_s18 = sphi %s5043_s18, %s6205_s18   ;;  %s4931_s17 = sphi %s5041_s17, %s6204_s17   ;;  %s4927_s16 = sphi %s5039_s16, %s6203_s16   ;;  %s4923_s15 = sphi %s5037_s15, %s6202_s15   ;;  %s4919_s14 = sphi %s5035_s14, %s6201_s14   ;;  %s4915_s13 = sphi %s5033_s13, %s6200_s13   ;;  %s4911_s12 = sphi %s5031_s12, %s6194_s12   ;;  %s4907_s11 = sphi %s5029_s11, %s6199_s11   ;;  %s4903_s10 = sphi %s5027_s10, %s6198_s10   ;;  %s4899_s30 = sphi %s5025_s30, %s6192_s30  }
  0x15   : > { %6089 = sst [smem:[#allocation33_spill]] %s4915_s13  ;;  %s39_s23 = sadd.s32 1, %s4939_s19 }
  0x16   : > { %6090 = sst [smem:[#allocation34_spill]] %s4923_s15  ;;  %s51_s24 = sadd.s32 1, %s4931_s17 }
  0x17   : > { %6091 = sst [smem:[#allocation35_spill]] %s4935_s18  ;;  %p40_p0 = scmp.ge.s32.totalorder %s39_s23, 4 }
  0x18   : > { %6092 = sst [smem:[#allocation36_spill]] %s5086_s21  ;;  %p58_p1 = scmp.ne.s32.totalorder %s4931_s17, %s4927_s16 }
  0x19   : > { %p59_p2 = scmp.eq.s32.totalorder %s4943_s20, 0  ;;  %p6060_p3 = scmp.ne.s32.totalorder %s4927_s16, %s4923_s15 }
  0x1a   : > { %s6208_s23 = smov (%p40_p0, %s39_s23), 0  ;;  %p6078_p5 = scmp.eq.s32.totalorder %s5086_s21, 0 }
  0x1b   : > { %6093 = sst [smem:[#allocation37_spill]] %s6208_s23  ;;  %p5103_p4 = por %p59_p2, %p58_p1 }
  0x1c   : > { %s47_s26 = ssub.s32 %s4939_s19, %s6208_s23  ;;  %s3702_s27 = sshll.u32 %s4939_s19, 2 }
  0x1d   : > { %p49_p6 = scmp.eq.s32.totalorder %s47_s26, 0  ;;  %p5116_p7 = por %p6078_p5, %p6060_p3 }
  0x1e   : > { %s3703_s29 = sadd.s32 4294967295, %s3702_s27  ;;  %s3704_s22 = sshll.u32 %s6208_s23, 2 }
  0x1f   : > { %s6095_s28 = scalar_select %p5116_p7, 1, 0 }
  0x20   : > { %s5122_s9 = scalar_select %p49_p6, %s4931_s17, %s51_s24  }
  0x21   : > { %p76_p8 = scmp.gt.s32.totalorder %s3703_s29, 0  ;;  %s3705_s8 = sadd.s32 4294967295, %s3704_s22 }
  0x22   : > { %6096 = sst [smem:[#allocation38_spill]] %s5122_s9  ;;  %p80_p9 = scmp.gt.s32.totalorder %s3705_s8, 0 }
  0x23   : > { %s87_s6 = sadd.s32 1, %s4919_s14  ;;  %s6210_s29 = smov (!%p76_p8, %s3703_s29), 0 }
  0x24   : > { %s6212_s8 = smov (!%p80_p9, %s3705_s8), 0  ;;  %p94_p10 = scmp.ne.s32.totalorder %s4919_s14, %s4915_s13 }
  0x25   : > { %p100_p11 = scmp.ne.s32.totalorder %s4915_s13, %s4911_s12  ;;  %s83_s26 = ssub.s32 %s6210_s29, %s6212_s8 }
  0x26   : > { %s111_s24 = sadd.s32 4, %s3702_s27  ;;  %p85_p12 = scmp.eq.s32.totalorder %s83_s26, 0 }
  0x27   : > { %p5134_p13 = por %p94_p10, %p59_p2  ;;  %p5140_p0 = por %p100_p11, %p6078_p5 }
  0x28   : > { %p112_p6 = scmp.lt.s32.totalorder %s111_s24, 15  ;;  %s115_s8 = sadd.s32 4, %s3704_s22 }
  0x29   : > { %s6097_s23 = scalar_select %p5134_p13, 1, 0 }
  0x2a   : > { %s6098_s9 = scalar_select %p5140_p0, 1, 0 }
  0x2b   : > { %s5145_s12 = scalar_select %p85_p12, %s4919_s14, %s87_s6  }
  0x2c   : > { %6099 = sst [smem:[#allocation39_spill]] %s6098_s9  ;;  %s6214_s24 = smov (!%p112_p6, %s111_s24), 15 }
  0x2d   : > { %6100 = sst [smem:[#allocation40_spill]] %s5145_s12  ;;  %s123_s27 = sadd.s32 1, %s4907_s11 }
  0x2e   : > { %p116_p8 = scmp.lt.s32.totalorder %s115_s8, 15  ;;  %p130_p9 = scmp.ne.s32.totalorder %s4907_s11, %s4903_s10 }
  0x2f   : > { %p136_p10 = scmp.ne.s32.totalorder %s4903_s10, %s4899_s30  ;;  %p288_p11 = scmp.eq.s32.totalorder %s5086_s21, 3 }
  0x30   : > { %s6216_s8 = smov (!%p116_p8, %s115_s8), 15  ;;  %p5157_p3 = por %p130_p9, %p59_p2 }
  0x31   : > { %p5163_p12 = por %p136_p10, %p6078_p5  ;;  %s119_s22 = ssub.s32 %s6214_s24, %s6216_s8 }
  0x32   : > { %s6101_s26 = scalar_select %p5157_p3, 1, 0 }
  0x33   : > { %s6102_s6 = scalar_select %p5163_p12, 1, 0 }
  0x34   : > { %p5171_p6 = por %p288_p11, %p58_p1  ;;  %p121_p0 = scmp.eq.s32.totalorder %s119_s22, 0 }
  0x35   : > { %6103 = sst [smem:[#allocation41_spill]] %s6102_s6  ;;  %s6106_s30 = sadd.s32 4294967294, %s4943_s20  }
  0x36   : > { %s6104_s12 = scalar_select %p5171_p6, 1, 0 }
  0x37   : > { %p294_p8 = scmp.eq.s32.totalorder %s6106_s30, 3  ;;  %p3708_p7 = scmp.ge.s32.totalorder %s4943_s20, 1 }
  0x38   : > { %6105 = sst [smem:[#allocation42_spill]] %s6104_s12  ;;  %p301_p13 = scmp.lt.s32.totalorder %s4943_s20, 5 }
  0x39   : > { %s5180_s18 = scalar_select %p121_p0, %s4907_s11, %s123_s27  }
  0x3a   : > { %p6108_p2 = scmp.ne.s32.totalorder %s4927_s16, %s4923_s15  ;;  %p5189_p10 = pnand %p3708_p7, %p301_p13 }
  0x3b   : > { %6107 = sst [smem:[#allocation43_spill]] %s5180_s18  ;;  %s4945_s8 = smov [#allocation9]  }
  0x3c   : > { %p5185_p9 = por %p294_p8, %p6108_p2  ;;  %p4440_p1 = pneg %p5189_p10 }
  0x3d   : > { %s6111_s6 = scalar_select %p5189_p10, 1, 0 }
  0x3e   : > { %s6109_s4 = scalar_select %p5185_p9, 1, 0 }
  0x3f   : > { %s313_s22 = sshll.u32 %s4945_s8, 4  ;;  %p5197_p11 = pnand %p4440_p1, %p6078_p5  ;;  %s314_s22 = int_to_ptr.vmem [resolvable:$true] %s313_s22 }
  0x40   : > { %6110 = sst [smem:[#allocation44_spill]] %s6109_s4  ;;  %s4946_s27 = smov [#allocation11]  }
  0x41   : > { %s329_s18 = sshll.u32 %s4946_s27, 4  ;;  %p4749_p7 = pneg %p5197_p11  ;;  %s330_s18 = int_to_ptr.vmem [resolvable:$true] %s329_s18 }
  0x42   : > { %s4758_s4 = scalar_lea.vmem %s314_s22, 1024  ;;  %p4766_p2 = scmp.lt.s32.totalorder %s314_s22, %s314_s22 }
  0x43   : > { %p4759_p13 = scmp.ne.s32.totalorder %s314_s22, %s4758_s4  ;;  %p4767_p9 = scmp.lt.s32.totalorder %s4758_s4, %s4758_s4 }
  0x45   : > { %p4761_p0 = pnand %p4759_p13, %p4749_p7  ;;  %p4768_p6 = por %p4767_p9, %p4766_p2 }
  0x47   : > { %p4762_p8 = pneg %p4761_p0 }
  0x49   : > { %p4769_p12 = pnand %p4768_p6, %p4762_p8 }
  0x4b   : > { %4772 = shalt.err (!%p4769_p12)
}
  0x4c   : > { %s4947_s8 = smov 64   ;;  %s4948_s15 = smov 4  }
  0x4d   : > { %s6113_s3 = sld [smem:[#allocation66_spill]]  ;;  %s4949_s10 = smov [#allocation12]  }
  0x4e   : > { %s345_s9 = sshll.u32 %s4949_s10, 4  ;;  %s4784_s13 = scalar_lea.vmem %s330_s18, 9216  ;;  %s346_s9 = int_to_ptr.vmem [resolvable:$true] %s345_s9 }
  0x4f   : > { %p4785_p1 = scmp.ne.s32.totalorder %s330_s18, %s4784_s13  ;;  %p4792_p6 = scmp.lt.s32.totalorder %s330_s18, %s330_s18 }
  0x50   : > { %p4793_p12 = scmp.lt.s32.totalorder %s4784_s13, %s4784_s13 }
  0x51   : > { %p4787_p13 = pnand %p4785_p1, %p4749_p7 }
  0x52   : > { %p4794_p0 = por %p4793_p12, %p4792_p6 }
  0x53   : > { %4443 = dma.hbm_to_vmem [thread:$0]  (!%p5197_p11), %s6113_s3, 1024, %s314_s22, [#allocation10], %s4947_s8, %s4947_s8, %s4948_s15  }
  0x54   : > { %p4788_p9 = pneg %p4787_p13 }
  0x56   : > { %p4795_p8 = pnand %p4794_p0, %p4788_p9 }
  0x58   : > { %4798 = shalt.err (!%p4795_p8)
}
  0x59   : > { %s6114_s5 = sld [smem:[#allocation68_spill]]  ;;  %s4810_s10 = scalar_lea.vmem %s346_s9, 1024 }
  0x5a   : > { %p4811_p2 = scmp.ne.s32.totalorder %s346_s9, %s4810_s10  ;;  %p4818_p13 = scmp.lt.s32.totalorder %s346_s9, %s346_s9 }
  0x5b   : > { %p4819_p10 = scmp.lt.s32.totalorder %s4810_s10, %s4810_s10 }
  0x5c   : > { %p4813_p5 = pnand %p4811_p2, %p4749_p7 }
  0x5d   : > { %p4820_p3 = por %p4819_p10, %p4818_p13 }
  0x5e   : > { %p4814_p1 = pneg %p4813_p5 }
  0x5f   : > { %4446 = dma.hbm_to_vmem [thread:$0]  (!%p5197_p11), %s6114_s5, 9216, %s330_s18, [#allocation10], %s4947_s8, %s4947_s8, %s4948_s15  }
  0x60   : > { %p4821_p6 = pnand %p4820_p3, %p4814_p1 }
  0x62   : > { %4824 = shalt.err (!%p4821_p6)
}
  0x63   : > { %4449 = dma.hbm_to_vmem [thread:$0]  (!%p5197_p11), %s6056_s7, 1024, %s346_s9, [#allocation13], %s4947_s8, %s4947_s8, %s4948_s15  }
  0x64   : > { %p3712_p9 = scmp.ge.s32.totalorder %s4943_s20, 4 }
  0x66   : > { %358 = sbr.rel (%p3712_p9) target bundleno = 149 (0x95), region = 40 }
  0x6b   : > { %s362_s18 = sand.u32 1, %s4931_s17   ;;  %s3936_s22 = sshll.u32 %s4939_s19, 10 }
  0x6c   : > { %s3713_s21 = sshll.u32 %s362_s18, 7  ;;  %s376_s9 = scalar_lea.hbm %s6049_s0, %s3936_s22 }
  0x6d   : > { %s4399_s30 = scalar_select %p5103_p4, [#allocation0], [#allocation23] }
  0x6e   : > { %s366_s8 = scalar_lea.vmem [#allocation3], %s3713_s21  ;;  %s4950_s13 = smov 4096  }
  0x6f   : > { %s381_s15 = sld [smem:[%s4399_s30]]   ;;  %s389_s10 = sshll.u32 %s366_s8, 4  ;;  %s390_s10 = int_to_ptr.vmem [resolvable:$true] %s389_s10 }
  0x70   : > { %4400 = sst [smem:[#allocation16]] (%p5103_p4), %s4950_s13  ;;  %s4951_s12 = smov 1024  }
  0x71   : > { %4401 = sst [smem:[#allocation16 + $0x1]] (%p5103_p4), %s4951_s12  ;;  %s4952_s3 = smov 8  }
  0x72   : > { %4402 = sst [smem:[#allocation16 + $0x2]] (%p5103_p4), %s4952_s3  ;;  %s4953_s5 = smov 128  }
  0x73   : > { %4403 = sst [smem:[#allocation16 + $0x3]] (%p5103_p4), %s4953_s5  ;;  %s363_s30 = scalar_lea.sflag [#allocation4], %s362_s18 }
  0x74   : > { %4404 = sst [smem:[#allocation16 + $0x4]] (%p5103_p4), %s4953_s5  ;;  %s4954_s27 = smov 131072  }
  0x75   : > { %s3717_s22 = sshll.u32 %s381_s15, 26  ;;  %4405 = sst [smem:[#allocation16 + $0x5]] (%p5103_p4), %s4952_s3 }
  0x76   : > { %s3718_s21 = sadd.s32 134217728, %s3717_s22 }
  0x77   : > { %4406 = dma.general (%p5103_p4), %s376_s9, 2048, %s390_s10, %s363_s30, %s4954_s27, [#allocation16], %s3718_s21, 0  }
  0x78   : > { %s412_s4 = sand.u32 1, %s4943_s20   ;;  %s414_s8 = sand.u32 1, %s4919_s14  }
  0x79   : > { %s3719_s13 = sshll.u32 %s414_s8, 5  ;;  %s3937_s5 = sshll.u32 %s6210_s29, 8 }
  0x7a   : > { %s429_s18 = scalar_lea.hbm %s6050_s1, %s3937_s5  ;;  %p6115_p3 = scmp.ne.s32.totalorder %s6097_s23, 0 }
  0x7b   : > { %s416_s9 = scalar_lea.vmem [#allocation6], %s3719_s13  ;;  %s4955_s22 = smov 4096  }
  0x7c   : > { %s4407_s25 = scalar_select %p6115_p3, [#allocation0], [#allocation24] }
  0x7d   : > { %s442_s10 = sshll.u32 %s416_s9, 4  ;;  %4408 = sst [smem:[#allocation18]] (%p6115_p3), %s4955_s22  ;;  %s443_s10 = int_to_ptr.vmem [resolvable:$true] %s442_s10 }
  0x7e   : > { %s434_s12 = sld [smem:[%s4407_s25]]   ;;  %s4956_s21 = smov 256  }
  0x7f   : > { %4409 = sst [smem:[#allocation18 + $0x1]] (%p6115_p3), %s4956_s21  ;;  %s4957_s30 = smov 2  }
  0x80   : > { %4410 = sst [smem:[#allocation18 + $0x2]] (%p6115_p3), %s4957_s30  ;;  %s4958_s29 = smov 128  }
  0x81   : > { %4411 = sst [smem:[#allocation18 + $0x3]] (%p6115_p3), %s4958_s29  ;;  %s4959_s8 = smov 8  }
  0x82   : > { %4412 = sst [smem:[#allocation18 + $0x4]] (%p6115_p3), %s4958_s29  ;;  %s5269_s5 = scalar_lea.sflag [#allocation7], %s412_s4 }
  0x83   : > { %4413 = sst [smem:[#allocation18 + $0x5]] (%p6115_p3), %s4959_s8  ;;  %s4960_s15 = smov 131072  }
  0x84   : > { %s3724_s27 = sshll.u32 %s434_s12, 26 }
  0x85   : > { %s3725_s13 = sadd.s32 134217728, %s3724_s27 }
  0x86   : > { %4414 = dma.general (%p6115_p3), %s429_s18, 512, %s443_s10, %s5269_s5, %s4960_s15, [#allocation18], %s3725_s13, 0  }
  0x87   : > { %s467_s3 = sand.u32 1, %s4907_s11   ;;  %s3938_s9 = sshll.u32 %s6214_s24, 8 }
  0x88   : > { %s3726_s25 = sshll.u32 %s467_s3, 5  ;;  %p6116_p4 = scmp.ne.s32.totalorder %s6101_s26, 0 }
  0x89   : > { %s482_s21 = scalar_lea.hbm %s6051_s2, %s3938_s9  ;;  %s4961_s23 = smov 4096  }
  0x8a   : > { %s4415_s12 = scalar_select %p6116_p4, [#allocation0], [#allocation25] }
  0x8b   : > { %4416 = sst [smem:[#allocation20]] (%p6116_p4), %s4961_s23  ;;  %s469_s10 = scalar_lea.vmem [#allocation8], %s3726_s25 }
  0x8c   : > { %s487_s18 = sld [smem:[%s4415_s12]]   ;;  %s495_s30 = sshll.u32 %s469_s10, 4  ;;  %s496_s30 = int_to_ptr.vmem [resolvable:$true] %s495_s30 }
  0x8d   : > { %s4962_s29 = smov 256   ;;  %s4963_s27 = smov 2  }
  0x8e   : > { %4417 = sst [smem:[#allocation20 + $0x1]] (%p6116_p4), %s4962_s29  ;;  %s4964_s24 = smov 128  }
  0x8f   : > { %4418 = sst [smem:[#allocation20 + $0x2]] (%p6116_p4), %s4963_s27  ;;  %s4965_s13 = smov 8  }
  0x90   : > { %4419 = sst [smem:[#allocation20 + $0x3]] (%p6116_p4), %s4964_s24  ;;  %s4966_s3 = smov 131072  }
  0x91   : > { %4420 = sst [smem:[#allocation20 + $0x4]] (%p6116_p4), %s4964_s24 }
  0x92   : > { %s3730_s8 = sshll.u32 %s487_s18, 26  ;;  %4421 = sst [smem:[#allocation20 + $0x5]] (%p6116_p4), %s4965_s13 }
  0x93   : > { %s3731_s15 = sadd.s32 134217728, %s3730_s8 }
  0x94   : > { %4422 = dma.general (%p6116_p4), %s482_s21, 512, %s496_s30, %s5269_s5, %s4966_s3, [#allocation20], %s3731_s15, 0  }
  0x95 PF: > { %p6117_p5 = scmp.ne.s32.totalorder %s6111_s6, 0 }
  0x97   : > { %520 = sbr.rel (%p6117_p5) target bundleno = 1131 (0x46b), region = 56 }
  0x9c   : > { %s5299_s25 = sand.u32 1, %s4927_s16   ;;  %p6118_p10 = scmp.ne.s32.totalorder %s6095_s28, 0 }
  0x9d   : > { %s3733_s9 = sshll.u32 %s5299_s25, 7  ;;  %s523_s12 = scalar_lea.sflag [#allocation4], %s5299_s25 }
  0x9e   : > { %s5305_s22 = scalar_lea.vmem [#allocation3], %s3733_s9 }
  0x9f   : > { %4874 = dma.done.wait (%p6118_p10), %s523_s12, 2048  }
  0xa0   : > { %4876 = vsyncadd (%p6118_p10), %s523_s12, 4294965248  ;;  %s6119_s26 = sld [smem:[#allocation36_spill]] }
  0xa1   : > { %s6120_s6 = sld [smem:[#allocation33_spill]] }
  0xa2   : > { %s6121_s5 = sld [smem:[#allocation39_spill]] }
  0xa6   : > { %s531_s4 = sand.u32 1, %s6119_s26  }
  0xa7   : > { %s533_s21 = sand.u32 1, %s6120_s6   ;;  %s532_s18 = scalar_lea.sflag [#allocation7], %s531_s4 }
  0xa8   : > { %s3734_s23 = sshll.u32 %s533_s21, 5  ;;  %p6122_p11 = scmp.ne.s32.totalorder %s6121_s5, 0 }
  0xa9   : > { %s5313_s10 = scalar_lea.vmem [#allocation6], %s3734_s23 }
  0xaa   : > { %4878 = dma.done.wait (%p6122_p11), %s532_s18, 512  }
  0xab   : > { %4880 = vsyncadd (%p6122_p11), %s532_s18, 4294966784  ;;  %s6123_s30 = sld [smem:[#allocation32_spill]] }
  0xac   : > { %s6124_s29 = sld [smem:[#allocation41_spill]] }
  0xb1   : > { %s542_s27 = sand.u32 1, %s6123_s30  }
  0xb2   : > { %s3735_s24 = sshll.u32 %s542_s27, 5  ;;  %p6125_p7 = scmp.ne.s32.totalorder %s6124_s29, 0 }
  0xb3   : > { %s5320_s28 = scalar_lea.vmem [#allocation8], %s3735_s24 }
  0xb4   : > { %4882 = dma.done.wait (%p6125_p7), %s532_s18, 512  }
  0xb5   : > { %4884 = vsyncadd (%p6125_p7), %s532_s18, 4294966784  ;;  %p6126_p12 = scmp.eq.s32.totalorder %s6119_s26, 0 }
  0xb7   : > { %4886 = dma.done.wait (%p6126_p12), [#allocation10], 10240   ;;  %p6127_p0 = pmov %p6126_p12 }
  0xb9   : > { %4888 = vsyncadd (%p6127_p0), [#allocation10], 4294957056  ;;  %p6128_p8 = pmov %p6127_p0 }
  0xba   : > { %p6129_p2 = pmov %p6127_p0 }
  0xbb   : > { %4890 = dma.done.wait (%p6128_p8), [#allocation13], 1024  }
  0xbc   : > { %4892 = vsyncadd (%p6129_p2), [#allocation13], 4294966272  ;;  %v4587_v0 = vld [vmem:[#allocation9 + $0x38] sm:$0xff]   ;;  %v4588_v1 = vld [vmem:[#allocation9 + $0x30] sm:$0xff]   ;;  %s6130_s15 = sld [smem:[#allocation67_spill]]  ;;  %vm1191_vm0 = vcmask 1043456  }
  0xbd   : > { %4273 = vmatprep.subr.bf16.mxu0 %v4587_v0  ;;  %v4589_v2 = vld [vmem:[#allocation9 + $0x28] sm:$0xff]   ;;  %v4590_v3 = vld [vmem:[#allocation9 + $0x20] sm:$0xff]   ;;  %v4591_v7 = vld [vmem:[#allocation9 + $0x18] sm:$0xff]   ;;  %vm1192_vm1 = vsmask.f32 7938  ;;  %vm1198_vm3 = vcmask 1040384  }
  0xbe   : > { %4274 = vmatpush3.bf16.msra.mxu0 %v4587_v0  ;;  %v616_v4 = vld [vmem:[%s5313_s10] sm:$0xff]  ;;  %v617_v5 = vld [vmem:[%s5313_s10 + $0x8] sm:$0xff]  ;;  %v4592_v8 = vld [vmem:[#allocation9 + $0x10] sm:$0xff]   ;;  %vm948_vm2 = vsmask.f32 256  ;;  %s5547_s3 = scalar_lea.vmem [#allocation14], %s3733_s9 }
  0xbf   : > { %4275 = vmatprep.subr.bf16.mxu0 %v4588_v1  ;;  %v640_v6 = vpack.c.bf16 %v617_v5, %v616_v4  ;;  %v4593_v9 = vld [vmem:[#allocation9 + $0x8] sm:$0xff]   ;;  %v4594_v10 = vld [vmem:[#allocation9] sm:$0xff]   ;;  %v622_v13 = vld [vmem:[%s5305_s22 + $0x10] sm:$0xff]  ;;  %vm949_vm5 = vsmask.f32 4368  ;;  %s6139_s12 = sld [smem:[#allocation35_spill]] }
  0xc0   : > { %v620_v11 = vld [vmem:[%s5305_s22] sm:$0xff]  ;;  %v621_v12 = vld [vmem:[%s5305_s22 + $0x8] sm:$0xff]  ;;  %v623_v14 = vld [vmem:[%s5305_s22 + $0x18] sm:$0xff] }
  0xc1   : > { %4289 = vmatprep.mubr.bf16.mxu0 %v640_v6  ;;  %v641_v15 = vpack.c.bf16 %v621_v12, %v620_v11  ;;  %v642_v16 = vpack.c.bf16 %v623_v14, %v622_v13  ;;  %v624_v17 = vld [vmem:[%s5305_s22 + $0x20] sm:$0xff]  ;;  %v625_v18 = vld [vmem:[%s5305_s22 + $0x28] sm:$0xff]  ;;  %v626_v19 = vld [vmem:[%s5305_s22 + $0x30] sm:$0xff] }
  0xc2   : > { %4276 = vmatpush3.bf16.msra.mxu0 %v4588_v1  ;;  %v627_v20 = vld [vmem:[%s5305_s22 + $0x38] sm:$0xff]  ;;  %v643_v21 = vpack.c.bf16 %v625_v18, %v624_v17  ;;  %v636_v23 = vld [vmem:[%s5320_s28] sm:$0xff]  ;;  %v637_v24 = vld [vmem:[%s5320_s28 + $0x8] sm:$0xff] }
  0xc3   : > { %4277 = vmatprep.subr.bf16.mxu0 %v4589_v2  ;;  %v644_v22 = vpack.c.bf16 %v627_v20, %v626_v19  ;;  %v618_v25 = vld [vmem:[%s5313_s10 + $0x10] sm:$0xff]  ;;  %v619_v26 = vld [vmem:[%s5313_s10 + $0x18] sm:$0xff]  ;;  %v645_v27 = vpack.c.bf16 %v637_v24, %v636_v23  ;;  %v628_v29 = vld [vmem:[%s5305_s22 + $0x40] sm:$0xff] }
  0xc4   : > { %v646_v28 = vpack.c.bf16 %v619_v26, %v618_v25  ;;  %v629_v30 = vld [vmem:[%s5305_s22 + $0x48] sm:$0xff]  ;;  %v630_v31 = vld [vmem:[%s5305_s22 + $0x50] sm:$0xff]  ;;  %v631_v32 = vld [vmem:[%s5305_s22 + $0x58] sm:$0xff] }
  0xc5   : > { %v647_v33 = vpack.c.bf16 %v629_v30, %v628_v29  ;;  %v648_v34 = vpack.c.bf16 %v631_v32, %v630_v31  ;;  %v632_v35 = vld [vmem:[%s5305_s22 + $0x60] sm:$0xff]  ;;  %v633_v36 = vld [vmem:[%s5305_s22 + $0x68] sm:$0xff]  ;;  %v634_v37 = vld [vmem:[%s5305_s22 + $0x70] sm:$0xff]  ;;  %p3773_p1 = scmp.ne.s32.totalorder %s6139_s12, 0 }
  0xc6   : > { %4278 = vmatpush3.bf16.msra.mxu0 %v4589_v2  ;;  %v635_v38 = vld [vmem:[%s5305_s22 + $0x78] sm:$0xff]  ;;  %v649_v39 = vpack.c.bf16 %v633_v36, %v632_v35  ;;  %v638_v41 = vld [vmem:[%s5320_s28 + $0x10] sm:$0xff]  ;;  %vm5368_vm4 = vmand %vm1191_vm0, %vm1192_vm1 }
  0xc7   : > { %4279 = vmatprep.subr.bf16.mxu0 %v4590_v3  ;;  %v650_v40 = vpack.c.bf16 %v635_v38, %v634_v37  ;;  %v639_v42 = vld [vmem:[%s5320_s28 + $0x18] sm:$0xff]  ;;  %v5361_v44 = vld [vmem:[%s6130_s15] ss:$0 sm:$0xff]  ;;  %vm5376_vm6 = vmand %vm1198_vm3, %vm948_vm2 }
  0xc8   : > { %v651_v43 = vpack.c.bf16 %v639_v42, %v638_v41  ;;  %v1203_v1 = vld [vmem:[#allocation2 + $0xc] sm:$0xf]  ;;  %vm5384_vm7 = vmor %vm948_vm2, %vm949_vm5 }
  0xc9   : > { %vm5408_vm8 = vmand %vm1198_vm3, %vm1192_vm1 }
  0xca   : > { %4280 = vmatpush3.bf16.msra.mxu0 %v4590_v3 }
  0xcb   : > { %4281 = vmatprep.subr.bf16.mxu0 %v4591_v7 }
  0xce   : > { %4282 = vmatpush3.bf16.msra.mxu0 %v4591_v7 }
  0xcf   : > { %4283 = vmatprep.subr.bf16.mxu0 %v4592_v8 }
  0xd2   : > { %4284 = vmatpush3.bf16.msra.mxu0 %v4592_v8 }
  0xd3   : > { %4285 = vmatprep.subr.bf16.mxu0 %v4593_v9 }
  0xd6   : > { %4286 = vmatpush3.bf16.msra.mxu0 %v4593_v9 }
  0xd7   : > { %4287 = vmatprep.subr.bf16.mxu0 %v4594_v10 }
  0xda   : > { %4288 = vmatpush3.bf16.msra.mxu0 %v4594_v10  ;;  %v1194_v10 = vld [vmem:[#allocation2] sm:$0xf] }
  0xdd   : > { %4290 = vmatmul.mubr.bf16.vlgmr.msra.gmra.mxu0 %v641_v15 }
  0xde   : > { %4293 = vmatprep.mubr.bf16.mxu0 %v642_v16 }
  0xe5   : > { %4294 = vmatmul.mubr.bf16.gmra.mxu0 %v643_v21 }
  0xe6   : > { %4297 = vmatprep.mubr.bf16.mxu0 %v644_v22  ;;  %v1207_v22 = vld [vmem:[#allocation2 + $0x14] sm:$0x1] }
  0xed   : > { %4298 = vmatmul.mubr.bf16.gmra.mxu0 %v645_v27 }
  0xee   : > { %4301 = vmatprep.mubr.bf16.mxu0 %v646_v28 }
  0xf5   : > { %4302 = vmatmul.mubr.bf16.gmra.mxu0 %v647_v33 }
  0xf6   : > { %4305 = vmatprep.mubr.bf16.mxu0 %v648_v34 }
  0xfd   : > { %4306 = vmatmul.mubr.bf16.gmra.mxu0 %v649_v39  ;;  %v1200_v39 = vld [vmem:[#allocation2 + $0x8] sm:$0x1] }
  0xfe   : > { %4309 = vmatprep.mubr.bf16.mxu0 %v650_v40 }
 0x105   : > { %4310 = vmatmul.mubr.bf16.gmra.mxu0 %v651_v43 }
 0x19d   : > { %v4291_v45 = vpop.f32.mrf.mxu0 }
 0x19e   : > { %v766_v46 = vadd.f32 %v4291_v45, %v5361_v44 }
 0x19f   : > { %v757_v47 = vpop.f32.mrf.mxu0 }
 0x1a0   : > { %v854_v48 = vmax.f32 %v766_v46, 0.0  ;;  %v758_v49 = vadd.f32 %v5361_v44, %v757_v47 }
 0x1a1   : > { %v4292_v50 = vpop.f32.mrf.mxu0 }
 0x1a2   : > { %v3941_v51 = vpack.c.bf16 %v854_v48, %v854_v48  ;;  %v852_v52 = vmax.f32 %v758_v49, 0.0  ;;  %v769_v53 = vadd.f32 %v4292_v50, %v5361_v44  ;;  %v1217_v48 = vld [vmem:[#allocation2 + $0x24] sm:$0xf] }
 0x1a3   : > { %v760_v54 = vpop.f32.mrf.mxu0 }
 0x1a4   : > { %v969_v55 = vshrl.u32 %v3941_v51, 16  ;;  %v3939_v56 = vpack.c.bf16 %v852_v52, %v852_v52  ;;  %v855_v57 = vmax.f32 %v769_v53, 0.0  ;;  %v761_v58 = vadd.f32 %v5361_v44, %v760_v54 }
 0x1a5   : > { %v4295_v59 = vpop.f32.mrf.mxu0  ;;  %v972_v61 = vshll.u32 %v3941_v51, 16 }
 0x1a6   : > { %v971_v60 = vrot.slane %v969_v55, 7  ;;  %v952_v62 = vshrl.u32 %v3939_v56, 16  ;;  %v3942_v63 = vpack.c.bf16 %v855_v57, %v855_v57  ;;  %v955_v2 = vshll.u32 %v3939_v56, 16 }
 0x1a7   : > { %v853_v3 = vmax.f32 %v761_v58, 0.0  ;;  %v782_v4 = vadd.f32 %v4295_v59, %v5361_v44  ;;  %v773_v5 = vpop.f32.mrf.mxu0 }
 0x1a8   : > { %v974_v6 = vor.u32 %v972_v61, %v971_v60  ;;  %v975_v7 = vrot.slane %v971_v60, 4  ;;  %v954_v8 = vrot.slane %v952_v62, 7  ;;  %v977_v9 = vshrl.u32 %v3942_v63, 16 }
 0x1a9   : > { %v980_v11 = vshll.u32 %v3942_v63, 16  ;;  %v3940_v12 = vpack.c.bf16 %v853_v3, %v853_v3  ;;  %v858_v13 = vmax.f32 %v782_v4, 0.0  ;;  %v774_v14 = vadd.f32 %v5361_v44, %v773_v5  ;;  %v4296_v15 = vpop.f32.mrf.mxu0 }
 0x1aa   : > { %v1204_v17 = vsel %vm5368_vm4, %v974_v6, %v1203_v1  ;;  %v957_v18 = vor.u32 %v955_v2, %v954_v8  ;;  %v958_v19 = vrot.slane %v954_v8, 4  ;;  %v979_v20 = vrot.slane %v977_v9, 7  ;;  %v1210_v2 = vld [vmem:[#allocation2 + $0x18] sm:$0xf] }
 0x1ab   : > { %1205 = vst [vmem:[#allocation2 + $0xc] sm:$0xf] %v1204_v17  ;;  %v960_v23 = vshrl.u32 %v3940_v12, 16  ;;  %v963_v24 = vshll.u32 %v3940_v12, 16  ;;  %v3945_v25 = vpack.c.bf16 %v858_v13, %v858_v13  ;;  %v856_v26 = vmax.f32 %v774_v14, 0.0  ;;  %v776_v27 = vpop.f32.mrf.mxu0 }
 0x1ac   : > { %v1195_v28 = vsel %vm5368_vm4, %v957_v18, %v1194_v10  ;;  %v982_v29 = vor.u32 %v980_v11, %v979_v20  ;;  %v984_v30 = vrot.slane %v979_v20, 4  ;;  %v785_v31 = vadd.f32 %v4296_v15, %v5361_v44  ;;  %v1221_v13 = vld [vmem:[#allocation2 + $0x2c] sm:$0x1] }
 0x1ad   : > { %1196 = vst [vmem:[#allocation2] sm:$0xf] %v1195_v28  ;;  %v962_v32 = vrot.slane %v960_v23, 7  ;;  %v1003_v33 = vshrl.u32 %v3945_v25, 16  ;;  %v1006_v34 = vshll.u32 %v3945_v25, 16  ;;  %v3943_v35 = vpack.c.bf16 %v856_v26, %v856_v26  ;;  %v4299_v36 = vpop.f32.mrf.mxu0 }
 0x1ae   : > { %v983_v37 = vsel %vm5384_vm7, %v975_v7, %v982_v29  ;;  %v1208_v38 = vsel %vm5376_vm6, %v984_v30, %v1207_v22  ;;  %v859_v40 = vmax.f32 %v785_v31, 0.0  ;;  %v777_v41 = vadd.f32 %v5361_v44, %v776_v27  ;;  %v1214_v26 = vld [vmem:[#allocation2 + $0x20] sm:$0x1] }
 0x1af   : > { %1206 = vst [vmem:[#allocation2 + $0x10] sm:$0xf] %v983_v37  ;;  %1209 = vst [vmem:[#allocation2 + $0x14] sm:$0x1] %v1208_v38  ;;  %v965_v42 = vor.u32 %v963_v24, %v962_v32  ;;  %v967_v43 = vrot.slane %v962_v32, 4  ;;  %v1005_v45 = vrot.slane %v1003_v33, 7  ;;  %v789_v47 = vpop.f32.mrf.mxu0  ;;  %v798_v52 = vadd.f32 %v4299_v36, %v5361_v44 }
 0x1b0   : > { %v986_v46 = vshrl.u32 %v3943_v35, 16  ;;  %v989_v49 = vshll.u32 %v3943_v35, 16  ;;  %v3946_v50 = vpack.c.bf16 %v859_v40, %v859_v40  ;;  %v857_v51 = vmax.f32 %v777_v41, 0.0 }
 0x1b1   : > { %v966_v53 = vsel %vm5384_vm7, %v958_v19, %v965_v42  ;;  %v1201_v54 = vsel %vm5376_vm6, %v967_v43, %v1200_v39  ;;  %v1008_v55 = vor.u32 %v1006_v34, %v1005_v45  ;;  %v1009_v56 = vrot.slane %v1005_v45, 4  ;;  %v4300_v57 = vpop.f32.mrf.mxu0  ;;  %v1231_v45 = vld [vmem:[#allocation2 + $0x3c] sm:$0xf] }
 0x1b2   : > { %v1283_v58 = vld [vmem:[#allocation2 + $0xc] sm:$0x1]  ;;  %1197 = vst [vmem:[#allocation2 + $0x4] sm:$0xf] %v966_v53  ;;  %1202 = vst [vmem:[#allocation2 + $0x8] sm:$0x1] %v1201_v54  ;;  %v3944_v62 = vpack.c.bf16 %v857_v51, %v857_v51  ;;  %v790_v4 = vadd.f32 %v5361_v44, %v789_v47  ;;  %v801_v39 = vadd.f32 %v4300_v57, %v5361_v44 }
 0x1b3   : > { %v988_v59 = vrot.slane %v986_v46, 7  ;;  %v1011_v60 = vshrl.u32 %v3946_v50, 16  ;;  %v1014_v61 = vshll.u32 %v3946_v50, 16  ;;  %v1284_v63 = vsel %vm5376_vm6, 0, %v1283_v58  ;;  %v792_v5 = vpop.f32.mrf.mxu0  ;;  %v1224_v54 = vld [vmem:[#allocation2 + $0x30] sm:$0xf] }
 0x1b4   : > { %v1218_v1 = vsel %vm5368_vm4, %v1008_v55, %v1217_v48  ;;  %v862_v3 = vmax.f32 %v798_v52, 0.0  ;;  %1285 = vst [vmem:[#allocation2 + $0xc] sm:$0x1] %v1284_v63  ;;  %v1280_v7 = vld [vmem:[#allocation2] sm:$0x1]  ;;  %v994_v11 = vshrl.u32 %v3944_v62, 16  ;;  %v793_v46 = vadd.f32 %v5361_v44, %v792_v5 }
 0x1b5   : > { %1219 = vst [vmem:[#allocation2 + $0x24] sm:$0xf] %v1218_v1  ;;  %v991_v8 = vor.u32 %v989_v49, %v988_v59  ;;  %v992_v9 = vrot.slane %v988_v59, 4  ;;  %v1013_v10 = vrot.slane %v1011_v60, 7  ;;  %v1281_v12 = vsel %vm5376_vm6, 0, %v1280_v7  ;;  %v4303_v18 = vpop.f32.mrf.mxu0 }
 0x1b6   : > { %v997_v14 = vshll.u32 %v3944_v62, 16  ;;  %v3949_v15 = vpack.c.bf16 %v862_v3, %v862_v3  ;;  %v860_v17 = vmax.f32 %v790_v4, 0.0  ;;  %1282 = vst [vmem:[#allocation2] sm:$0x1] %v1281_v12  ;;  %v1320_v19 = vld [vmem:[#allocation2 + $0x14] sm:$0x1] }
 0x1b7   : > { %v1211_v20 = vsel %vm5368_vm4, %v991_v8, %v1210_v2  ;;  %v1016_v22 = vor.u32 %v1014_v61, %v1013_v10  ;;  %v1018_v23 = vrot.slane %v1013_v10, 4  ;;  %v996_v24 = vrot.slane %v994_v11, 7  ;;  %v805_v30 = vpop.f32.mrf.mxu0 }
 0x1b8   : > { %v1321_v25 = vsel %vm5408_vm8, 0, %v1320_v19  ;;  %1212 = vst [vmem:[#allocation2 + $0x18] sm:$0xf] %v1211_v20  ;;  %v1037_v27 = vshrl.u32 %v3949_v15, 16  ;;  %v1040_v28 = vshll.u32 %v3949_v15, 16  ;;  %v3947_v29 = vpack.c.bf16 %v860_v17, %v860_v17 }
 0x1b9   : > { %1322 = vst [vmem:[#allocation2 + $0x14] sm:$0x1] %v1321_v25  ;;  %v1017_v31 = vsel %vm5384_vm7, %v1009_v56, %v1016_v22  ;;  %v1222_v32 = vsel %vm5376_vm6, %v1018_v23, %v1221_v13  ;;  %v999_v33 = vor.u32 %v997_v14, %v996_v24  ;;  %v1001_v34 = vrot.slane %v996_v24, 4  ;;  %v1317_v35 = vld [vmem:[#allocation2 + $0x8] sm:$0x1]  ;;  %v4304_v40 = vpop.f32.mrf.mxu0 }
 0x1ba   : > { %1220 = vst [vmem:[#allocation2 + $0x28] sm:$0xf] %v1017_v31  ;;  %1223 = vst [vmem:[#allocation2 + $0x2c] sm:$0x1] %v1222_v32  ;;  %v5422_v36 = vrot.slane %v1037_v27, 7  ;;  %v1020_v37 = vshrl.u32 %v3947_v29, 16  ;;  %v814_v56 = vadd.f32 %v4303_v18, %v5361_v44  ;;  %v806_v57 = vadd.f32 %v5361_v44, %v805_v30 }
 0x1bb   : > { %v1023_v38 = vshll.u32 %v3947_v29, 16  ;;  %v1318_v41 = vsel %vm5408_vm8, 0, %v1317_v35  ;;  %v1000_v42 = vsel %vm5384_vm7, %v992_v9, %v999_v33  ;;  %v1215_v43 = vsel %vm5376_vm6, %v1001_v34, %v1214_v26  ;;  %v808_v52 = vpop.f32.mrf.mxu0  ;;  %v1235_v19 = vld [vmem:[#allocation2 + $0x44] sm:$0x1]  ;;  %v1228_v32 = vld [vmem:[#allocation2 + $0x38] sm:$0x1] }
 0x1bc   : > { %1319 = vst [vmem:[#allocation2 + $0x8] sm:$0x1] %v1318_v41  ;;  %v1289_v47 = vld [vmem:[#allocation2 + $0x24] sm:$0x1]  ;;  %1213 = vst [vmem:[#allocation2 + $0x1c] sm:$0xf] %v1000_v42  ;;  %v1042_v48 = vor.u32 %v1040_v28, %v5422_v36  ;;  %v817_v4 = vadd.f32 %v4304_v40, %v5361_v44  ;;  %v809_v22 = vadd.f32 %v5361_v44, %v808_v52 }
 0x1bd   : > { %1216 = vst [vmem:[#allocation2 + $0x20] sm:$0x1] %v1215_v43  ;;  %v1043_v49 = vrot.slane %v5422_v36, 4  ;;  %v5434_v50 = vrot.slane %v1020_v37, 7  ;;  %v863_v51 = vmax.f32 %v801_v39, 0.0  ;;  %v1290_v53 = vsel %vm5376_vm6, 0, %v1289_v47  ;;  %v5444_v62 = vpop.f32.mrf.mxu0 }
 0x1be   : > { %v861_v55 = vmax.f32 %v793_v46, 0.0  ;;  %1291 = vst [vmem:[#allocation2 + $0x24] sm:$0x1] %v1290_v53  ;;  %v1232_v58 = vsel %vm5368_vm4, %v1042_v48, %v1231_v45  ;;  %v866_v2 = vmax.f32 %v814_v56, 0.0  ;;  %v864_v3 = vmax.f32 %v806_v57, 0.0 }
 0x1bf   : > { %v1025_v59 = vor.u32 %v1023_v38, %v5434_v50  ;;  %v1026_v60 = vrot.slane %v5434_v50, 4  ;;  %v3950_v61 = vpack.c.bf16 %v863_v51, %v863_v51  ;;  %v1286_v63 = vld [vmem:[#allocation2 + $0x18] sm:$0x1]  ;;  %1233 = vst [vmem:[#allocation2 + $0x3c] sm:$0xf] %v1232_v58  ;;  %v821_v10 = vpop.f32.mrf.mxu0  ;;  %v867_v20 = vmax.f32 %v817_v4, 0.0 }
 0x1c0   : > { %v3948_v1 = vpack.c.bf16 %v861_v55, %v861_v55  ;;  %v1287_v5 = vsel %vm5376_vm6, 0, %v1286_v63  ;;  %v3953_v14 = vpack.c.bf16 %v866_v2, %v866_v2  ;;  %v3951_v15 = vpack.c.bf16 %v864_v3, %v864_v3  ;;  %v1245_v41 = vld [vmem:[#allocation2 + $0x54] sm:$0xf]  ;;  %v1249_v3 = vld [vmem:[#allocation2 + $0x5c] sm:$0x1] }
 0x1c1   : > { %v1225_v7 = vsel %vm5368_vm4, %v1025_v59, %v1224_v54  ;;  %v1045_v8 = vshrl.u32 %v3950_v61, 16  ;;  %v1048_v9 = vshll.u32 %v3950_v61, 16  ;;  %1288 = vst [vmem:[#allocation2 + $0x18] sm:$0x1] %v1287_v5  ;;  %v1326_v11 = vld [vmem:[#allocation2 + $0x2c] sm:$0x1]  ;;  %v4308_v23 = vpop.f32.mrf.mxu0  ;;  %v3954_v42 = vpack.c.bf16 %v867_v20, %v867_v20 }
 0x1c2   : > { %1226 = vst [vmem:[#allocation2 + $0x30] sm:$0xf] %v1225_v7  ;;  %v1028_v12 = vshrl.u32 %v3948_v1, 16  ;;  %v1031_v13 = vshll.u32 %v3948_v1, 16  ;;  %v1327_v17 = vsel %vm5408_vm8, 0, %v1326_v11  ;;  %v1071_v26 = vshrl.u32 %v3953_v14, 16 }
 0x1c3   : > { %v1047_v18 = vrot.slane %v1045_v8, 7  ;;  %1328 = vst [vmem:[#allocation2 + $0x2c] sm:$0x1] %v1327_v17  ;;  %v1074_v27 = vshll.u32 %v3953_v14, 16  ;;  %v1054_v28 = vshrl.u32 %v3951_v15, 16  ;;  %v1057_v33 = vshll.u32 %v3951_v15, 16  ;;  %v824_v45 = vpop.f32.mrf.mxu0 }
 0x1c4   : > { %v1323_v24 = vld [vmem:[#allocation2 + $0x20] sm:$0x1]  ;;  %v1030_v25 = vrot.slane %v1028_v12, 7  ;;  %v1073_v36 = vrot.slane %v1071_v26, 7  ;;  %v865_v43 = vmax.f32 %v809_v22, 0.0  ;;  %v1079_v55 = vshrl.u32 %v3954_v42, 16 }
 0x1c5   : > { %v1324_v29 = vsel %vm5408_vm8, 0, %v1323_v24  ;;  %v1050_v30 = vor.u32 %v1048_v9, %v1047_v18  ;;  %v1052_v31 = vrot.slane %v1047_v18, 4  ;;  %v5456_v37 = vrot.slane %v1054_v28, 7  ;;  %v4311_v2 = vpop.f32.mrf.mxu0  ;;  %v1242_v20 = vld [vmem:[#allocation2 + $0x50] sm:$0x1] }
 0x1c6   : > { %1325 = vst [vmem:[#allocation2 + $0x20] sm:$0x1] %v1324_v29  ;;  %v1033_v34 = vor.u32 %v1031_v13, %v1030_v25  ;;  %v1035_v35 = vrot.slane %v1030_v25, 4  ;;  %v1295_v38 = vld [vmem:[#allocation2 + $0x3c] sm:$0x1]  ;;  %v1076_v50 = vor.u32 %v1074_v27, %v1073_v36  ;;  %v1077_v52 = vrot.slane %v1073_v36, 4 }
 0x1c7   : > { %v1051_v39 = vsel %vm5384_vm7, %v1043_v49, %v1050_v30  ;;  %v1236_v40 = vsel %vm5376_vm6, %v1052_v31, %v1235_v19  ;;  %v1296_v46 = vsel %vm5376_vm6, 0, %v1295_v38  ;;  %v1238_v49 = vld [vmem:[#allocation2 + $0x48] sm:$0xf]  ;;  %v1059_v53 = vor.u32 %v1057_v33, %v5456_v37  ;;  %v837_v24 = vpop.f32.mrf.mxu0 }
 0x1c8   : > { %1234 = vst [vmem:[#allocation2 + $0x40] sm:$0xf] %v1051_v39  ;;  %1237 = vst [vmem:[#allocation2 + $0x44] sm:$0x1] %v1236_v40  ;;  %v1034_v47 = vsel %vm5384_vm7, %v1026_v60, %v1033_v34  ;;  %v1229_v48 = vsel %vm5376_vm6, %v1035_v35, %v1228_v32  ;;  %v1060_v54 = vrot.slane %v5456_v37, 4  ;;  %v1246_v57 = vsel %vm5368_vm4, %v1076_v50, %v1245_v41 }
 0x1c9   : > { %1297 = vst [vmem:[#allocation2 + $0x3c] sm:$0x1] %v1296_v46  ;;  %v1292_v51 = vld [vmem:[#allocation2 + $0x30] sm:$0x1]  ;;  %1227 = vst [vmem:[#allocation2 + $0x34] sm:$0xf] %v1034_v47  ;;  %v3952_v59 = vpack.c.bf16 %v865_v43, %v865_v43  ;;  %v1239_v60 = vsel %vm5368_vm4, %v1059_v53, %v1238_v49  ;;  %v830_v63 = vadd.f32 %v5444_v62, %v5361_v44  ;;  %v4312_v46 = vpop.f32.mrf.mxu0 }
 0x1ca   : > { %1230 = vst [vmem:[#allocation2 + $0x38] sm:$0x1] %v1229_v48  ;;  %v1293_v56 = vsel %vm5376_vm6, 0, %v1292_v51  ;;  %v1082_v58 = vshll.u32 %v3954_v42, 16  ;;  %1247 = vst [vmem:[#allocation2 + $0x54] sm:$0xf] %v1246_v57  ;;  %v822_v1 = vadd.f32 %v5361_v44, %v821_v10  ;;  %v833_v7 = vadd.f32 %v4308_v23, %v5361_v44 }
 0x1cb   : > { %1294 = vst [vmem:[#allocation2 + $0x30] sm:$0x1] %v1293_v56  ;;  %v1081_v61 = vrot.slane %v1079_v55, 7  ;;  %1240 = vst [vmem:[#allocation2 + $0x48] sm:$0xf] %v1239_v60  ;;  %v1062_v4 = vshrl.u32 %v3952_v59, 16  ;;  %v825_v8 = vadd.f32 %v5361_v44, %v824_v45  ;;  %v846_v62 = vadd.f32 %v4311_v2, %v5361_v44 }
 0x1cc   : > { %v1065_v5 = vshll.u32 %v3952_v59, 16  ;;  %v870_v12 = vmax.f32 %v830_v63, 0.0  ;;  %v868_v13 = vmax.f32 %v822_v1, 0.0  ;;  %v871_v15 = vmax.f32 %v833_v7, 0.0  ;;  %v1259_v37 = vld [vmem:[#allocation2 + $0x6c] sm:$0xf] }
 0x1cd   : > { %v1084_v9 = vor.u32 %v1082_v58, %v1081_v61  ;;  %v1086_v11 = vrot.slane %v1081_v61, 4  ;;  %v1064_v14 = vrot.slane %v1062_v4, 7  ;;  %v869_v17 = vmax.f32 %v825_v8, 0.0  ;;  %v1252_v48 = vld [vmem:[#allocation2 + $0x60] sm:$0xf] }
 0x1ce   : > { %v3957_v22 = vpack.c.bf16 %v870_v12, %v870_v12  ;;  %v3955_v23 = vpack.c.bf16 %v868_v13, %v868_v13  ;;  %v3958_v29 = vpack.c.bf16 %v871_v15, %v871_v15  ;;  %v874_v51 = vmax.f32 %v846_v62, 0.0  ;;  %v1263_v55 = vld [vmem:[#allocation2 + $0x74] sm:$0x1] }
 0x1cf   : > { %v1332_v18 = vld [vmem:[#allocation2 + $0x44] sm:$0x1]  ;;  %v1085_v10 = vsel %vm5384_vm7, %v1077_v52, %v1084_v9  ;;  %v1250_v19 = vsel %vm5376_vm6, %v1086_v11, %v1249_v3  ;;  %v1067_v27 = vor.u32 %v1065_v5, %v1064_v14  ;;  %v1069_v28 = vrot.slane %v1064_v14, 4  ;;  %v840_v3 = vpop.f32.mrf.mxu0  ;;  %v1256_v11 = vld [vmem:[#allocation2 + $0x68] sm:$0x1] }
 0x1d0   : > { %v1333_v25 = vsel %vm5408_vm8, 0, %v1332_v18  ;;  %1248 = vst [vmem:[#allocation2 + $0x58] sm:$0xf] %v1085_v10  ;;  %1251 = vst [vmem:[#allocation2 + $0x5c] sm:$0x1] %v1250_v19  ;;  %v1105_v31 = vshrl.u32 %v3957_v22, 16  ;;  %v3956_v49 = vpack.c.bf16 %v869_v17, %v869_v17  ;;  %v3961_v1 = vpack.c.bf16 %v874_v51, %v874_v51 }
 0x1d1   : > { %v1329_v26 = vld [vmem:[#allocation2 + $0x38] sm:$0x1]  ;;  %1334 = vst [vmem:[#allocation2 + $0x44] sm:$0x1] %v1333_v25  ;;  %v1108_v32 = vshll.u32 %v3957_v22, 16  ;;  %v1088_v33 = vshrl.u32 %v3955_v23, 16  ;;  %v1068_v35 = vsel %vm5384_vm7, %v1060_v54, %v1067_v27  ;;  %v1243_v36 = vsel %vm5376_vm6, %v1069_v28, %v1242_v20 }
 0x1d2   : > { %v1330_v30 = vsel %vm5408_vm8, 0, %v1329_v26  ;;  %v1301_v34 = vld [vmem:[#allocation2 + $0x54] sm:$0x1]  ;;  %v1091_v38 = vshll.u32 %v3955_v23, 16  ;;  %v1113_v39 = vshrl.u32 %v3958_v29, 16  ;;  %v1107_v42 = vrot.slane %v1105_v31, 7 }
 0x1d3   : > { %1331 = vst [vmem:[#allocation2 + $0x38] sm:$0x1] %v1330_v30  ;;  %v1302_v40 = vsel %vm5376_vm6, 0, %v1301_v34  ;;  %v1298_v41 = vld [vmem:[#allocation2 + $0x48] sm:$0x1]  ;;  %v1090_v43 = vrot.slane %v1088_v33, 7  ;;  %v838_v2 = vadd.f32 %v5361_v44, %v837_v24  ;;  %v849_v14 = vadd.f32 %v4312_v46, %v5361_v44 }
 0x1d4   : > { %1241 = vst [vmem:[#allocation2 + $0x4c] sm:$0xf] %v1068_v35  ;;  %1244 = vst [vmem:[#allocation2 + $0x50] sm:$0x1] %v1243_v36  ;;  %v1116_v45 = vshll.u32 %v3958_v29, 16  ;;  %v1299_v47 = vsel %vm5376_vm6, 0, %v1298_v41  ;;  %v1110_v52 = vor.u32 %v1108_v32, %v1107_v42  ;;  %v841_v10 = vadd.f32 %v5361_v44, %v840_v3 }
 0x1d5   : > { %1303 = vst [vmem:[#allocation2 + $0x54] sm:$0x1] %v1302_v40  ;;  %v1115_v50 = vrot.slane %v1113_v39, 7  ;;  %1300 = vst [vmem:[#allocation2 + $0x48] sm:$0x1] %v1299_v47  ;;  %v1111_v53 = vrot.slane %v1107_v42, 4  ;;  %v1093_v54 = vor.u32 %v1091_v38, %v1090_v43 }
 0x1d6   : > { %v1096_v58 = vshrl.u32 %v3956_v49, 16  ;;  %v1099_v59 = vshll.u32 %v3956_v49, 16  ;;  %v1260_v61 = vsel %vm5368_vm4, %v1110_v52, %v1259_v37  ;;  %v1094_v9 = vrot.slane %v1090_v43, 4  ;;  %v1273_v26 = vld [vmem:[#allocation2 + $0x84] sm:$0xf] }
 0x1d7   : > { %v1118_v56 = vor.u32 %v1116_v45, %v1115_v50  ;;  %v1120_v57 = vrot.slane %v1115_v50, 4  ;;  %v1338_v60 = vld [vmem:[#allocation2 + $0x5c] sm:$0x1]  ;;  %v1253_v63 = vsel %vm5368_vm4, %v1093_v54, %v1252_v48  ;;  %1261 = vst [vmem:[#allocation2 + $0x6c] sm:$0xf] %v1260_v61  ;;  %v1139_v12 = vshrl.u32 %v3961_v1, 16 }
 0x1d8   : > { %v1339_v4 = vsel %vm5408_vm8, 0, %v1338_v60  ;;  %1254 = vst [vmem:[#allocation2 + $0x60] sm:$0xf] %v1253_v63  ;;  %v1098_v8 = vrot.slane %v1096_v58, 7  ;;  %v872_v13 = vmax.f32 %v838_v2, 0.0  ;;  %v1142_v18 = vshll.u32 %v3961_v1, 16 }
 0x1d9   : > { %v1119_v5 = vsel %vm5384_vm7, %v1111_v53, %v1118_v56  ;;  %v1264_v7 = vsel %vm5376_vm6, %v1120_v57, %v1263_v55  ;;  %1340 = vst [vmem:[#allocation2 + $0x5c] sm:$0x1] %v1339_v4  ;;  %v1141_v20 = vrot.slane %v1139_v12, 7  ;;  %v875_v23 = vmax.f32 %v849_v14, 0.0  ;;  %v1266_v44 = vld [vmem:[#allocation2 + $0x78] sm:$0xf] }
 0x1da   : > { %1262 = vst [vmem:[#allocation2 + $0x70] sm:$0xf] %v1119_v5  ;;  %1265 = vst [vmem:[#allocation2 + $0x74] sm:$0x1] %v1264_v7  ;;  %v1101_v17 = vor.u32 %v1099_v59, %v1098_v8  ;;  %v1103_v62 = vrot.slane %v1098_v8, 4  ;;  %v3959_v22 = vpack.c.bf16 %v872_v13, %v872_v13  ;;  %v873_v27 = vmax.f32 %v841_v10, 0.0 }
 0x1db   : > { %v1335_v15 = vld [vmem:[#allocation2 + $0x50] sm:$0x1]  ;;  %v1144_v28 = vor.u32 %v1142_v18, %v1141_v20  ;;  %v3962_v30 = vpack.c.bf16 %v875_v23, %v875_v23  ;;  %v1277_v48 = vld [vmem:[#allocation2 + $0x8c] sm:$0x1]  ;;  %v1145_v52 = vrot.slane %v1141_v20, 4 }
 0x1dc   : > { %v1336_v19 = vsel %vm5408_vm8, 0, %v1335_v15  ;;  %v1102_v24 = vsel %vm5384_vm7, %v1094_v9, %v1101_v17  ;;  %v1257_v25 = vsel %vm5376_vm6, %v1103_v62, %v1256_v11  ;;  %v1122_v29 = vshrl.u32 %v3959_v22, 16  ;;  %v1270_v55 = vld [vmem:[#allocation2 + $0x80] sm:$0x1] }
 0x1dd   : > { %1337 = vst [vmem:[#allocation2 + $0x50] sm:$0x1] %v1336_v19  ;;  %1255 = vst [vmem:[#allocation2 + $0x64] sm:$0xf] %v1102_v24  ;;  %v3960_v31 = vpack.c.bf16 %v873_v27, %v873_v27  ;;  %v1274_v34 = vsel %vm5368_vm4, %v1144_v28, %v1273_v26  ;;  %v1125_v36 = vshll.u32 %v3959_v22, 16  ;;  %v1147_v40 = vshrl.u32 %v3962_v30, 16 }
 0x1de   : > { %1258 = vst [vmem:[#allocation2 + $0x68] sm:$0x1] %v1257_v25  ;;  %v1307_v32 = vld [vmem:[#allocation2 + $0x6c] sm:$0x1]  ;;  %v1124_v35 = vrot.slane %v1122_v29, 7  ;;  %v1150_v46 = vshll.u32 %v3962_v30, 16 }
 0x1df   : > { %v1304_v33 = vld [vmem:[#allocation2 + $0x60] sm:$0x1]  ;;  %v1308_v37 = vsel %vm5376_vm6, 0, %v1307_v32  ;;  %1275 = vst [vmem:[#allocation2 + $0x84] sm:$0xf] %v1274_v34  ;;  %v1130_v43 = vshrl.u32 %v3960_v31, 16 }
 0x1e0   : > { %v1305_v38 = vsel %vm5376_vm6, 0, %v1304_v33  ;;  %1309 = vst [vmem:[#allocation2 + $0x6c] sm:$0x1] %v1308_v37  ;;  %v1127_v42 = vor.u32 %v1125_v36, %v1124_v35  ;;  %v1149_v45 = vrot.slane %v1147_v40, 7  ;;  %v1133_v49 = vshll.u32 %v3960_v31, 16 }
 0x1e1   : > { %v1344_v39 = vld [vmem:[#allocation2 + $0x74] sm:$0x1]  ;;  %1306 = vst [vmem:[#allocation2 + $0x60] sm:$0x1] %v1305_v38  ;;  %v1132_v50 = vrot.slane %v1130_v43, 7  ;;  %v1128_v57 = vrot.slane %v1124_v35, 4 }
 0x1e2   : > { %v1345_v41 = vsel %vm5408_vm8, 0, %v1344_v39  ;;  %v1267_v47 = vsel %vm5368_vm4, %v1127_v42, %v1266_v44  ;;  %v1152_v53 = vor.u32 %v1150_v46, %v1149_v45  ;;  %v1154_v54 = vrot.slane %v1149_v45, 4 }
 0x1e3   : > { %1346 = vst [vmem:[#allocation2 + $0x74] sm:$0x1] %v1345_v41  ;;  %1268 = vst [vmem:[#allocation2 + $0x78] sm:$0xf] %v1267_v47  ;;  %v1135_v58 = vor.u32 %v1133_v49, %v1132_v50  ;;  %v1137_v59 = vrot.slane %v1132_v50, 4 }
 0x1e4   : > { %v1153_v0 = vsel %vm5384_vm7, %v1145_v52, %v1152_v53  ;;  %v1278_v60 = vsel %vm5376_vm6, %v1154_v54, %v1277_v48 }
 0x1e5   : > { %v1341_v51 = vld [vmem:[#allocation2 + $0x68] sm:$0x1]  ;;  %1276 = vst [vmem:[#allocation2 + $0x88] sm:$0xf] %v1153_v0  ;;  %1279 = vst [vmem:[#allocation2 + $0x8c] sm:$0x1] %v1278_v60  ;;  %v1136_v63 = vsel %vm5384_vm7, %v1128_v57, %v1135_v58  ;;  %v1271_v1 = vsel %vm5376_vm6, %v1137_v59, %v1270_v55 }
 0x1e6   : > { %v1342_v56 = vsel %vm5408_vm8, 0, %v1341_v51  ;;  %v1313_v61 = vld [vmem:[#allocation2 + $0x84] sm:$0x1]  ;;  %1269 = vst [vmem:[#allocation2 + $0x7c] sm:$0xf] %v1136_v63 }
 0x1e7   : > { %1343 = vst [vmem:[#allocation2 + $0x68] sm:$0x1] %v1342_v56  ;;  %v1314_v2 = vsel %vm5376_vm6, 0, %v1313_v61  ;;  %1272 = vst [vmem:[#allocation2 + $0x80] sm:$0x1] %v1271_v1 }
 0x1e8   : > { %1315 = vst [vmem:[#allocation2 + $0x84] sm:$0x1] %v1314_v2 }
 0x1ea   : > { %v1310_v3 = vld [vmem:[#allocation2 + $0x78] sm:$0x1] }
 0x1eb   : > { %v1311_v4 = vsel %vm5376_vm6, 0, %v1310_v3 }
 0x1ec   : > { %1312 = vst [vmem:[#allocation2 + $0x78] sm:$0x1] %v1311_v4  ;;  %v1350_v5 = vld [vmem:[#allocation2 + $0x8c] sm:$0x1]  ;;  %1356 = sbr.rel (%p3773_p1) target bundleno = 501 (0x1f5), region = 84 }
 0x1ed   : > { %v1351_v21 = vsel %vm5408_vm8, 0, %v1350_v5 }
 0x1ee   : > { %v1347_v7 = vld [vmem:[#allocation2 + $0x80] sm:$0x1]  ;;  %1352 = vst [vmem:[#allocation2 + $0x8c] sm:$0x1] %v1351_v21 }
 0x1ef   : > { %v1348_v8 = vsel %vm5408_vm8, 0, %v1347_v7 }
 0x1f0   : > { %1349 = vst [vmem:[#allocation2 + $0x80] sm:$0x1] %v1348_v8 }
 0x1f1   : > { %v4967_v9 = vmov 0  }
 0x1f2   : > { %1357 = vst [vmem:[#allocation2] sm:$0xf] %v4967_v9  ;;  %1358 = vst [vmem:[#allocation2 + $0x4] sm:$0xf] %v4967_v9 }
 0x1f3   : > { %1359 = vst [vmem:[#allocation2 + $0x8] sm:$0x1] %v4967_v9  ;;  %1360 = vst [vmem:[#allocation2 + $0x48] sm:$0xf] %v4967_v9 }
 0x1f4   : > { %1361 = vst [vmem:[#allocation2 + $0x4c] sm:$0xf] %v4967_v9  ;;  %1362 = vst [vmem:[#allocation2 + $0x50] sm:$0x1] %v4967_v9 }
 0x1f5 PF: > { %s6140_s26 = sld [smem:[#allocation35_spill]] }
 0x1fb   : > { %p3774_p13 = scmp.ne.s32.totalorder %s6140_s26, 3 }
 0x1fd   : > { %1366 = sbr.rel (%p3774_p13) target bundleno = 518 (0x206), region = 88 }
 0x202   : > { %v4968_v16 = vmov 0  }
 0x203   : > { %1368 = vst [vmem:[#allocation2 + $0x3c] sm:$0xf] %v4968_v16  ;;  %1369 = vst [vmem:[#allocation2 + $0x40] sm:$0xf] %v4968_v16 }
 0x204   : > { %1370 = vst [vmem:[#allocation2 + $0x44] sm:$0x1] %v4968_v16  ;;  %1371 = vst [vmem:[#allocation2 + $0x84] sm:$0xf] %v4968_v16 }
 0x205   : > { %1372 = vst [vmem:[#allocation2 + $0x88] sm:$0xf] %v4968_v16  ;;  %1373 = vst [vmem:[#allocation2 + $0x8c] sm:$0x1] %v4968_v16 }
 0x206 PF: > { %v4595_v6 = vld [vmem:[#allocation11 + $0x78] sm:$0xff]   ;;  %v4599_v14 = vld [vmem:[#allocation11 + $0x70] sm:$0xff]   ;;  %v4603_v18 = vld [vmem:[#allocation11 + $0x68] sm:$0xff]   ;;  %vm1544_vm9 = vsmask.f32 7424  ;;  %vm1673_vm10 = vcmask 1046528  }
 0x207   : > { %v4596_v11 = vld [vmem:[#allocation11 + $0x38] sm:$0xff]   ;;  %3985 = vmatprep.subr.bf16.mxu1 %v4595_v6  ;;  %v4600_v15 = vld [vmem:[#allocation11 + $0x30] sm:$0xff]   ;;  %v4604_v10 = vld [vmem:[#allocation11 + $0x28] sm:$0xff]   ;;  %s6141_s5 = sld [smem:[#allocation69_spill]]  ;;  %s3495_s18 = scalar_lea.sflag [#allocation5], %s5299_s25 }
 0x208   : > { %v4597_v12 = vld [vmem:[#allocation11 + $0xf8] sm:$0xff]   ;;  %3986 = vmatpush3.bf16.msra.mxu1 %v4596_v11  ;;  %v4601_v17 = vld [vmem:[#allocation11 + $0xf0] sm:$0xff]   ;;  %v4605_v19 = vld [vmem:[#allocation11 + $0xe8] sm:$0xff]   ;;  %s6184_s23 = sld [smem:[#allocation70_spill]] }
 0x209   : > { %v4598_v13 = vld [vmem:[#allocation11 + $0xb8] sm:$0xff]   ;;  %4049 = vmatprep.subr.bf16.mxu0 %v4597_v12  ;;  %3987 = vmatprep.subr.bf16.mxu1 %v4599_v14  ;;  %v4602_v62 = vld [vmem:[#allocation11 + $0xb0] sm:$0xff]   ;;  %v4606_v20 = vld [vmem:[#allocation11 + $0xa8] sm:$0xff]  }
 0x20a   : > { %4050 = vmatpush3.bf16.msra.mxu0 %v4598_v13  ;;  %v4607_v22 = vld [vmem:[#allocation11 + $0x60] sm:$0xff]   ;;  %v4611_v26 = vld [vmem:[#allocation11 + $0x58] sm:$0xff]   ;;  %v4615_v44 = vld [vmem:[#allocation11 + $0x50] sm:$0xff]  }
 0x20b   : > { %4051 = vmatprep.subr.bf16.mxu0 %v4601_v17  ;;  %v4608_v23 = vld [vmem:[#allocation11 + $0x20] sm:$0xff]   ;;  %v4612_v27 = vld [vmem:[#allocation11 + $0x18] sm:$0xff]   ;;  %v4616_v30 = vld [vmem:[#allocation11 + $0x10] sm:$0xff]  }
 0x20c   : > { %3988 = vmatpush3.bf16.msra.mxu1 %v4600_v15  ;;  %v4609_v24 = vld [vmem:[#allocation11 + $0xe0] sm:$0xff]   ;;  %v4613_v28 = vld [vmem:[#allocation11 + $0xd8] sm:$0xff]   ;;  %v4617_v31 = vld [vmem:[#allocation11 + $0xd0] sm:$0xff]  }
 0x20d   : > { %3989 = vmatprep.subr.bf16.mxu1 %v4603_v18  ;;  %v4610_v25 = vld [vmem:[#allocation11 + $0xa0] sm:$0xff]   ;;  %v4614_v29 = vld [vmem:[#allocation11 + $0x98] sm:$0xff]   ;;  %v4618_v32 = vld [vmem:[#allocation11 + $0x90] sm:$0xff]  }
 0x20e   : > { %4052 = vmatpush3.bf16.msra.mxu0 %v4602_v62  ;;  %v4619_v33 = vld [vmem:[#allocation11 + $0x48] sm:$0xff]   ;;  %v4623_v37 = vld [vmem:[#allocation11 + $0x40] sm:$0xff]   ;;  %v1374_v40 = vld [vmem:[#allocation2] sm:$0xf] }
 0x20f   : > { %4053 = vmatprep.subr.bf16.mxu0 %v4605_v19  ;;  %v4620_v34 = vld [vmem:[#allocation11 + $0x8] sm:$0xff]   ;;  %v4624_v38 = vld [vmem:[#allocation11] sm:$0xff]   ;;  %v1375_v41 = vld [vmem:[#allocation2 + $0x4] sm:$0xf] }
 0x210   : > { %3990 = vmatpush3.bf16.msra.mxu1 %v4604_v10  ;;  %v4621_v35 = vld [vmem:[#allocation11 + $0xc8] sm:$0xff]   ;;  %v4625_v39 = vld [vmem:[#allocation11 + $0xc0] sm:$0xff]   ;;  %v3775_v42 = vcombine.low %v1374_v40, %v1375_v41  ;;  %v4627_v43 = vld [vmem:[#allocation2 + $0x8] ss:$0 sps:$4 sm:$0x11]  }
 0x211   : > { %3991 = vmatprep.subr.bf16.mxu1 %v4607_v22  ;;  %v4622_v36 = vld [vmem:[#allocation11 + $0x88] sm:$0xff]   ;;  %v4628_v45 = vld [vmem:[#allocation11 + $0x80] sm:$0xff]   ;;  %v1553_v48 = vshll.u32 %v4627_v43, 16  ;;  %v4629_v50 = vld [vmem:[#allocation11 + $0x178] sm:$0xff]   ;;  %v1675_v59 = vrot.slane %v4627_v43, 1 }
 0x212   : > { %4054 = vmatpush3.bf16.msra.mxu0 %v4606_v20  ;;  %v1546_v46 = vshrl.u32 %v3775_v42, 16  ;;  %v1548_v47 = vshll.u32 %v3775_v42, 16  ;;  %v1407_v49 = vld [vmem:[#allocation2 + $0xc] sm:$0xf]  ;;  %v5551_v51 = vld [vmem:[#allocation2 + $0x10] sm:$0xf] }
 0x213   : > { %4055 = vmatprep.subr.bf16.mxu0 %v4609_v24  ;;  %v1555_v53 = vrot.slane %v1553_v48, 1  ;;  %v5554_v54 = vcombine.low %v1407_v49, %v5551_v51  ;;  %v1398_v55 = vld [vmem:[#allocation2] sm:$0xe]  ;;  %v1376_v56 = vld [vmem:[#allocation2 + $0xc] sm:$0xf]  ;;  %v4643_v18 = vld [vmem:[#allocation11 + $0x168] sm:$0xff]  }
 0x214   : > { %3992 = vmatpush3.bf16.msra.mxu1 %v4608_v23  ;;  %v1550_v52 = vrot.slane %v1548_v47, 1  ;;  %v3791_v58 = vcombine.low %v1398_v55, %v1375_v41  ;;  %v1377_v0 = vld [vmem:[#allocation2 + $0x10] sm:$0xf]  ;;  %v4632_v60 = vld [vmem:[#allocation11 + $0x138] sm:$0xff]   ;;  %v4636_v3 = vld [vmem:[#allocation11 + $0x170] sm:$0xff]  }
 0x215   : > { %3993 = vmatprep.subr.bf16.mxu1 %v4611_v26  ;;  %2882 = vmatprep.mubr.bf16.mxu0 %v5554_v54  ;;  %v3776_v61 = vcombine.low %v1376_v56, %v1377_v0  ;;  %v4635_v63 = vld [vmem:[#allocation2 + $0x14] ss:$0 sps:$4 sm:$0x11]   ;;  %v1409_v4 = vld [vmem:[#allocation2 + $0x18] sm:$0xf]  ;;  %v4639_v12 = vld [vmem:[#allocation11 + $0x130] sm:$0xff]  }
 0x216   : > { %4056 = vmatpush3.bf16.msra.mxu0 %v4610_v25  ;;  %v1551_v57 = vor.u32 %v1550_v52, %v1546_v46  ;;  %v1674_v2 = vrot.slane %v3791_v58, 1  ;;  %v1565_v7 = vshll.u32 %v4635_v63, 16  ;;  %v5558_v8 = vld [vmem:[#allocation2 + $0x1c] sm:$0xf]  ;;  %v1399_v13 = vld [vmem:[#allocation2 + $0xc] sm:$0xe] }
 0x217   : > { %4057 = vmatprep.subr.bf16.mxu0 %v4613_v28  ;;  %v1558_v5 = vshrl.u32 %v3776_v61, 16  ;;  %v1560_v21 = vshll.u32 %v3776_v61, 16  ;;  %v5562_v16 = vcombine.low %v1409_v4, %v5558_v8  ;;  %v3792_v14 = vcombine.low %v1399_v13, %v1377_v0  ;;  %v1378_v17 = vld [vmem:[#allocation2 + $0x18] sm:$0xf]  ;;  %v1379_v62 = vld [vmem:[#allocation2 + $0x1c] sm:$0xf] }
 0x218   : > { %3994 = vmatpush3.bf16.msra.mxu1 %v4612_v27  ;;  %v1556_v1 = vsel %vm1544_vm9, %v1551_v57, %v1555_v53  ;;  %v1676_v9 = vsel %vm1673_vm10, %v1674_v2, %v1675_v59  ;;  %v1567_v11 = vrot.slane %v1565_v7, 1  ;;  %v1678_v15 = vrot.slane %v4635_v63, 1  ;;  %v4642_v20 = vld [vmem:[#allocation2 + $0x20] ss:$0 sps:$4 sm:$0x11]   ;;  %v4646_v23 = vld [vmem:[#allocation11 + $0x128] sm:$0xff]  }
 0x219   : > { %3995 = vmatprep.subr.bf16.mxu1 %v4615_v44  ;;  %2785 = vmatprep.mubr.bf16.mxu1 %v1556_v1  ;;  %v1562_v6 = vrot.slane %v1560_v21, 1  ;;  %v3777_v19 = vcombine.low %v1378_v17, %v1379_v62  ;;  %v1677_v22 = vrot.slane %v3792_v14, 1  ;;  %v1577_v27 = vshll.u32 %v4642_v20, 16  ;;  %v1411_v28 = vld [vmem:[#allocation2 + $0x24] sm:$0xf]  ;;  %v4656_v40 = vld [vmem:[#allocation11 + $0x1b8] sm:$0xff]  }
 0x21a   : > { %4058 = vmatpush3.bf16.msra.mxu0 %v4614_v29  ;;  %v4655_v29 = vld [vmem:[#allocation11 + $0x1f8] sm:$0xff]   ;;  %v1413_v53 = vld [vmem:[#allocation2 + $0x30] sm:$0xf]  ;;  %v5574_v55 = vld [vmem:[#allocation2 + $0x34] sm:$0xf] }
 0x21b   : > { %4059 = vmatprep.subr.bf16.mxu0 %v4617_v31  ;;  %v1563_v10 = vor.u32 %v1562_v6, %v1558_v5  ;;  %v1570_v25 = vshrl.u32 %v3777_v19, 16  ;;  %v1572_v26 = vshll.u32 %v3777_v19, 16  ;;  %v1679_v44 = vsel %vm1673_vm10, %v1677_v22, %v1678_v15  ;;  %v4650_v31 = vld [vmem:[#allocation11 + $0x160] sm:$0xff]   ;;  %v4659_v47 = vld [vmem:[#allocation11 + $0x158] sm:$0xff]   ;;  %v1401_v59 = vld [vmem:[#allocation2 + $0x24] sm:$0xe] }
 0x21c   : > { %3996 = vmatpush3.bf16.msra.mxu1 %v4616_v30  ;;  %v5567_v30 = vld [vmem:[#allocation2 + $0x28] sm:$0xf]  ;;  %v4664_v63 = vld [vmem:[#allocation11 + $0x1f0] sm:$0xff]   ;;  %v1383_v21 = vld [vmem:[#allocation2 + $0x4c] sm:$0xf] }
 0x21d   : > { %3997 = vmatprep.subr.bf16.mxu1 %v4619_v33  ;;  %v1568_v24 = vsel %vm1544_vm9, %v1563_v10, %v1567_v11  ;;  %v1579_v33 = vrot.slane %v1577_v27, 1  ;;  %v4662_v56 = vld [vmem:[#allocation11 + $0x118] sm:$0xff]   ;;  %v4668_v7 = vld [vmem:[#allocation11 + $0x150] sm:$0xff]   ;;  %v4658_v11 = vld [vmem:[#allocation2 + $0x50] ss:$0 sps:$4 sm:$0x11]  }
 0x21e   : > { %4060 = vmatpush3.bf16.msra.mxu0 %v4618_v32  ;;  %v1574_v32 = vrot.slane %v1572_v26, 1  ;;  %v1382_v5 = vld [vmem:[#allocation2 + $0x48] sm:$0xf]  ;;  %v1415_v13 = vld [vmem:[#allocation2 + $0x54] sm:$0xf]  ;;  %v1601_v17 = vshll.u32 %v4658_v11, 16 }
 0x21f   : > { %4061 = vmatprep.subr.bf16.mxu0 %v4621_v35  ;;  %v1400_v35 = vld [vmem:[#allocation2 + $0x18] sm:$0xe]  ;;  %v3779_v6 = vcombine.low %v1382_v5, %v1383_v21  ;;  %v1384_v26 = vld [vmem:[#allocation2 + $0x54] sm:$0xf] }
 0x220   : > { %3998 = vmatpush3.bf16.msra.mxu1 %v4620_v34  ;;  %v5570_v34 = vcombine.low %v1411_v28, %v5567_v30  ;;  %v1575_v41 = vor.u32 %v1574_v32, %v1570_v25  ;;  %v1603_v10 = vrot.slane %v1601_v17, 1  ;;  %v1385_v27 = vld [vmem:[#allocation2 + $0x58] sm:$0xf]  ;;  %v1687_v32 = vrot.slane %v4658_v11, 1  ;;  %v4685_v17 = vld [vmem:[#allocation11 + $0x198] sm:$0xff]  }
 0x221   : > { %3999 = vmatprep.subr.bf16.mxu1 %v4623_v37  ;;  %v3793_v37 = vcombine.low %v1400_v35, %v1379_v62  ;;  %v1594_v14 = vshrl.u32 %v3779_v6, 16  ;;  %v1596_v15 = vshll.u32 %v3779_v6, 16  ;;  %v5582_v62 = vld [vmem:[#allocation2 + $0x58] sm:$0xf]  ;;  %v3780_v28 = vcombine.low %v1384_v26, %v1385_v27  ;;  %v4689_v26 = vld [vmem:[#allocation11 + $0x190] sm:$0xff]  }
 0x222   : > { %4062 = vmatpush3.bf16.msra.mxu0 %v4622_v36  ;;  %v4653_v36 = vld [vmem:[#allocation11 + $0x120] sm:$0xff]   ;;  %v1580_v48 = vsel %vm1544_vm9, %v1575_v41, %v1579_v33  ;;  %v5586_v22 = vcombine.low %v1415_v13, %v5582_v62  ;;  %v4684_v13 = vld [vmem:[#allocation11 + $0x1d8] sm:$0xff]  }
 0x223   : > { %4063 = vmatprep.subr.bf16.mxu0 %v4625_v39  ;;  %v1381_v39 = vld [vmem:[#allocation2 + $0x28] sm:$0xf]  ;;  %v1680_v46 = vrot.slane %v3793_v37, 1  ;;  %v1606_v33 = vshrl.u32 %v3780_v28, 16  ;;  %v1608_v35 = vshll.u32 %v3780_v28, 16 }
 0x224   : > { %4000 = vmatpush3.bf16.msra.mxu1 %v4624_v38  ;;  %v1380_v38 = vld [vmem:[#allocation2 + $0x24] sm:$0xf]  ;;  %v1417_v37 = vld [vmem:[#allocation2 + $0x60] sm:$0xf] }
 0x225   : > { %4113 = vmatprep.subr.bf16.mxu1 %v4629_v50  ;;  %v3778_v43 = vcombine.low %v1380_v38, %v1381_v39  ;;  %v4674_v38 = vld [vmem:[#allocation11 + $0x1a8] sm:$0xff]  }
 0x226   : > { %4064 = vmatpush3.bf16.msra.mxu0 %v4628_v45  ;;  %v4649_v45 = vld [vmem:[#allocation2 + $0x2c] ss:$0 sps:$4 sm:$0x11]  }
 0x227   : > { %2786 = vmatmul.mubr.bf16.vlgmr.msra.gmra.mxu1 %v3775_v42  ;;  %4177 = vmatprep.subr.bf16.mxu0 %v4655_v29  ;;  %v1681_v42 = vrot.slane %v4642_v20, 1  ;;  %v1582_v50 = vshrl.u32 %v3778_v43, 16  ;;  %v1584_v49 = vshll.u32 %v3778_v43, 16  ;;  %v1589_v52 = vshll.u32 %v4649_v45, 16 }
 0x228   : > { %4114 = vmatpush3.bf16.msra.mxu1 %v4632_v60  ;;  %2793 = vmatprep.mubr.bf16.mxu1 %v1568_v24  ;;  %v5578_v60 = vcombine.low %v1413_v53, %v5574_v55  ;;  %v1684_v2 = vrot.slane %v4649_v45, 1  ;;  %v4673_v24 = vld [vmem:[#allocation11 + $0x1e8] sm:$0xff]   ;;  %v1386_v53 = vld [vmem:[#allocation2 + $0x60] sm:$0xf] }
 0x229   : > { %2883 = vmatmul.mubr.bf16.vlgmr.msra.gmra.mxu0 %v1676_v9  ;;  %4115 = vmatprep.subr.bf16.mxu1 %v4636_v3  ;;  %v1586_v57 = vrot.slane %v1584_v49, 1  ;;  %v1591_v58 = vrot.slane %v1589_v52, 1  ;;  %v1682_v0 = vsel %vm1673_vm10, %v1680_v46, %v1681_v42  ;;  %v4665_v3 = vld [vmem:[#allocation11 + $0x1b0] sm:$0xff]   ;;  %v4667_v29 = vld [vmem:[#allocation2 + $0x5c] ss:$0 sps:$4 sm:$0x11]  }
 0x22a   : > { %2890 = vmatprep.mubr.bf16.mxu0 %v5562_v16  ;;  %4178 = vmatpush3.bf16.msra.mxu0 %v4656_v40  ;;  %v1610_v40 = vrot.slane %v1608_v35, 1  ;;  %v1403_v42 = vld [vmem:[#allocation2 + $0x54] sm:$0xe]  ;;  %v1690_v46 = vrot.slane %v4667_v29, 1  ;;  %v1779_v35 = vshrl.u32 %v5554_v54, 16 }
 0x22b   : > { %v1587_v1 = vor.u32 %v1586_v57, %v1582_v50  ;;  %4179 = vmatprep.subr.bf16.mxu0 %v4664_v63  ;;  %v3796_v45 = vcombine.low %v1403_v42, %v1385_v27  ;;  %v1419_v63 = vld [vmem:[#allocation2 + $0x6c] sm:$0xf] }
 0x22c   : > { %4116 = vmatpush3.bf16.msra.mxu1 %v4639_v12  ;;  %v4671_v12 = vld [vmem:[#allocation11 + $0x110] sm:$0xff]   ;;  %v1611_v50 = vor.u32 %v1610_v40, %v1606_v33  ;;  %v4693_v33 = vld [vmem:[#allocation11 + $0x100] sm:$0xff]   ;;  %v1405_v42 = vld [vmem:[#allocation2 + $0x6c] sm:$0xe] }
 0x22d   : > { %4117 = vmatprep.subr.bf16.mxu1 %v4643_v18  ;;  %v1592_v9 = vsel %vm1544_vm9, %v1587_v1, %v1591_v58  ;;  %v1598_v18 = vrot.slane %v1596_v15, 1  ;;  %v1689_v52 = vrot.slane %v3796_v45, 1  ;;  %v1387_v58 = vld [vmem:[#allocation2 + $0x64] sm:$0xf]  ;;  %v4695_v45 = vld [vmem:[#allocation11 + $0x1c8] sm:$0xff]  }
 0x22e   : > { %4180 = vmatpush3.bf16.msra.mxu0 %v4665_v3 }
 0x22f   : > { %2794 = vmatmul.mubr.bf16.gmra.mxu1 %v3776_v61  ;;  %v3794_v61 = vcombine.low %v1401_v59, %v1381_v39  ;;  %v1599_v25 = vor.u32 %v1598_v18, %v1594_v14  ;;  %4181 = vmatprep.subr.bf16.mxu0 %v4673_v24  ;;  %v5590_v39 = vld [vmem:[#allocation2 + $0x64] sm:$0xf]  ;;  %v3781_v59 = vcombine.low %v1386_v53, %v1387_v58  ;;  %v1432_v53 = vld [vmem:[#allocation2 + $0x18] sm:$0xe] }
 0x230   : > { %4118 = vmatpush3.bf16.msra.mxu1 %v4646_v23  ;;  %2801 = vmatprep.mubr.bf16.mxu1 %v1580_v48  ;;  %v5594_v49 = vcombine.low %v1417_v37, %v5590_v39  ;;  %v5609_v37 = vld [vmem:[#allocation2 + $0x7c] sm:$0xf] }
 0x231   : > { %2891 = vmatmul.mubr.bf16.gmra.mxu0 %v1679_v44  ;;  %4119 = vmatprep.subr.bf16.mxu1 %v4650_v31  ;;  %v1683_v4 = vrot.slane %v3794_v61, 1  ;;  %v1604_v44 = vsel %vm1544_vm9, %v1599_v25, %v1603_v10  ;;  %v4682_v61 = vld [vmem:[#allocation11 + $0x108] sm:$0xff]   ;;  %v1618_v1 = vshrl.u32 %v3781_v59, 16  ;;  %v4686_v10 = vld [vmem:[#allocation11 + $0x1d0] sm:$0xff]  }
 0x232   : > { %2898 = vmatprep.mubr.bf16.mxu0 %v5570_v34  ;;  %4182 = vmatpush3.bf16.msra.mxu0 %v4674_v38  ;;  %v4688_v25 = vld [vmem:[#allocation2 + $0x74] ss:$0 sps:$4 sm:$0x11]  }
 0x233   : > { %v1685_v20 = vsel %vm1673_vm10, %v1683_v4, %v1684_v2  ;;  %v1620_v2 = vshll.u32 %v3781_v59, 16  ;;  %v5598_v4 = vld [vmem:[#allocation2 + $0x70] sm:$0xf] }
 0x234   : > { %4120 = vmatpush3.bf16.msra.mxu1 %v4653_v36  ;;  %v1613_v36 = vshll.u32 %v4667_v29, 16  ;;  %v5602_v11 = vcombine.low %v1419_v63, %v5598_v4  ;;  %v4690_v29 = vld [vmem:[#allocation11 + $0x140] sm:$0xff]   ;;  %v4700_v63 = vld [vmem:[#allocation11 + $0x238] sm:$0xff]  }
 0x235   : > { %4121 = vmatprep.subr.bf16.mxu1 %v4659_v47  ;;  %v4678_v47 = vld [vmem:[#allocation11 + $0x1a0] sm:$0xff]   ;;  %v1622_v5 = vrot.slane %v1620_v2, 1  ;;  %v5617_v2 = vld [vmem:[#allocation2 + $0x1c] sm:$0xf] }
 0x236   : > { %v1615_v41 = vrot.slane %v1613_v36, 1  ;;  %v1781_v36 = vshll.u32 %v5554_v54, 16  ;;  %v4696_v54 = vld [vmem:[#allocation11 + $0x188] sm:$0xff]  }
 0x237   : > { %2802 = vmatmul.mubr.bf16.gmra.mxu1 %v3777_v19  ;;  %v1402_v19 = vld [vmem:[#allocation2 + $0x48] sm:$0xe]  ;;  %v1623_v14 = vor.u32 %v1622_v5, %v1618_v1  ;;  %v1440_v1 = vld [vmem:[#allocation2 + $0x18] sm:$0xf] }
 0x238   : > { %4122 = vmatpush3.bf16.msra.mxu1 %v4662_v56  ;;  %2809 = vmatprep.mubr.bf16.mxu1 %v1592_v9  ;;  %v3795_v23 = vcombine.low %v1402_v19, %v1383_v21  ;;  %v4679_v56 = vld [vmem:[#allocation11 + $0x148] sm:$0xff]   ;;  %v1616_v57 = vsel %vm1544_vm9, %v1611_v50, %v1615_v41  ;;  %v1431_v9 = vld [vmem:[#allocation2 + $0xc] sm:$0xe] }
 0x239   : > { %2899 = vmatmul.mubr.bf16.gmra.mxu0 %v1682_v0  ;;  %4123 = vmatprep.subr.bf16.mxu1 %v4668_v7  ;;  %v4677_v0 = vld [vmem:[#allocation2 + $0x68] ss:$0 sps:$4 sm:$0x11]   ;;  %v1404_v7 = vld [vmem:[#allocation2 + $0x60] sm:$0xe]  ;;  %v3815_v27 = vcombine.low %v1431_v9, %v5551_v51  ;;  %v3816_v9 = vcombine.low %v1432_v53, %v5558_v8 }
 0x23a   : > { %2906 = vmatprep.mubr.bf16.mxu0 %v5578_v60  ;;  %v1686_v31 = vrot.slane %v3795_v23, 1  ;;  %v1625_v3 = vshll.u32 %v4677_v0, 16  ;;  %v1693_v15 = vrot.slane %v4677_v0, 1  ;;  %v1388_v19 = vld [vmem:[#allocation2 + $0x6c] sm:$0xf]  ;;  %v1783_v0 = vrot.slane %v1781_v36, 1 }
 0x23b   : > { %v1389_v23 = vld [vmem:[#allocation2 + $0x70] sm:$0xf] }
 0x23c   : > { %4124 = vmatpush3.bf16.msra.mxu1 %v4671_v12  ;;  %v1688_v48 = vsel %vm1673_vm10, %v1686_v31, %v1687_v32  ;;  %v1627_v21 = vrot.slane %v1625_v3, 1  ;;  %v3797_v12 = vcombine.low %v1404_v7, %v1387_v58  ;;  %v3782_v24 = vcombine.low %v1388_v19, %v1389_v23  ;;  %v1421_v32 = vld [vmem:[#allocation2 + $0x78] sm:$0xf]  ;;  %v4699_v58 = vld [vmem:[#allocation11 + $0x180] sm:$0xff]   ;;  %v1442_v19 = vld [vmem:[#allocation2 + $0x24] sm:$0xf] }
 0x23d   : > { %4125 = vmatprep.subr.bf16.mxu1 %v4679_v56  ;;  %v1637_v31 = vshll.u32 %v4688_v25, 16  ;;  %v5613_v51 = vcombine.low %v1421_v32, %v5609_v37  ;;  %v5622_v7 = vld [vmem:[#allocation2 + $0x20] ss:$0 sps:$4 sm:$0x11]  }
 0x23e   : > { %v1692_v18 = vrot.slane %v3797_v12, 1  ;;  %v1793_v12 = vshll.u32 %v5562_v16, 16 }
 0x23f   : > { %2810 = vmatmul.mubr.bf16.gmra.mxu1 %v3778_v43  ;;  %v4675_v43 = vld [vmem:[#allocation11 + $0x1e0] sm:$0xff]   ;;  %v1639_v41 = vrot.slane %v1637_v31, 1 }
 0x240   : > { %2817 = vmatprep.mubr.bf16.mxu1 %v1604_v44  ;;  %4183 = vmatprep.subr.bf16.mxu0 %v4675_v43  ;;  %v1632_v44 = vshll.u32 %v3782_v24, 16  ;;  %v1694_v38 = vsel %vm1673_vm10, %v1692_v18, %v1693_v15  ;;  %v3798_v43 = vcombine.low %v1405_v42, %v1389_v23  ;;  %v2018_v15 = vshll.u32 %v5622_v7, 16  ;;  %v4704_v42 = vld [vmem:[#allocation11 + $0x230] sm:$0xff]  }
 0x241   : > { %2907 = vmatmul.mubr.bf16.gmra.mxu0 %v1685_v20  ;;  %4126 = vmatpush3.bf16.msra.mxu1 %v4682_v61  ;;  %v1628_v20 = vsel %vm1544_vm9, %v1623_v14, %v1627_v21  ;;  %v3823_v21 = vcombine.low %v1440_v1, %v5617_v2  ;;  %v1784_v18 = vor.u32 %v1783_v0, %v1779_v35 }
 0x242   : > { %2914 = vmatprep.mubr.bf16.mxu0 %v5586_v22  ;;  %4184 = vmatpush3.bf16.msra.mxu0 %v4678_v47  ;;  %v1634_v40 = vrot.slane %v1632_v44, 1  ;;  %v1695_v50 = vrot.slane %v3798_v43, 1  ;;  %v1795_v44 = vrot.slane %v1793_v12, 1  ;;  %v1444_v43 = vld [vmem:[#allocation2 + $0x30] sm:$0xf] }
 0x243   : > { %4185 = vmatprep.subr.bf16.mxu0 %v4684_v13  ;;  %4127 = vmatprep.subr.bf16.mxu1 %v4690_v29  ;;  %v2011_v13 = vshrl.u32 %v3823_v21, 16  ;;  %v2013_v14 = vshll.u32 %v3823_v21, 16  ;;  %v5633_v29 = vld [vmem:[#allocation2 + $0x2c] ss:$0 sps:$4 sm:$0x11]  }
 0x244   : > { %v5655_v12 = vld [vmem:[#allocation2 + $0x40] sm:$0xf] }
 0x245   : > { %4128 = vmatpush3.bf16.msra.mxu1 %v4693_v33  ;;  %v2015_v23 = vrot.slane %v2013_v14, 1  ;;  %v4707_v33 = vld [vmem:[#allocation2 + $0x2c] ss:$0 sps:$4 sm:$0x11]  }
 0x246   : > { %4186 = vmatpush3.bf16.msra.mxu0 %v4685_v17  ;;  %4313 = vmatprep.subr.bf16.mxu1 %v4700_v63  ;;  %v1433_v17 = vld [vmem:[#allocation2 + $0x24] sm:$0xe]  ;;  %v1810_v14 = vshll.u32 %v4707_v33, 16 }
 0x247   : > { %2818 = vmatmul.mubr.bf16.gmra.mxu1 %v3779_v6  ;;  %v1691_v6 = vsel %vm1673_vm10, %v1689_v52, %v1690_v46  ;;  %4187 = vmatprep.subr.bf16.mxu0 %v4686_v10  ;;  %v1906_v46 = vrot.slane %v3815_v27, 1  ;;  %v4697_v52 = vld [vmem:[#allocation11 + $0x1c0] sm:$0xff]  }
 0x248   : > { %2825 = vmatprep.mubr.bf16.mxu1 %v1616_v57  ;;  %v4698_v57 = vld [vmem:[#allocation2 + $0x14] ss:$0 sps:$4 sm:$0x11]  }
 0x249   : > { %2915 = vmatmul.mubr.bf16.gmra.mxu0 %v1688_v48  ;;  %v1696_v48 = vrot.slane %v4688_v25, 1  ;;  %v1786_v61 = vshll.u32 %v4698_v57, 16  ;;  %v2020_v25 = vrot.slane %v2018_v15, 1 }
 0x24a   : > { %2922 = vmatprep.mubr.bf16.mxu0 %v5594_v49  ;;  %4188 = vmatpush3.bf16.msra.mxu0 %v4689_v26  ;;  %v1909_v26 = vrot.slane %v3816_v9, 1 }
 0x24b   : > { %4189 = vmatprep.subr.bf16.mxu0 %v4695_v45  ;;  %v1697_v3 = vsel %vm1673_vm10, %v1695_v50, %v1696_v48  ;;  %v1788_v10 = vrot.slane %v1786_v61, 1  ;;  %v5641_v45 = vld [vmem:[#allocation2 + $0x34] sm:$0xf]  ;;  %v1913_v61 = vrot.slane %v4707_v33, 1 }
 0x24c   : > { %v5645_v48 = vcombine.low %v1444_v43, %v5641_v45  ;;  %v4716_v43 = vld [vmem:[#allocation11 + $0x218] sm:$0xff]  }
 0x24d   : > { %v1789_v35 = vsel %vm1544_vm9, %v1784_v18, %v1788_v10  ;;  %v5661_v18 = vld [vmem:[#allocation2 + $0x44] ss:$0 sps:$4 sm:$0x11]  }
 0x24e   : > { %4190 = vmatpush3.bf16.msra.mxu0 %v4696_v54  ;;  %v1805_v54 = vshll.u32 %v5570_v34, 16 }
 0x24f   : > { %2826 = vmatmul.mubr.bf16.gmra.mxu1 %v3780_v28  ;;  %v1630_v28 = vshrl.u32 %v3782_v24, 16  ;;  %4191 = vmatprep.subr.bf16.mxu0 %v4697_v52  ;;  %v5648_v52 = vld [vmem:[#allocation2 + $0x38] ss:$0 sps:$4 sm:$0x11]  }
 0x250   : > { %2833 = vmatprep.mubr.bf16.mxu1 %v1628_v20  ;;  %v5627_v20 = vld [vmem:[#allocation2 + $0x28] sm:$0xf]  ;;  %v2042_v1 = vshll.u32 %v5648_v52, 16  ;;  %v1807_v9 = vrot.slane %v1805_v54, 1 }
 0x251   : > { %2923 = vmatmul.mubr.bf16.gmra.mxu0 %v1691_v6  ;;  %v1635_v47 = vor.u32 %v1634_v40, %v1630_v28  ;;  %v4703_v6 = vld [vmem:[#allocation2 + $0x20] ss:$0 sps:$4 sm:$0x11]   ;;  %v5630_v8 = vcombine.low %v1442_v19, %v5627_v20  ;;  %v2016_v28 = vor.u32 %v2015_v23, %v2011_v13  ;;  %v3817_v40 = vcombine.low %v1433_v17, %v5567_v30  ;;  %v4711_v19 = vld [vmem:[#allocation2 + $0x38] ss:$0 sps:$4 sm:$0x11]  }
 0x252   : > { %2930 = vmatprep.mubr.bf16.mxu0 %v5602_v11  ;;  %4192 = vmatpush3.bf16.msra.mxu0 %v4699_v58  ;;  %v1910_v27 = vrot.slane %v4703_v6, 1  ;;  %v1798_v36 = vshll.u32 %v4703_v6, 16  ;;  %v2044_v6 = vrot.slane %v2042_v1, 1  ;;  %v4712_v23 = vld [vmem:[#allocation11 + $0x220] sm:$0xff]   ;;  %v4720_v1 = vld [vmem:[#allocation11 + $0x210] sm:$0xff]  }
 0x253   : > { %v1640_v56 = vsel %vm1544_vm9, %v1635_v47, %v1639_v41  ;;  %v2023_v31 = vshrl.u32 %v5630_v8, 16  ;;  %v2025_v32 = vshll.u32 %v5630_v8, 16  ;;  %v2021_v41 = vsel %vm1544_vm9, %v2016_v28, %v2020_v25 }
 0x254   : > { %v1800_v53 = vrot.slane %v1798_v36, 1  ;;  %v1912_v0 = vrot.slane %v3817_v40, 1  ;;  %v2054_v28 = vshll.u32 %v5661_v18, 16 }
 0x257   : > { %2834 = vmatmul.mubr.bf16.gmra.mxu1 %v3781_v59  ;;  %v1907_v59 = vrot.slane %v4698_v57, 1  ;;  %v2037_v57 = vshll.u32 %v5645_v48, 16 }
 0x258   : > { %2841 = vmatprep.mubr.bf16.mxu1 %v1640_v56  ;;  %v2035_v56 = vshrl.u32 %v5645_v48, 16 }
 0x259   : > { %2931 = vmatmul.mubr.bf16.gmra.mxu0 %v1694_v38  ;;  %v1908_v5 = vsel %vm1673_vm10, %v1906_v46, %v1907_v59  ;;  %v2030_v38 = vshll.u32 %v5633_v29, 16  ;;  %v1911_v46 = vsel %vm1673_vm10, %v1909_v26, %v1910_v27  ;;  %v4708_v59 = vld [vmem:[#allocation11 + $0x228] sm:$0xff]  }
 0x25a   : > { %2938 = vmatprep.mubr.bf16.mxu0 %v5613_v51 }
 0x25b   : > { %v2032_v47 = vrot.slane %v2030_v38, 1  ;;  %v1916_v38 = vrot.slane %v4711_v19, 1 }
 0x25f   : > { %2842 = vmatmul.mubr.bf16.gmra.mxu1 %v3782_v24  ;;  %v1791_v24 = vshrl.u32 %v5562_v16, 16  ;;  %v2027_v16 = vrot.slane %v2025_v32, 1  ;;  %v1812_v32 = vrot.slane %v1810_v14, 1  ;;  %v4724_v14 = vld [vmem:[#allocation11 + $0x208] sm:$0xff]  }
 0x260   : > { %2979 = vmatprep.mubr.bf16.mxu1 %v1908_v5  ;;  %v2039_v5 = vrot.slane %v2037_v57, 1 }
 0x261   : > { %2939 = vmatmul.mubr.bf16.gmra.mxu0 %v1697_v3  ;;  %v2028_v50 = vor.u32 %v2027_v16, %v2023_v31  ;;  %v1796_v30 = vor.u32 %v1795_v44, %v1791_v24  ;;  %v1434_v3 = vld [vmem:[#allocation2 + $0x30] sm:$0xe]  ;;  %v1817_v24 = vshll.u32 %v5578_v60, 16  ;;  %v1448_v44 = vld [vmem:[#allocation2 + $0x60] sm:$0xf] }
 0x262   : > { %3076 = vmatprep.mubr.bf16.mxu0 %v2021_v41  ;;  %v2040_v15 = vor.u32 %v2039_v5, %v2035_v56  ;;  %v3818_v10 = vcombine.low %v1434_v3, %v5574_v55  ;;  %v1435_v31 = vld [vmem:[#allocation2 + $0x54] sm:$0xe]  ;;  %v5676_v41 = vld [vmem:[#allocation2 + $0x68] ss:$0 sps:$4 sm:$0x11]  }
 0x263   : > { %v2033_v58 = vsel %vm1544_vm9, %v2028_v50, %v2032_v47  ;;  %v1801_v13 = vsel %vm1544_vm9, %v1796_v30, %v1800_v53  ;;  %v1819_v50 = vrot.slane %v1817_v24, 1  ;;  %v1822_v30 = vshll.u32 %v4711_v19, 16  ;;  %v1450_v53 = vld [vmem:[#allocation2 + $0x6c] sm:$0xf]  ;;  %v1452_v19 = vld [vmem:[#allocation2 + $0x78] sm:$0xf] }
 0x264   : > { %v2045_v25 = vsel %vm1544_vm9, %v2040_v15, %v2044_v6  ;;  %v1915_v36 = vrot.slane %v3818_v10, 1  ;;  %v3819_v56 = vcombine.low %v1435_v31, %v5582_v62  ;;  %v1829_v62 = vshll.u32 %v5586_v22, 16  ;;  %v5693_v10 = vld [vmem:[#allocation2 + $0x74] ss:$0 sps:$4 sm:$0x11]  }
 0x266   : > { %v1917_v57 = vsel %vm1673_vm10, %v1915_v36, %v1916_v38  ;;  %v1841_v38 = vshll.u32 %v5594_v49, 16 }
 0x267   : > { %2980 = vmatmul.mubr.bf16.vlgmr.msra.gmra.mxu1 %v1789_v35  ;;  %v5671_v35 = vld [vmem:[#allocation2 + $0x64] sm:$0xf] }
 0x268   : > { %4314 = vmatpush3.bf16.msra.mxu1 %v4700_v63  ;;  %2987 = vmatprep.mubr.bf16.mxu1 %v1911_v46  ;;  %v1803_v63 = vshrl.u32 %v5570_v34, 16  ;;  %v1914_v34 = vsel %vm1673_vm10, %v1912_v0, %v1913_v61  ;;  %v5674_v40 = vcombine.low %v1448_v44, %v5671_v35  ;;  %v4715_v46 = vld [vmem:[#allocation2 + $0x5c] ss:$0 sps:$4 sm:$0x11]  }
 0x269   : > { %3077 = vmatmul.mubr.bf16.vlgmr.msra.gmra.mxu0 %v3823_v21  ;;  %4315 = vmatprep.subr.bf16.mxu1 %v4704_v42  ;;  %v1446_v21 = vld [vmem:[#allocation2 + $0x3c] sm:$0xf]  ;;  %v1919_v6 = vrot.slane %v4715_v46, 1  ;;  %v4719_v44 = vld [vmem:[#allocation2 + $0x68] ss:$0 sps:$4 sm:$0x11]  }
 0x26a   : > { %3084 = vmatprep.mubr.bf16.mxu0 %v2033_v58  ;;  %v5659_v17 = vcombine.low %v1446_v21, %v5655_v12  ;;  %v1808_v55 = vor.u32 %v1807_v9, %v1803_v63  ;;  %v2061_v47 = vshll.u32 %v5674_v40, 16  ;;  %v2066_v58 = vshll.u32 %v5676_v41, 16  ;;  %v1436_v63 = vld [vmem:[#allocation2 + $0x60] sm:$0xe] }
 0x26b   : > { %v2059_v61 = vshrl.u32 %v5674_v40, 16  ;;  %v1824_v21 = vrot.slane %v1822_v30, 1  ;;  %v1918_v9 = vrot.slane %v3819_v56, 1  ;;  %v3820_v24 = vcombine.low %v1436_v63, %v5590_v39  ;;  %v1454_v56 = vld [vmem:[#allocation2 + $0x84] sm:$0xf] }
 0x26c   : > { %4316 = vmatpush3.bf16.msra.mxu1 %v4704_v42  ;;  %v2047_v26 = vshrl.u32 %v5659_v17, 16  ;;  %v2049_v27 = vshll.u32 %v5659_v17, 16  ;;  %v1815_v42 = vshrl.u32 %v5578_v60, 16  ;;  %v1813_v54 = vsel %vm1544_vm9, %v1808_v55, %v1812_v32  ;;  %v5684_v60 = vld [vmem:[#allocation2 + $0x70] sm:$0xf] }
 0x26d   : > { %4317 = vmatprep.subr.bf16.mxu1 %v4708_v59  ;;  %v5689_v3 = vcombine.low %v1450_v53, %v5684_v60  ;;  %v1846_v53 = vshll.u32 %v4719_v44, 16  ;;  %v4723_v63 = vld [vmem:[#allocation2 + $0x74] ss:$0 sps:$4 sm:$0x11]  }
 0x26e   : > { %v2051_v33 = vrot.slane %v2049_v27, 1  ;;  %v1820_v5 = vor.u32 %v1819_v50, %v1815_v42  ;;  %v1834_v27 = vshll.u32 %v4715_v46, 16  ;;  %v1465_v46 = vld [vmem:[#allocation2 + $0x24] sm:$0xe] }
 0x26f   : > { %2988 = vmatmul.mubr.bf16.gmra.mxu1 %v1801_v13  ;;  %v2068_v13 = vrot.slane %v2066_v58, 1  ;;  %v2071_v31 = vshrl.u32 %v5689_v3, 16  ;;  %v5710_v50 = vld [vmem:[#allocation2 + $0x80] ss:$0 sps:$4 sm:$0x11]   ;;  %v2142_v58 = vrot.slane %v5633_v29, 1 }
 0x270   : > { %2995 = vmatprep.mubr.bf16.mxu1 %v1914_v34  ;;  %4318 = vmatpush3.bf16.msra.mxu1 %v4708_v59  ;;  %v2052_v16 = vor.u32 %v2051_v33, %v2047_v26  ;;  %v2063_v59 = vrot.slane %v2061_v47, 1  ;;  %v2073_v34 = vshll.u32 %v5689_v3, 16  ;;  %v1831_v26 = vrot.slane %v1829_v62, 1 }
 0x271   : > { %3085 = vmatmul.mubr.bf16.gmra.mxu0 %v5630_v8  ;;  %4319 = vmatprep.subr.bf16.mxu1 %v4712_v23  ;;  %v2056_v8 = vrot.slane %v2054_v28, 1  ;;  %v1920_v28 = vsel %vm1673_vm10, %v1918_v9, %v1919_v6  ;;  %v2078_v33 = vshll.u32 %v5693_v10, 16  ;;  %v1836_v42 = vrot.slane %v1834_v27, 1 }
 0x272   : > { %3092 = vmatprep.mubr.bf16.mxu0 %v2045_v25  ;;  %v2064_v15 = vor.u32 %v2063_v59, %v2059_v61  ;;  %v1827_v25 = vshrl.u32 %v5586_v22, 16  ;;  %v2075_v32 = vrot.slane %v2073_v34, 1  ;;  %v4728_v22 = vld [vmem:[#allocation11 + $0x200] sm:$0xff]   ;;  %v1839_v59 = vshrl.u32 %v5594_v49, 16 }
 0x273   : > { %v2057_v0 = vsel %vm1544_vm9, %v2052_v16, %v2056_v8  ;;  %v1437_v16 = vld [vmem:[#allocation2 + $0x6c] sm:$0xe]  ;;  %v1921_v8 = vrot.slane %v3820_v24, 1 }
 0x274   : > { %4320 = vmatpush3.bf16.msra.mxu1 %v4712_v23  ;;  %v5696_v23 = vld [vmem:[#allocation2 + $0x7c] sm:$0xf]  ;;  %v2069_v55 = vsel %vm1544_vm9, %v2064_v15, %v2068_v13  ;;  %v1832_v39 = vor.u32 %v1831_v26, %v1827_v25  ;;  %v2076_v47 = vor.u32 %v2075_v32, %v2071_v31  ;;  %v1848_v13 = vrot.slane %v1846_v53, 1  ;;  %v5731_v25 = vld [vmem:[#allocation2 + $0x8c] ss:$0 sps:$4 sm:$0x11]  }
 0x275   : > { %4321 = vmatprep.subr.bf16.mxu1 %v4716_v43  ;;  %v5706_v36 = vcombine.low %v1452_v19, %v5696_v23  ;;  %v1851_v19 = vshrl.u32 %v5602_v11, 16  ;;  %v4727_v31 = vld [vmem:[#allocation2 + $0x80] ss:$0 sps:$4 sm:$0x11]  }
 0x276   : > { %v1837_v61 = vsel %vm1544_vm9, %v1832_v39, %v1836_v42  ;;  %v1865_v39 = vshll.u32 %v5613_v51, 16 }
 0x277   : > { %2996 = vmatmul.mubr.bf16.gmra.mxu1 %v1813_v54  ;;  %v2080_v54 = vrot.slane %v2078_v33, 1  ;;  %v2085_v30 = vshll.u32 %v5706_v36, 16 }
 0x278   : > { %3003 = vmatprep.mubr.bf16.mxu1 %v1917_v57  ;;  %4322 = vmatpush3.bf16.msra.mxu1 %v4716_v43  ;;  %v1922_v43 = vrot.slane %v4719_v44, 1  ;;  %v5713_v57 = vld [vmem:[#allocation2 + $0x88] sm:$0xf]  ;;  %v1858_v44 = vshll.u32 %v4723_v63, 16  ;;  %v1867_v53 = vrot.slane %v1865_v39, 1 }
 0x279   : > { %3093 = vmatmul.mubr.bf16.gmra.mxu0 %v5645_v48  ;;  %4323 = vmatprep.subr.bf16.mxu1 %v4720_v1  ;;  %v1825_v48 = vsel %vm1544_vm9, %v1820_v5, %v1824_v21  ;;  %v2083_v5 = vshrl.u32 %v5706_v36, 16  ;;  %v2081_v9 = vsel %vm1544_vm9, %v2076_v47, %v2080_v54  ;;  %v2087_v6 = vrot.slane %v2085_v30, 1  ;;  %v1464_v47 = vld [vmem:[#allocation2 + $0x18] sm:$0xe] }
 0x27a   : > { %3100 = vmatprep.mubr.bf16.mxu0 %v2057_v0  ;;  %v3821_v0 = vcombine.low %v1437_v16, %v5598_v4  ;;  %v1923_v62 = vsel %vm1673_vm10, %v1921_v8, %v1922_v43  ;;  %v3830_v29 = vcombine.low %v1454_v56, %v5713_v57  ;;  %v1853_v4 = vshll.u32 %v5602_v11, 16 }
 0x27b   : > { %v2088_v26 = vor.u32 %v2087_v6, %v2083_v5  ;;  %v1860_v16 = vrot.slane %v1858_v44, 1  ;;  %v1928_v43 = vrot.slane %v4727_v31, 1  ;;  %v1863_v30 = vshrl.u32 %v5613_v51, 16  ;;  %v4739_v44 = vld [vmem:[#allocation12 + $0x38] sm:$0xff]  }
 0x27c   : > { %4324 = vmatpush3.bf16.msra.mxu1 %v4720_v1  ;;  %v1843_v1 = vrot.slane %v1841_v38, 1  ;;  %v1924_v34 = vrot.slane %v3821_v0, 1  ;;  %v2097_v24 = vshll.u32 %v3830_v29, 16  ;;  %v2102_v38 = vshll.u32 %v5731_v25, 16  ;;  %4345 = vmatprep.subr.bf16.mxu0 %v4739_v44 }
 0x27d   : > { %4325 = vmatprep.subr.bf16.mxu1 %v4724_v14  ;;  %v1870_v56 = vshll.u32 %v4727_v31, 16  ;;  %v1868_v0 = vor.u32 %v1867_v53, %v1863_v30  ;;  %4346 = vmatpush3.bf16.msra.mxu0 %v4739_v44  ;;  %v4746_v53 = vld [vmem:[#allocation12] sm:$0xff]  }
 0x27e   : > { %v1844_v15 = vor.u32 %v1843_v1, %v1839_v59  ;;  %v2099_v11 = vrot.slane %v2097_v24, 1  ;;  %v2139_v1 = vrot.slane %v5622_v7, 1 }
 0x27f   : > { %3004 = vmatmul.mubr.bf16.gmra.mxu1 %v1825_v48  ;;  %v1925_v48 = vrot.slane %v4723_v63, 1 }
 0x280   : > { %3011 = vmatprep.mubr.bf16.mxu1 %v1920_v28  ;;  %4326 = vmatpush3.bf16.msra.mxu1 %v4724_v14  ;;  %v1438_v14 = vld [vmem:[#allocation2 + $0x78] sm:$0xe]  ;;  %v1855_v28 = vrot.slane %v1853_v4, 1 }
 0x281   : > { %3101 = vmatmul.mubr.bf16.gmra.mxu0 %v5659_v17  ;;  %4327 = vmatprep.subr.bf16.mxu1 %v4728_v22  ;;  %v3840_v17 = vcombine.low %v1465_v46, %v5627_v20  ;;  %v2090_v20 = vshll.u32 %v5710_v50, 16  ;;  %v3822_v32 = vcombine.low %v1438_v14, %v5609_v37  ;;  %v2104_v46 = vrot.slane %v2102_v38, 1  ;;  %v1469_v14 = vld [vmem:[#allocation2 + $0x6c] sm:$0xe] }
 0x282   : > { %3108 = vmatprep.mubr.bf16.mxu0 %v2069_v55  ;;  %v1849_v55 = vsel %vm1544_vm9, %v1844_v15, %v1848_v13  ;;  %v1856_v42 = vor.u32 %v1855_v28, %v1851_v19  ;;  %v1470_v15 = vld [vmem:[#allocation2 + $0x78] sm:$0xe] }
 0x283   : > { %v2141_v21 = vrot.slane %v3840_v17, 1  ;;  %v2092_v27 = vrot.slane %v2090_v20, 1  ;;  %v1927_v8 = vrot.slane %v3822_v32, 1  ;;  %v3845_v19 = vcombine.low %v1470_v15, %v5696_v23 }
 0x284   : > { %4328 = vmatpush3.bf16.msra.mxu1 %v4728_v22  ;;  %v2095_v22 = vshrl.u32 %v3830_v29, 16  ;;  %v1861_v54 = vsel %vm1544_vm9, %v1856_v42, %v1860_v16  ;;  %v2160_v23 = vrot.slane %v5731_v25, 1  ;;  %v4743_v25 = vld [vmem:[#allocation12 + $0x18] sm:$0xff]   ;;  %v4745_v42 = vld [vmem:[#allocation12 + $0x8] sm:$0xff]  }
 0x285   : > { %v5727_v49 = vsel %vm1673_vm10, %v2141_v21, %v2142_v58  ;;  %v2093_v33 = vsel %vm1544_vm9, %v2088_v26, %v2092_v27  ;;  %v1929_v17 = vsel %vm1673_vm10, %v1927_v8, %v1928_v43  ;;  %v3839_v58 = vcombine.low %v1464_v47, %v5617_v2  ;;  %v1467_v21 = vld [vmem:[#allocation2 + $0x3c] sm:$0xe]  ;;  %v1471_v26 = vld [vmem:[#allocation2 + $0x84] sm:$0xe]  ;;  %4377 = vmatprep.subr.bf16.mxu1 %v4739_v44 }
 0x286   : > { %v2100_v37 = vor.u32 %v2099_v11, %v2095_v22  ;;  %v3842_v6 = vcombine.low %v1467_v21, %v5655_v12  ;;  %v3846_v27 = vcombine.low %v1471_v26, %v5713_v57  ;;  %v4742_v57 = vld [vmem:[#allocation12 + $0x20] sm:$0xff]  }
 0x287   : > { %3012 = vmatmul.mubr.bf16.gmra.mxu1 %v1837_v61  ;;  %v1872_v61 = vrot.slane %v1870_v56, 1  ;;  %v2138_v59 = vrot.slane %v3839_v58, 1 }
 0x288   : > { %3019 = vmatprep.mubr.bf16.mxu1 %v1923_v62  ;;  %v1466_v62 = vld [vmem:[#allocation2 + $0x30] sm:$0xe]  ;;  %v2147_v4 = vrot.slane %v3842_v6, 1 }
 0x289   : > { %3109 = vmatmul.mubr.bf16.gmra.mxu0 %v5674_v40  ;;  %v1926_v40 = vsel %vm1673_vm10, %v1924_v34, %v1925_v48  ;;  %v1873_v51 = vsel %vm1544_vm9, %v1868_v0, %v1872_v61  ;;  %v2140_v63 = vsel %vm1673_vm10, %v2138_v59, %v2139_v1  ;;  %v3841_v5 = vcombine.low %v1466_v62, %v5641_v45 }
 0x28a   : > { %3116 = vmatprep.mubr.bf16.mxu0 %v2081_v9  ;;  %v1468_v9 = vld [vmem:[#allocation2 + $0x60] sm:$0xe]  ;;  %v2148_v45 = vrot.slane %v5661_v18, 1  ;;  %v3844_v34 = vcombine.low %v1469_v14, %v5684_v60  ;;  %v2156_v48 = vrot.slane %v3845_v19, 1  ;;  %v2157_v18 = vrot.slane %v5710_v50, 1  ;;  %v4741_v50 = vld [vmem:[#allocation12 + $0x28] sm:$0xff]  }
 0x28b   : > { %v2144_v2 = vrot.slane %v3841_v5, 1  ;;  %v3843_v7 = vcombine.low %v1468_v9, %v5671_v35  ;;  %v2159_v60 = vrot.slane %v3846_v27, 1 }
 0x28c   : > { %v2153_v35 = vrot.slane %v3844_v34, 1  ;;  %v2158_v24 = vsel %vm1673_vm10, %v2156_v48, %v2157_v18 }
 0x28d   : > { %v2150_v13 = vrot.slane %v3843_v7, 1  ;;  %v2161_v28 = vsel %vm1673_vm10, %v2159_v60, %v2160_v23 }
 0x28f   : > { %3020 = vmatmul.mubr.bf16.gmra.mxu1 %v1849_v55  ;;  %v4744_v55 = vld [vmem:[#allocation12 + $0x10] sm:$0xff]  }
 0x290   : > { %3027 = vmatprep.mubr.bf16.mxu1 %v1926_v40  ;;  %v5771_v40 = vld [vmem:[%s6141_s5] ss:$0 sm:$0xff] }
 0x291   : > { %3117 = vmatmul.mubr.bf16.gmra.mxu0 %v5689_v3  ;;  %v2105_v3 = vsel %vm1544_vm9, %v2100_v37, %v2104_v46  ;;  %6142 = vst [vmem:[#allocation45_spill] sm:$0xff] %v5771_v40 }
 0x292   : > { %3124 = vmatprep.mubr.bf16.mxu0 %v2093_v33 }
 0x297   : > { %3028 = vmatmul.mubr.bf16.gmra.mxu1 %v1861_v54 }
 0x298   : > { %3035 = vmatprep.mubr.bf16.mxu1 %v1929_v17 }
 0x299   : > { %3125 = vmatmul.mubr.bf16.gmra.mxu0 %v5706_v36  ;;  %v2145_v36 = vrot.slane %v5648_v52, 1  ;;  %v2149_v52 = vsel %vm1673_vm10, %v2147_v4, %v2148_v45 }
 0x29a   : > { %3132 = vmatprep.mubr.bf16.mxu0 %v2105_v3 }
 0x29b   : > { %v2146_v20 = vsel %vm1673_vm10, %v2144_v2, %v2145_v36 }
 0x29f   : > { %3036 = vmatmul.mubr.bf16.gmra.mxu1 %v1873_v51 }
 0x2a0   : > { %4329 = vmatprep.mubr.bf16.mxu1 %v2140_v63 }
 0x2a1   : > { %3133 = vmatmul.mubr.bf16.gmra.mxu0 %v3830_v29  ;;  %v2151_v29 = vrot.slane %v5676_v41, 1 }
 0x2a3   : > { %v2152_v12 = vsel %vm1673_vm10, %v2150_v13, %v2151_v29 }
 0x2a7   : > { %4330 = vmatmul.mubr.bf16.vlgmr.msra.gmra.mxu1 %v5727_v49  ;;  %v2154_v49 = vrot.slane %v5693_v10, 1  ;;  %v4740_v10 = vld [vmem:[#allocation12 + $0x30] sm:$0xff]  }
 0x2a8   : > { %4333 = vmatprep.mubr.bf16.mxu1 %v2146_v20  ;;  %4385 = vmatpush3.bf16.msra.mxu1 %v4739_v44 }
 0x2a9   : > { %v2155_v41 = vsel %vm1673_vm10, %v2153_v35, %v2154_v49  ;;  %4347 = vmatprep.subr.bf16.mxu0 %v4740_v10  ;;  %4378 = vmatprep.subr.bf16.mxu1 %v4740_v10 }
 0x2aa   : > { %4348 = vmatpush3.bf16.msra.mxu0 %v4740_v10 }
 0x2ab   : > { %4349 = vmatprep.subr.bf16.mxu0 %v4741_v50 }
 0x2ac   : > { %4386 = vmatpush3.bf16.msra.mxu1 %v4740_v10 }
 0x2ad   : > { %4379 = vmatprep.subr.bf16.mxu1 %v4741_v50 }
 0x2ae   : > { %4350 = vmatpush3.bf16.msra.mxu0 %v4741_v50 }
 0x2af   : > { %4334 = vmatmul.mubr.bf16.gmra.mxu1 %v2149_v52  ;;  %4351 = vmatprep.subr.bf16.mxu0 %v4742_v57 }
 0x2b0   : > { %4337 = vmatprep.mubr.bf16.mxu1 %v2152_v12  ;;  %4387 = vmatpush3.bf16.msra.mxu1 %v4741_v50 }
 0x2b1   : > { %4380 = vmatprep.subr.bf16.mxu1 %v4742_v57 }
 0x2b2   : > { %4352 = vmatpush3.bf16.msra.mxu0 %v4742_v57 }
 0x2b3   : > { %4353 = vmatprep.subr.bf16.mxu0 %v4743_v25 }
 0x2b4   : > { %4388 = vmatpush3.bf16.msra.mxu1 %v4742_v57 }
 0x2b5   : > { %4381 = vmatprep.subr.bf16.mxu1 %v4743_v25 }
 0x2b6   : > { %4354 = vmatpush3.bf16.msra.mxu0 %v4743_v25 }
 0x2b7   : > { %4338 = vmatmul.mubr.bf16.gmra.mxu1 %v2155_v41  ;;  %4355 = vmatprep.subr.bf16.mxu0 %v4744_v55 }
 0x2b8   : > { %4341 = vmatprep.mubr.bf16.mxu1 %v2158_v24  ;;  %4389 = vmatpush3.bf16.msra.mxu1 %v4743_v25 }
 0x2b9   : > { %4382 = vmatprep.subr.bf16.mxu1 %v4744_v55 }
 0x2ba   : > { %4356 = vmatpush3.bf16.msra.mxu0 %v4744_v55 }
 0x2bb   : > { %4357 = vmatprep.subr.bf16.mxu0 %v4745_v42 }
 0x2bc   : > { %4390 = vmatpush3.bf16.msra.mxu1 %v4744_v55 }
 0x2bd   : > { %4383 = vmatprep.subr.bf16.mxu1 %v4745_v42 }
 0x2be   : > { %4358 = vmatpush3.bf16.msra.mxu0 %v4745_v42 }
 0x2bf   : > { %4342 = vmatmul.mubr.bf16.gmra.mxu1 %v2161_v28  ;;  %4359 = vmatprep.subr.bf16.mxu0 %v4746_v53 }
 0x2c0   : > { %4391 = vmatpush3.bf16.msra.mxu1 %v4745_v42 }
 0x2c1   : > { %4384 = vmatprep.subr.bf16.mxu1 %v4746_v53 }
 0x2c2   : > { %4360 = vmatpush3.bf16.msra.mxu0 %v4746_v53 }
 0x2c4   : > { %4392 = vmatpush3.bf16.msra.mxu1 %v4746_v53 }
 0x2e7   : > { %v4001_v31 = vpop.f32.mrf.mxu1 }
 0x2e9   : > { %v4065_v32 = vpop.f32.mrf.mxu0  ;;  %v4002_v33 = vpop.f32.mrf.mxu1 }
 0x2ea   : > { %v4003_v22 = vadd.f32 %v4002_v33, %v4001_v31 }
 0x2eb   : > { %v4066_v11 = vpop.f32.mrf.mxu0  ;;  %v4004_v38 = vpop.f32.mrf.mxu1 }
 0x2ec   : > { %v4067_v39 = vadd.f32 %v4066_v11, %v4065_v32  ;;  %v2788_v16 = vadd.f32 %v4003_v22, %v5771_v40 }
 0x2ed   : > { %v4068_v8 = vpop.f32.mrf.mxu0  ;;  %v4005_v43 = vpop.f32.mrf.mxu1 }
 0x2ee   : > { %v5774_v37 = vadd.f32 %v4067_v39, %v2788_v16  ;;  %v4006_v46 = vadd.f32 %v4005_v43, %v4004_v38 }
 0x2ef   : > { %v4069_v47 = vpop.f32.mrf.mxu0  ;;  %v4007_v54 = vpop.f32.mrf.mxu1 }
 0x2f0   : > { %v4070_v30 = vadd.f32 %v4069_v47, %v4068_v8  ;;  %v2791_v56 = vadd.f32 %v4006_v46, %v5771_v40 }
 0x2f1   : > { %v4071_v17 = vpop.f32.mrf.mxu0  ;;  %v4008_v58 = vpop.f32.mrf.mxu1 }
 0x2f2   : > { %v5777_v3 = vadd.f32 %v4070_v30, %v2791_v56  ;;  %v4009_v0 = vadd.f32 %v4008_v58, %v4007_v54 }
 0x2f3   : > { %v4072_v61 = vpop.f32.mrf.mxu0  ;;  %v4010_v59 = vpop.f32.mrf.mxu1 }
 0x2f4   : > { %v4073_v1 = vadd.f32 %v4072_v61, %v4071_v17  ;;  %v2796_v62 = vadd.f32 %v4009_v0, %v5771_v40 }
 0x2f5   : > { %v4074_v51 = vpop.f32.mrf.mxu0  ;;  %v4011_v63 = vpop.f32.mrf.mxu1 }
 0x2f6   : > { %v5780_v5 = vadd.f32 %v4073_v1, %v2796_v62  ;;  %v4012_v2 = vadd.f32 %v4011_v63, %v4010_v59 }
 0x2f7   : > { %v4075_v36 = vpop.f32.mrf.mxu0  ;;  %v4013_v21 = vpop.f32.mrf.mxu1 }
 0x2f8   : > { %v4076_v9 = vadd.f32 %v4075_v36, %v4074_v51  ;;  %v2799_v6 = vadd.f32 %v4012_v2, %v5771_v40 }
 0x2f9   : > { %v4077_v20 = vpop.f32.mrf.mxu0  ;;  %v4014_v7 = vpop.f32.mrf.mxu1 }
 0x2fa   : > { %v5783_v4 = vadd.f32 %v4076_v9, %v2799_v6  ;;  %v4015_v45 = vadd.f32 %v4014_v7, %v4013_v21 }
 0x2fb   : > { %v4078_v13 = vpop.f32.mrf.mxu0  ;;  %v4016_v29 = vpop.f32.mrf.mxu1 }
 0x2fc   : > { %v4079_v14 = vadd.f32 %v4078_v13, %v4077_v20  ;;  %v2804_v15 = vadd.f32 %v4015_v45, %v5771_v40 }
 0x2fd   : > { %v4080_v52 = vpop.f32.mrf.mxu0  ;;  %v4017_v34 = vpop.f32.mrf.mxu1 }
 0x2fe   : > { %v5786_v12 = vadd.f32 %v4079_v14, %v2804_v15  ;;  %v4018_v19 = vadd.f32 %v4017_v34, %v4016_v29 }
 0x2ff   : > { %v4081_v35 = vpop.f32.mrf.mxu0  ;;  %v4019_v49 = vpop.f32.mrf.mxu1 }
 0x300   : > { %v4082_v48 = vadd.f32 %v4081_v35, %v4080_v52  ;;  %v2807_v18 = vadd.f32 %v4018_v19, %v5771_v40 }
 0x301   : > { %v4083_v26 = vpop.f32.mrf.mxu0  ;;  %v4020_v41 = vpop.f32.mrf.mxu1 }
 0x302   : > { %v5789_v27 = vadd.f32 %v4082_v48, %v2807_v18  ;;  %v4021_v24 = vadd.f32 %v4020_v41, %v4019_v49 }
 0x303   : > { %v4084_v60 = vpop.f32.mrf.mxu0  ;;  %v4022_v23 = vpop.f32.mrf.mxu1 }
 0x304   : > { %v4085_v28 = vadd.f32 %v4084_v60, %v4083_v26  ;;  %v2812_v44 = vadd.f32 %v4021_v24, %v5771_v40 }
 0x305   : > { %v4086_v10 = vpop.f32.mrf.mxu0  ;;  %v4023_v50 = vpop.f32.mrf.mxu1 }
 0x306   : > { %v5792_v57 = vadd.f32 %v4085_v28, %v2812_v44  ;;  %v4024_v25 = vadd.f32 %v4023_v50, %v4022_v23 }
 0x307   : > { %v4087_v31 = vpop.f32.mrf.mxu0  ;;  %v4025_v55 = vpop.f32.mrf.mxu1 }
 0x308   : > { %v4088_v32 = vadd.f32 %v4087_v31, %v4086_v10  ;;  %v2815_v33 = vadd.f32 %v4024_v25, %v5771_v40 }
 0x309   : > { %v4089_v22 = vpop.f32.mrf.mxu0  ;;  %v4026_v11 = vpop.f32.mrf.mxu1 }
 0x30a   : > { %v5795_v38 = vadd.f32 %v4088_v32, %v2815_v33  ;;  %v4027_v39 = vadd.f32 %v4026_v11, %v4025_v55 }
 0x30b   : > { %v4090_v42 = vpop.f32.mrf.mxu0  ;;  %v4028_v16 = vpop.f32.mrf.mxu1 }
 0x30c   : > { %v4091_v8 = vadd.f32 %v4090_v42, %v4089_v22  ;;  %v2820_v43 = vadd.f32 %v4027_v39, %v5771_v40 }
 0x30d   : > { %v4092_v46 = vpop.f32.mrf.mxu0  ;;  %v4029_v47 = vpop.f32.mrf.mxu1 }
 0x30e   : > { %v5798_v54 = vadd.f32 %v4091_v8, %v2820_v43  ;;  %v4030_v30 = vadd.f32 %v4029_v47, %v4028_v16 }
 0x30f   : > { %v4093_v53 = vpop.f32.mrf.mxu0  ;;  %v4031_v56 = vpop.f32.mrf.mxu1 }
 0x310   : > { %6143 = vst [vmem:[#allocation46_spill] sm:$0xff] %v5798_v54  ;;  %v4094_v17 = vadd.f32 %v4093_v53, %v4092_v46  ;;  %v2823_v58 = vadd.f32 %v4030_v30, %v5771_v40 }
 0x311   : > { %v4095_v0 = vpop.f32.mrf.mxu0  ;;  %v4032_v61 = vpop.f32.mrf.mxu1 }
 0x312   : > { %v5801_v59 = vadd.f32 %v4094_v17, %v2823_v58  ;;  %v4033_v1 = vadd.f32 %v4032_v61, %v4031_v56 }
 0x313   : > { %v4096_v62 = vpop.f32.mrf.mxu0  ;;  %v4034_v51 = vpop.f32.mrf.mxu1 }
 0x314   : > { %6144 = vst [vmem:[#allocation47_spill] sm:$0xff] %v5801_v59  ;;  %v4097_v63 = vadd.f32 %v4096_v62, %v4095_v0  ;;  %v2828_v2 = vadd.f32 %v4033_v1, %v5771_v40 }
 0x315   : > { %v4098_v36 = vpop.f32.mrf.mxu0  ;;  %v4035_v21 = vpop.f32.mrf.mxu1 }
 0x316   : > { %v5804_v9 = vadd.f32 %v4097_v63, %v2828_v2  ;;  %v4036_v6 = vadd.f32 %v4035_v21, %v4034_v51 }
 0x317   : > { %v4099_v20 = vpop.f32.mrf.mxu0  ;;  %v4037_v7 = vpop.f32.mrf.mxu1 }
 0x318   : > { %v4100_v45 = vadd.f32 %v4099_v20, %v4098_v36  ;;  %v2831_v13 = vadd.f32 %v4036_v6, %v5771_v40 }
 0x319   : > { %v4101_v29 = vpop.f32.mrf.mxu0  ;;  %v4038_v14 = vpop.f32.mrf.mxu1 }
 0x31a   : > { %v5807_v15 = vadd.f32 %v4100_v45, %v2831_v13  ;;  %v4039_v52 = vadd.f32 %v4038_v14, %v4037_v7 }
 0x31b   : > { %v4102_v34 = vpop.f32.mrf.mxu0  ;;  %v4040_v19 = vpop.f32.mrf.mxu1 }
 0x31c   : > { %6145 = vst [vmem:[#allocation48_spill] sm:$0xff] %v5807_v15  ;;  %v4103_v35 = vadd.f32 %v4102_v34, %v4101_v29  ;;  %v2836_v49 = vadd.f32 %v4039_v52, %v5771_v40 }
 0x31d   : > { %v4104_v48 = vpop.f32.mrf.mxu0  ;;  %v4041_v18 = vpop.f32.mrf.mxu1 }
 0x31e   : > { %v5810_v26 = vadd.f32 %v4103_v35, %v2836_v49  ;;  %v4042_v41 = vadd.f32 %v4041_v18, %v4040_v19 }
 0x31f   : > { %v4105_v24 = vpop.f32.mrf.mxu0  ;;  %v4043_v60 = vpop.f32.mrf.mxu1 }
 0x320   : > { %6146 = vst [vmem:[#allocation49_spill] sm:$0xff] %v5810_v26  ;;  %v4106_v23 = vadd.f32 %v4105_v24, %v4104_v48  ;;  %v2839_v28 = vadd.f32 %v4042_v41, %v5771_v40 }
 0x321   : > { %v4107_v44 = vpop.f32.mrf.mxu0  ;;  %v4044_v10 = vpop.f32.mrf.mxu1 }
 0x322   : > { %v5813_v50 = vadd.f32 %v4106_v23, %v2839_v28  ;;  %v4045_v25 = vadd.f32 %v4044_v10, %v4043_v60 }
 0x323   : > { %v4108_v31 = vpop.f32.mrf.mxu0  ;;  %v4046_v55 = vpop.f32.mrf.mxu1 }
 0x324   : > { %6147 = vst [vmem:[#allocation50_spill] sm:$0xff] %v5813_v50  ;;  %v4109_v32 = vadd.f32 %v4108_v31, %v4107_v44  ;;  %v2844_v33 = vadd.f32 %v4045_v25, %v5771_v40 }
 0x325   : > { %v5816_v22 = vpop.f32.mrf.mxu0  ;;  %v4047_v11 = vpop.f32.mrf.mxu1 }
 0x326   : > { %v5818_v39 = vadd.f32 %v4109_v32, %v2844_v33  ;;  %v5820_v42 = vadd.f32 %v4047_v11, %v4046_v55 }
 0x327   : > { %v5822_v16 = vpop.f32.mrf.mxu0  ;;  %v4129_v8 = vpop.f32.mrf.mxu1 }
 0x328   : > { %6148 = vst [vmem:[#allocation51_spill] sm:$0xff] %v5818_v39  ;;  %6149 = vst [vmem:[#allocation52_spill] sm:$0xff] %v5820_v42 }
 0x329   : > { %v5824_v43 = vpop.f32.mrf.mxu0  ;;  %v4130_v46 = vpop.f32.mrf.mxu1 }
 0x32a   : > { %v4131_v47 = vadd.f32 %v4130_v46, %v4129_v8 }
 0x32b   : > { %v4194_v30 = vpop.f32.mrf.mxu0  ;;  %v4132_v53 = vpop.f32.mrf.mxu1 }
 0x32c   : > { %v5827_v56 = vadd.f32 %v4131_v47, %v5774_v37 }
 0x32d   : > { %v5829_v17 = vpop.f32.mrf.mxu0  ;;  %v4133_v58 = vpop.f32.mrf.mxu1 }
 0x32f   : > { %v4197_v0 = vpop.f32.mrf.mxu0  ;;  %v4135_v61 = vpop.f32.mrf.mxu1 }
 0x331   : > { %v4199_v1 = vpop.f32.mrf.mxu0  ;;  %v4136_v62 = vpop.f32.mrf.mxu1 }
 0x332   : > { %v4137_v40 = vadd.f32 %v4136_v62, %v4135_v61  ;;  %v4198_v62 = vadd.f32 %v4197_v0, %v5829_v17 }
 0x333   : > { %v4200_v51 = vpop.f32.mrf.mxu0  ;;  %v4138_v63 = vpop.f32.mrf.mxu1 }
 0x335   : > { %v4202_v2 = vpop.f32.mrf.mxu0  ;;  %v4139_v36 = vpop.f32.mrf.mxu1 }
 0x337   : > { %v4203_v21 = vpop.f32.mrf.mxu0  ;;  %v4141_v6 = vpop.f32.mrf.mxu1 }
 0x339   : > { %v5831_v20 = vpop.f32.mrf.mxu0  ;;  %v4142_v7 = vpop.f32.mrf.mxu1 }
 0x33b   : > { %v5833_v45 = vpop.f32.mrf.mxu0  ;;  %v4144_v37 = vpop.f32.mrf.mxu1 }
 0x33d   : > { %v5835_v13 = vpop.f32.mrf.mxu0  ;;  %v4145_v29 = vpop.f32.mrf.mxu1 }
 0x33f   : > { %v5837_v14 = vpop.f32.mrf.mxu0  ;;  %v4147_v52 = vpop.f32.mrf.mxu1 }
 0x341   : > { %v4211_v34 = vpop.f32.mrf.mxu0  ;;  %v4148_v19 = vpop.f32.mrf.mxu1 }
 0x343   : > { %v4212_v35 = vpop.f32.mrf.mxu0  ;;  %v4150_v49 = vpop.f32.mrf.mxu1 }
 0x345   : > { %v4214_v48 = vpop.f32.mrf.mxu0  ;;  %v4151_v18 = vpop.f32.mrf.mxu1 }
 0x347   : > { %v4215_v41 = vpop.f32.mrf.mxu0  ;;  %v5839_v24 = vpop.f32.mrf.mxu1 }
 0x349   : > { %v5841_v60 = vpop.f32.mrf.mxu0  ;;  %v5843_v23 = vpop.f32.mrf.mxu1 }
 0x34a   : > { %6150 = vst [vmem:[#allocation53_spill] sm:$0xff] %v5841_v60 }
 0x34b   : > { %v5845_v28 = vpop.f32.mrf.mxu0  ;;  %v5847_v44 = vpop.f32.mrf.mxu1 }
 0x34c   : > { %6151 = vst [vmem:[#allocation54_spill] sm:$0xff] %v5845_v28  ;;  %v4140_v28 = vadd.f32 %v4139_v36, %v4138_v63  ;;  %v4143_v36 = vadd.f32 %v4142_v7, %v4141_v6 }
 0x34d   : > { %v5849_v10 = vpop.f32.mrf.mxu0  ;;  %v5851_v25 = vpop.f32.mrf.mxu1 }
 0x34e   : > { %6152 = vst [vmem:[#allocation55_spill] sm:$0xff] %v5849_v10  ;;  %v2998_v0 = vadd.f32 %v4143_v36, %v5786_v12 }
 0x34f   : > { %v5853_v31 = vpop.f32.mrf.mxu0  ;;  %v4159_v55 = vpop.f32.mrf.mxu1 }
 0x350   : > { %6153 = vst [vmem:[#allocation56_spill] sm:$0xff] %v5853_v31 }
 0x351   : > { %v5855_v32 = vpop.f32.mrf.mxu0  ;;  %v4160_v33 = vpop.f32.mrf.mxu1 }
 0x353   : > { %v5857_v11 = vpop.f32.mrf.mxu0  ;;  %v4162_v8 = vpop.f32.mrf.mxu1 }
 0x355   : > { %v4163_v46 = vpop.f32.mrf.mxu1  ;;  %v5859_v47 = vpop.f32.mrf.mxu0 }
 0x356   : > { %6154 = vst [vmem:[#allocation57_spill] sm:$0xff] %v5859_v47  ;;  %v4134_v47 = vadd.f32 %v4133_v58, %v4132_v53  ;;  %v4149_v53 = vadd.f32 %v4148_v19, %v4147_v52 }
 0x357   : > { %v5861_v50 = vpop.f32.mrf.mxu1  ;;  %v5865_v39 = vpop.f32.mrf.mxu0 }
 0x358   : > { %6155 = vst [vmem:[#allocation58_spill] sm:$0xff] %v5861_v50  ;;  %6157 = vst [vmem:[#allocation60_spill] sm:$0xff] %v5865_v39  ;;  %v4201_v39 = vadd.f32 %v4200_v51, %v4199_v1  ;;  %v2985_v61 = vadd.f32 %v4134_v47, %v5777_v3  ;;  %v4213_v3 = vadd.f32 %v4212_v35, %v4211_v34 }
 0x359   : > { %v5863_v26 = vpop.f32.mrf.mxu1  ;;  %v5871_v31 = vpop.f32.mrf.mxu0  ;;  %v4161_v34 = vadd.f32 %v4160_v33, %v4159_v55 }
 0x35a   : > { %6156 = vst [vmem:[#allocation59_spill] sm:$0xff] %v5863_v26  ;;  %6160 = vst [vmem:[#allocation63_spill] sm:$0xff] %v5871_v31  ;;  %v2990_v26 = vadd.f32 %v4137_v40, %v5780_v5  ;;  %v2993_v31 = vadd.f32 %v4140_v28, %v5783_v4  ;;  %v4152_v40 = vadd.f32 %v4151_v18, %v4150_v49 }
 0x35b   : > { %v5867_v10 = vpop.f32.mrf.mxu1  ;;  %v5877_v60 = vpop.f32.mrf.mxu0  ;;  %v4146_v4 = vadd.f32 %v4145_v29, %v4144_v37 }
 0x35c   : > { %6158 = vst [vmem:[#allocation61_spill] sm:$0xff] %v5867_v10  ;;  %6162 = vst [vmem:[#allocation65_spill] sm:$0xff] %v5877_v60  ;;  %v4204_v10 = vadd.f32 %v4203_v21, %v4202_v2  ;;  %v3087_v58 = vadd.f32 %v4201_v39, %v2990_v26  ;;  %v3082_v2 = vadd.f32 %v4198_v62, %v2985_v61  ;;  %v6164_v61 = vld [vmem:[#allocation53_spill] sm:$0xff]  ;;  %v6165_v62 = vld [vmem:[#allocation54_spill] sm:$0xff] }
 0x35d   : > { %v5869_v59 = vpop.f32.mrf.mxu1  ;;  %v3006_v21 = vadd.f32 %v4149_v53, %v5792_v57  ;;  %v4207_v26 = vadd.f32 %v5833_v45, %v5831_v20  ;;  %v4216_v39 = vadd.f32 %v4215_v41, %v4214_v48  ;;  %v3009_v7 = vadd.f32 %v4152_v40, %v5795_v38  ;;  %v6166_v53 = vld [vmem:[#allocation57_spill] sm:$0xff] }
 0x35e   : > { %6159 = vst [vmem:[#allocation62_spill] sm:$0xff] %v5869_v59  ;;  %v4195_v59 = vadd.f32 %v4194_v30, %v5824_v43  ;;  %v3090_v30 = vadd.f32 %v4204_v10, %v2993_v31  ;;  %v3001_v29 = vadd.f32 %v4146_v4, %v5789_v27  ;;  %v4210_v57 = vadd.f32 %v5837_v14, %v5835_v13 }
 0x35f   : > { %v5873_v42 = vpop.f32.mrf.mxu1  ;;  %v3103_v18 = vadd.f32 %v4213_v3, %v3006_v21  ;;  %v4155_v20 = vadd.f32 %v5843_v23, %v5839_v24  ;;  %v3095_v45 = vadd.f32 %v4207_v26, %v2998_v0  ;;  %v4164_v48 = vadd.f32 %v4163_v46, %v4162_v8  ;;  %v6163_v8 = vld [vmem:[#allocation46_spill] sm:$0xff] }
 0x360   : > { %6161 = vst [vmem:[#allocation64_spill] sm:$0xff] %v5873_v42  ;;  %v5886_v42 = vpop.f32.mrf.mxu0  ;;  %v3079_v43 = vadd.f32 %v4195_v59, %v5827_v56  ;;  %v3106_v31 = vadd.f32 %v4216_v39, %v3009_v7  ;;  %v4158_v27 = vadd.f32 %v5851_v25, %v5847_v44  ;;  %v3022_v13 = vadd.f32 %v4161_v34, %v5804_v9  ;;  %v6167_v44 = vld [vmem:[#allocation60_spill] sm:$0xff]  ;;  %v6175_v7 = vld [vmem:[#allocation58_spill] sm:$0xff] }
 0x361   : > { %v5875_v15 = vpop.f32.mrf.mxu1  ;;  %v4225_v14 = vadd.f32 %v5857_v11, %v5855_v32  ;;  %v3098_v24 = vadd.f32 %v4210_v57, %v3001_v29  ;;  %v4112_v23 = vadd.f32 %v5822_v16, %v5816_v22  ;;  %v3014_v46 = vadd.f32 %v4155_v20, %v6163_v8  ;;  %v6171_v22 = vld [vmem:[#allocation47_spill] sm:$0xff] }
 0x362   : > { %v5890_v5 = vpop.f32.mrf.mxu0  ;;  %v4228_v25 = vadd.f32 %v6167_v44, %v6166_v53  ;;  %v3017_v16 = vadd.f32 %v4158_v27, %v6171_v22 }
 0x363   : > { %v5879_v50 = vpop.f32.mrf.mxu1  ;;  %v3119_v3 = vadd.f32 %v4225_v14, %v3022_v13  ;;  %v6180_v13 = vld [vmem:[#allocation49_spill] sm:$0xff] }
 0x364   : > { %v4235_v52 = vpop.f32.mrf.mxu0 }
 0x365   : > { %v5882_v54 = vpop.f32.mrf.mxu1  ;;  %v6178_v20 = vld [vmem:[#allocation62_spill] sm:$0xff] }
 0x366   : > { %v4236_v41 = vpop.f32.mrf.mxu0  ;;  %v4176_v57 = vadd.f32 %v5882_v54, %v5879_v50  ;;  %v6182_v54 = vld [vmem:[#allocation65_spill] sm:$0xff] }
 0x367   : > { %v4331_v63 = vpop.f32.mrf.mxu1 }
 0x368   : > { %v3184_v1 = vadd.f32 %v4331_v63, %v3087_v58  ;;  %v4219_v63 = vadd.f32 %v6165_v62, %v6164_v61  ;;  %v6168_v58 = vld [vmem:[#allocation48_spill] sm:$0xff]  ;;  %v4238_v11 = vpop.f32.mrf.mxu0  ;;  %v6183_v61 = vld [vmem:[#allocation50_spill] sm:$0xff] }
 0x369   : > { %v3175_v60 = vpop.f32.mrf.mxu1  ;;  %v3025_v32 = vadd.f32 %v4164_v48, %v6168_v58  ;;  %v6179_v48 = vld [vmem:[#allocation51_spill] sm:$0xff] }
 0x36a   : > { %v3176_v28 = vadd.f32 %v3175_v60, %v3079_v43  ;;  %v3240_v59 = vmax.f32 %v3184_v1, 0.0  ;;  %v6169_v43 = vld [vmem:[#allocation45_spill] sm:$0xff]  ;;  %v4239_v34 = vpop.f32.mrf.mxu0 }
 0x36b   : > { %v4332_v51 = vpop.f32.mrf.mxu1 }
 0x36c   : > { %v3187_v17 = vadd.f32 %v4332_v51, %v3090_v30  ;;  %v3238_v35 = vmax.f32 %v3176_v28, 0.0  ;;  %v6170_v30 = vld [vmem:[#allocation52_spill] sm:$0xff]  ;;  %v6172_v51 = vld [vmem:[#allocation55_spill] sm:$0xff] }
 0x36d   : > { %v3178_v6 = vpop.f32.mrf.mxu1  ;;  %v2847_v4 = vadd.f32 %v6170_v30, %v6169_v43 }
 0x36e   : > { %v3241_v56 = vmax.f32 %v3187_v17, 0.0  ;;  %v3179_v37 = vadd.f32 %v3178_v6, %v3082_v2  ;;  %v6173_v2 = vld [vmem:[#allocation56_spill] sm:$0xff] }
 0x36f   : > { %v4335_v19 = vpop.f32.mrf.mxu1  ;;  %v4222_v21 = vadd.f32 %v6173_v2, %v6172_v51  ;;  %v6174_v17 = vld [vmem:[#allocation64_spill] sm:$0xff] }
 0x370   : > { %v3255_v12 = vpack.c.bf16 %v3241_v56, %v3240_v59  ;;  %v3239_v49 = vmax.f32 %v3179_v37, 0.0  ;;  %v3200_v10 = vadd.f32 %v4335_v19, %v3103_v18  ;;  %v4173_v0 = vadd.f32 %v5875_v15, %v6174_v17  ;;  %v6176_v59 = vld [vmem:[#allocation59_spill] sm:$0xff]  ;;  %v6177_v18 = vld [vmem:[#allocation61_spill] sm:$0xff] }
 0x371   : > { %v3191_v38 = vpop.f32.mrf.mxu1  ;;  %v4167_v56 = vadd.f32 %v6176_v59, %v6175_v7  ;;  %v3111_v37 = vadd.f32 %v4219_v63, %v3014_v46  ;;  %v3432_v17 = vld [vmem:[%s5305_s22 + $0x10] sm:$0xff] }
 0x372   : > { %v3254_v60 = vpack.c.bf16 %v3239_v49, %v3238_v35  ;;  %v3192_v33 = vadd.f32 %v3191_v38, %v3095_v45  ;;  %v3244_v36 = vmax.f32 %v3200_v10, 0.0  ;;  %v2944_v49 = vadd.f32 %v4112_v23, %v2847_v4 }
 0x373   : > { %v4336_v55 = vpop.f32.mrf.mxu1  ;;  %v4170_v45 = vadd.f32 %v6178_v20, %v6177_v18  ;;  %v3114_v38 = vadd.f32 %v4222_v21, %v3017_v16  ;;  %v4237_v10 = vadd.f32 %v4236_v41, %v4235_v52  ;;  %v3030_v14 = vadd.f32 %v4167_v56, %v6180_v13  ;;  %v3433_v56 = vld [vmem:[%s5305_s22 + $0x18] sm:$0xff]  ;;  %v3436_v20 = vld [vmem:[%s5305_s22 + $0x30] sm:$0xff] }
 0x374   : > { %v3203_v47 = vadd.f32 %v4336_v55, %v3106_v31  ;;  %4361 = vmatprep.mubr.bf16.mxu0 %v3254_v60  ;;  %v3242_v26 = vmax.f32 %v3192_v33, 0.0  ;;  %v3038_v60 = vadd.f32 %v4173_v0, %v6179_v48  ;;  %v6181_v55 = vld [vmem:[#allocation63_spill] sm:$0xff]  ;;  %v4240_v33 = vadd.f32 %v4239_v34, %v4238_v11 }
 0x375   : > { %v3194_v9 = vpop.f32.mrf.mxu1  ;;  %4362 = vmatmul.mubr.bf16.vlgmr.msra.gmra.mxu0 %v3255_v12  ;;  %v3122_v12 = vadd.f32 %v4228_v25, %v3025_v32  ;;  %v4231_v50 = vadd.f32 %v6182_v54, %v6181_v55  ;;  %v3033_v62 = vadd.f32 %v4170_v45, %v6183_v61  ;;  %v4234_v52 = vadd.f32 %v5890_v5, %v5886_v42  ;;  %v3440_v61 = vld [vmem:[%s5305_s22 + $0x50] sm:$0xff] }
 0x376   : > { %v3245_v40 = vmax.f32 %v3203_v47, 0.0  ;;  %v3195_v1 = vadd.f32 %v3194_v9, %v3098_v24  ;;  %v3041_v24 = vadd.f32 %v4176_v57, %v2944_v49  ;;  %v3135_v25 = vadd.f32 %v4237_v10, %v3038_v60  ;;  %v3434_v60 = vld [vmem:[%s5305_s22 + $0x20] sm:$0xff] }
 0x377   : > { %v4339_v28 = vpop.f32.mrf.mxu1  ;;  %v3127_v11 = vadd.f32 %v4231_v50, %v3030_v14  ;;  %v3130_v30 = vadd.f32 %v4234_v52, %v3033_v62  ;;  %v3437_v14 = vld [vmem:[%s5305_s22 + $0x38] sm:$0xff] }
 0x378   : > { %v3257_v39 = vpack.c.bf16 %v3245_v40, %v3244_v36  ;;  %v3243_v6 = vmax.f32 %v3195_v1, 0.0  ;;  %v3216_v35 = vadd.f32 %v4339_v28, %v3119_v3  ;;  %v3138_v36 = vadd.f32 %v4240_v33, %v3041_v24  ;;  %v5939_v3 = vld [vmem:[%s6184_s23] ss:$0 sm:$0xff] }
 0x379   : > { %v3207_v29 = vpop.f32.mrf.mxu1 }
 0x37a   : > { %v3256_v19 = vpack.c.bf16 %v3243_v6, %v3242_v26  ;;  %v3208_v31 = vadd.f32 %v3207_v29, %v3111_v37  ;;  %v3248_v23 = vmax.f32 %v3216_v35, 0.0 }
 0x37b   : > { %v4340_v15 = vpop.f32.mrf.mxu1 }
 0x37c   : > { %v3219_v27 = vadd.f32 %v4340_v15, %v3122_v12  ;;  %4365 = vmatprep.mubr.bf16.mxu1 %v3256_v19  ;;  %v3246_v63 = vmax.f32 %v3208_v31, 0.0  ;;  %v3431_v19 = vld [vmem:[%s5305_s22 + $0x8] sm:$0xff] }
 0x37d   : > { %v3210_v47 = vpop.f32.mrf.mxu1  ;;  %4366 = vmatmul.mubr.bf16.vlgmr.msra.gmra.mxu1 %v3257_v39  ;;  %v3430_v39 = vld [vmem:[%s5305_s22] sm:$0xff] }
 0x37e   : > { %v3249_v8 = vmax.f32 %v3219_v27, 0.0  ;;  %v3211_v46 = vadd.f32 %v3210_v47, %v3114_v38  ;;  %v3435_v47 = vld [vmem:[%s5305_s22 + $0x28] sm:$0xff] }
 0x37f   : > { %v4343_v41 = vpop.f32.mrf.mxu1 }
 0x380   : > { %v3259_v53 = vpack.c.bf16 %v3249_v8, %v3248_v23  ;;  %v3247_v44 = vmax.f32 %v3211_v46, 0.0  ;;  %v3232_v32 = vadd.f32 %v4343_v41, %v3135_v25 }
 0x381   : > { %v3223_v9 = vpop.f32.mrf.mxu1 }
 0x382   : > { %v3258_v58 = vpack.c.bf16 %v3247_v44, %v3246_v63  ;;  %v3224_v1 = vadd.f32 %v3223_v9, %v3127_v11  ;;  %v3252_v42 = vmax.f32 %v3232_v32, 0.0  ;;  %v3441_v32 = vld [vmem:[%s5305_s22 + $0x58] sm:$0xff] }
 0x383   : > { %v4344_v40 = vpop.f32.mrf.mxu1 }
 0x384   : > { %v3235_v43 = vadd.f32 %v4344_v40, %v3138_v36  ;;  %4369 = vmatprep.mubr.bf16.mxu1 %v3258_v58  ;;  %v3250_v16 = vmax.f32 %v3224_v1, 0.0 }
 0x385   : > { %v3226_v4 = vpop.f32.mrf.mxu1  ;;  %4370 = vmatmul.mubr.bf16.gmra.mxu1 %v3259_v53  ;;  %v3438_v53 = vld [vmem:[%s5305_s22 + $0x40] sm:$0xff] }
 0x386   : > { %v3253_v5 = vmax.f32 %v3235_v43, 0.0  ;;  %v3227_v22 = vadd.f32 %v3226_v4, %v3130_v30  ;;  %v3439_v43 = vld [vmem:[%s5305_s22 + $0x48] sm:$0xff] }
 0x388   : > { %v3261_v51 = vpack.c.bf16 %v3253_v5, %v3252_v42  ;;  %v3251_v2 = vmax.f32 %v3227_v22, 0.0  ;;  %v3444_v22 = vld [vmem:[%s5305_s22 + $0x70] sm:$0xff] }
 0x38a   : > { %v3260_v21 = vpack.c.bf16 %v3251_v2, %v3250_v16 }
 0x38c   : > { %4373 = vmatprep.mubr.bf16.mxu1 %v3260_v21 }
 0x38d   : > { %4374 = vmatmul.mubr.bf16.gmra.mxu1 %v3261_v51 }
 0x435   : > { %v4363_v28 = vpop.f32.mrf.mxu0 }
 0x436   : > { %v3376_v0 = vadd.f32 %v4363_v28, %v5939_v3  ;;  %v3442_v28 = vld [vmem:[%s5305_s22 + $0x60] sm:$0xff] }
 0x437   : > { %v3367_v26 = vpop.f32.mrf.mxu0 }
 0x438   : > { %v3448_v6 = vadd.f32 %v3432_v17, %v3376_v0  ;;  %v3368_v7 = vadd.f32 %v5939_v3, %v3367_v26 }
 0x439   : > { %v4364_v59 = vpop.f32.mrf.mxu0 }
 0x43a   : > { %v3464_v37 = vmax.f32 %v3448_v6, 0.0  ;;  %v3446_v29 = vadd.f32 %v3430_v39, %v3368_v7  ;;  %v3379_v57 = vadd.f32 %v4364_v59, %v5939_v3  ;;  %v3445_v6 = vld [vmem:[%s5305_s22 + $0x78] sm:$0xff] }
 0x43b   : > { %v3370_v34 = vpop.f32.mrf.mxu0 }
 0x43c   : > { %3480 = vst [vmem:[%s5547_s3 + $0x10] sm:$0xff] %v3464_v37  ;;  %v3462_v35 = vmax.f32 %v3446_v29, 0.0  ;;  %v3449_v12 = vadd.f32 %v3433_v56, %v3379_v57  ;;  %v3371_v49 = vadd.f32 %v5939_v3, %v3370_v34  ;;  %v3443_v29 = vld [vmem:[%s5305_s22 + $0x68] sm:$0xff] }
 0x43d   : > { %v4367_v18 = vpop.f32.mrf.mxu1 }
 0x43e   : > { %3478 = vst [vmem:[%s5547_s3] sm:$0xff] %v3462_v35  ;;  %v3465_v45 = vmax.f32 %v3449_v12, 0.0  ;;  %v3447_v15 = vadd.f32 %v3431_v19, %v3371_v49  ;;  %v3392_v38 = vadd.f32 %v4367_v18, %v5939_v3 }
 0x43f   : > { %v3383_v48 = vpop.f32.mrf.mxu1 }
 0x440   : > { %3481 = vst [vmem:[%s5547_s3 + $0x18] sm:$0xff] %v3465_v45  ;;  %v3463_v10 = vmax.f32 %v3447_v15, 0.0  ;;  %v3452_v31 = vadd.f32 %v3436_v20, %v3392_v38  ;;  %v3384_v27 = vadd.f32 %v5939_v3, %v3383_v48 }
 0x441   : > { %v4368_v13 = vpop.f32.mrf.mxu1 }
 0x442   : > { %3479 = vst [vmem:[%s5547_s3 + $0x8] sm:$0xff] %v3463_v10  ;;  %v3468_v55 = vmax.f32 %v3452_v31, 0.0  ;;  %v3450_v54 = vadd.f32 %v3434_v60, %v3384_v27  ;;  %v3395_v50 = vadd.f32 %v4368_v13, %v5939_v3 }
 0x443   : > { %v3386_v33 = vpop.f32.mrf.mxu1 }
 0x444   : > { %3484 = vst [vmem:[%s5547_s3 + $0x30] sm:$0xff] %v3468_v55  ;;  %v3466_v24 = vmax.f32 %v3450_v54, 0.0  ;;  %v3453_v23 = vadd.f32 %v3437_v14, %v3395_v50  ;;  %v3387_v8 = vadd.f32 %v5939_v3, %v3386_v33 }
 0x445   : > { %v4371_v46 = vpop.f32.mrf.mxu1 }
 0x446   : > { %3482 = vst [vmem:[%s5547_s3 + $0x20] sm:$0xff] %v3466_v24  ;;  %v3469_v62 = vmax.f32 %v3453_v23, 0.0  ;;  %v3451_v52 = vadd.f32 %v3435_v47, %v3387_v8  ;;  %v3408_v41 = vadd.f32 %v4371_v46, %v5939_v3 }
 0x447   : > { %v3399_v63 = vpop.f32.mrf.mxu1 }
 0x448   : > { %3485 = vst [vmem:[%s5547_s3 + $0x38] sm:$0xff] %v3469_v62  ;;  %v3467_v44 = vmax.f32 %v3451_v52, 0.0  ;;  %v3456_v25 = vadd.f32 %v3440_v61, %v3408_v41  ;;  %v3400_v9 = vadd.f32 %v5939_v3, %v3399_v63 }
 0x449   : > { %v4372_v58 = vpop.f32.mrf.mxu1 }
 0x44a   : > { %3483 = vst [vmem:[%s5547_s3 + $0x28] sm:$0xff] %v3467_v44  ;;  %v3472_v11 = vmax.f32 %v3456_v25, 0.0  ;;  %v3454_v36 = vadd.f32 %v3438_v53, %v3400_v9  ;;  %v3411_v40 = vadd.f32 %v4372_v58, %v5939_v3 }
 0x44b   : > { %v3402_v1 = vpop.f32.mrf.mxu1 }
 0x44c   : > { %3488 = vst [vmem:[%s5547_s3 + $0x50] sm:$0xff] %v3472_v11  ;;  %v3470_v30 = vmax.f32 %v3454_v36, 0.0  ;;  %v3457_v4 = vadd.f32 %v3441_v32, %v3411_v40  ;;  %v3403_v42 = vadd.f32 %v5939_v3, %v3402_v1 }
 0x44d   : > { %v4375_v5 = vpop.f32.mrf.mxu1 }
 0x44e   : > { %3486 = vst [vmem:[%s5547_s3 + $0x40] sm:$0xff] %v3470_v30  ;;  %v3473_v16 = vmax.f32 %v3457_v4, 0.0  ;;  %v3455_v51 = vadd.f32 %v3439_v43, %v3403_v42  ;;  %v3424_v2 = vadd.f32 %v4375_v5, %v5939_v3 }
 0x44f   : > { %v3415_v21 = vpop.f32.mrf.mxu1 }
 0x450   : > { %3489 = vst [vmem:[%s5547_s3 + $0x58] sm:$0xff] %v3473_v16  ;;  %v3471_v17 = vmax.f32 %v3455_v51, 0.0  ;;  %v3460_v0 = vadd.f32 %v3444_v22, %v3424_v2  ;;  %v3416_v26 = vadd.f32 %v5939_v3, %v3415_v21 }
 0x451   : > { %v4376_v39 = vpop.f32.mrf.mxu1 }
 0x452   : > { %3487 = vst [vmem:[%s5547_s3 + $0x48] sm:$0xff] %v3471_v17  ;;  %v3476_v7 = vmax.f32 %v3460_v0, 0.0  ;;  %v3458_v59 = vadd.f32 %v3442_v28, %v3416_v26  ;;  %v3427_v56 = vadd.f32 %v4376_v39, %v5939_v3 }
 0x453   : > { %v3418_v37 = vpop.f32.mrf.mxu1 }
 0x454   : > { %3492 = vst [vmem:[%s5547_s3 + $0x70] sm:$0xff] %v3476_v7  ;;  %v3474_v57 = vmax.f32 %v3458_v59, 0.0  ;;  %v3461_v34 = vadd.f32 %v3445_v6, %v3427_v56  ;;  %v3419_v19 = vadd.f32 %v5939_v3, %v3418_v37 }
 0x456   : > { %3490 = vst [vmem:[%s5547_s3 + $0x60] sm:$0xff] %v3474_v57  ;;  %v3477_v35 = vmax.f32 %v3461_v34, 0.0  ;;  %v3459_v12 = vadd.f32 %v3443_v29, %v3419_v19 }
 0x458   : > { %3493 = vst [vmem:[%s5547_s3 + $0x78] sm:$0xff] %v3477_v35  ;;  %v3475_v49 = vmax.f32 %v3459_v12, 0.0 }
 0x45a   : > { %3491 = vst [vmem:[%s5547_s3 + $0x68] sm:$0xff] %v3475_v49 }
 0x45b   : > { %s6185_s10 = sld [smem:[#allocation35_spill]]  ;;  %s3522_s29 = sshll.u32 %s5547_s3, 4  ;;  %s3523_s29 = int_to_ptr.vmem [resolvable:$true] %s3522_s29 }
 0x45c   : > { %s6186_s30 = sld [smem:[#allocation42_spill]]  ;;  %s4969_s13 = smov 1024  }
 0x45d   : > { %s6187_s28 = sld [smem:[#allocation71_spill]]  ;;  %s4970_s25 = smov 4096  }
 0x45e   : > { %s4971_s15 = smov 8   ;;  %s4972_s12 = smov 128  }
 0x45f   : > { %s4973_s3 = smov 131072   ;;  %s4974_s26 = smov 0  }
 0x461   : > { %s3964_s22 = sshll.u32 %s6185_s10, 10 }
 0x462   : > { %p6188_p6 = scmp.ne.s32.totalorder %s6186_s30, 0 }
 0x463   : > { %s3511_s8 = scalar_lea.hbm %s6187_s28, %s3964_s22 }
 0x464   : > { %4432 = sst [smem:[#allocation22]] (%p6188_p6), %s4969_s13 }
 0x465   : > { %4433 = sst [smem:[#allocation22 + $0x1]] (%p6188_p6), %s4970_s25 }
 0x466   : > { %4434 = sst [smem:[#allocation22 + $0x2]] (%p6188_p6), %s4971_s15 }
 0x467   : > { %4435 = sst [smem:[#allocation22 + $0x3]] (%p6188_p6), %s4972_s12 }
 0x468   : > { %4436 = sst [smem:[#allocation22 + $0x4]] (%p6188_p6), %s4972_s12 }
 0x469   : > { %4437 = sst [smem:[#allocation22 + $0x5]] (%p6188_p6), %s4971_s15 }
 0x46a   : > { %4438 = dma.general (%p6188_p6), %s3523_s29, 2048, %s3511_s8, %s3495_s18, %s4973_s3, [#allocation22], %s4974_s26, 0  }
 0x46b PF: > { %s6189_s9 = sld [smem:[#allocation34_spill]]  ;;  %p4460_p9 = scmp.ge.s32.totalorder %s4943_s20, 2 }
 0x46c   : > { %s6190_s6 = sld [smem:[#allocation44_spill]] }
 0x471   : > { %s3550_s5 = sand.u32 1, %s6189_s9  }
 0x472   : > { %p6191_p3 = scmp.ne.s32.totalorder %s6190_s6, 0  ;;  %s3551_s4 = scalar_lea.sflag [#allocation5], %s3550_s5 }
 0x474   : > { %p4451_p4 = pnand %p4460_p9, %p6191_p3 }
 0x476   : > { %p4452_p5 = pneg %p4451_p4 }
 0x478   : > { %4894 = dma.done.wait (%p4452_p5), %s3551_s4, 2048  }
 0x479   : > { %4896 = vsyncadd (%p4452_p5), %s3551_s4, 4294965248  ;;  %s30_s20 = sadd.s32 1, %s4943_s20   ;;  %s6192_s30 = sld [smem:[#allocation32_spill]] }
 0x47a   : > { %p27_p10 = scmp.ge.s32.totalorder %s30_s20, 6   ;;  %s6193_s21 = sld [smem:[#allocation43_spill]] }
 0x47b   : > { %s6194_s12 = sld [smem:[#allocation33_spill]]  ;;  %s6198_s10 = smov %s4907_s11 }
 0x47c   : > { %s6195_s23 = sld [smem:[#allocation40_spill]]  ;;  %s6200_s13 = smov %s4919_s14 }
 0x47d   : > { %s6196_s18 = sld [smem:[#allocation38_spill]]  ;;  %s6202_s15 = smov %s4927_s16 }
 0x47e   : > { %s6197_s22 = sld [smem:[#allocation37_spill]]  ;;  %s6203_s16 = smov %s4931_s17 }
 0x480   : > { %s6199_s11 = smov %s6193_s21  ;;  %29 = sbr.rel (!%p27_p10) target bundleno = 20 (0x14), region = 168 }
 0x482   : > { %s6201_s14 = smov %s6195_s23 }
 0x483   : > { %s6204_s17 = smov %s6196_s18  ;;  %s6205_s18 = smov %s4939_s19 }
 0x484   : > { %s6206_s19 = smov %s6197_s22 }
 0x485   :  { %3556 = vsyncpa [#allocation4], 1 }
 0x486   :  { %3558 = vsyncpa [#allocation4 + $0x1], 1 }
 0x487   :  { %3559 = vsyncpa [#allocation7], 1 }
 0x488   :  { %3561 = vsyncpa [#allocation7 + $0x1], 1 }
 0x489   :  { %3562 = vsyncpa [#allocation10], 1 }
 0x48a   :  { %3563 = vsyncpa [#allocation13], 1 }
 0x48b   :  { %3564 = vsyncpa [#allocation5], 1 }
 0x48c   :  { %3566 = vsyncpa [#allocation5 + $0x1], 1 }

</bundles_post_ra>
